<compile_context>
chip_gen: v5e
topology: v5e:2x2
jax: 0.10.0
libtpu: 0.0.40
codegen_flags: <defaults>
</compile_context>

<pallas_src>
import functools

import jax
import jax.numpy as jnp
from jax.experimental import pallas as pl
from jax.experimental.pallas import tpu as pltpu


# -----------------------------------------------------------------------------
# small helpers
# -----------------------------------------------------------------------------
def _round_up(x, m):
    return (x + m - 1) // m * m


def _pad_axis(x, axis, target):
    pad = target - x.shape[axis]
    if pad <= 0:
        return x
    widths = [(0, 0)] * x.ndim
    widths[axis] = (0, pad)
    return jnp.pad(x, widths)


def _vmem_limit(block_bytes, headroom=1.5,
                cap=64 * 1024 * 1024, floor=4 * 1024 * 1024):
    # explicit scoped-VMEM request; cap below v7x's 64 MiB physical VMEM
    return int(min(cap, max(floor, block_bytes * headroom)))


# -----------------------------------------------------------------------------
# Kernel 1: fused 4-way MLP as ONE concatenated matmul
#   Linear + LeakyReLU(0.1); dropout = identity at eval
# -----------------------------------------------------------------------------
def _fused_mlp_kernel(x_ref, w_ref, b_ref, o0_ref, o1_ref, o2_ref, o3_ref):
    x = x_ref[...]                                    # [TM, n_in] bf16, loaded once
    y = jnp.dot(x, w_ref[...], preferred_element_type=jnp.float32)   # one MXU push
    y = y + b_ref[...]                                # f32 bias
    y = jnp.where(y >= 0, y, 0.1 * y)                 # LeakyReLU(0.1), single epilogue
    y = y.astype(o0_ref.dtype)                        # bf16
    off = 0
    for o_ref in (o0_ref, o1_ref, o2_ref, o3_ref):    # 128-aligned lane splits
        w = o_ref.shape[1]
        o_ref[...] = y[:, off:off + w]
        off += w


def fused_mlp_pallas(x, w_cat, b_cat, widths, tm=512):
    """x: [N, n_in] bf16 ; w_cat: [n_in, W_total] bf16 ; b_cat: [1, W_total] f32.
    widths: 4 padded (128-multiple) output widths summing to W_total.
    Returns 4 arrays [N, w_i] bf16 with LeakyReLU applied."""
    N, n_in = x.shape
    Wt = w_cat.shape[1]
    tm = min(tm, N)

    flops = 2 * N * n_in * Wt
    bytes_accessed = N * n_in * 2 + n_in * Wt * 2 + Wt * 4 + N * Wt * 2
    # double-buffered blocks + in-kernel f32/bf16 intermediates
    blk_bytes = (2 * (tm * n_in * 2 + n_in * Wt * 2 + Wt * 4)
                 + 2 * sum(tm * w * 2 for w in widths)
                 + tm * Wt * 6)

    return pl.pallas_call(
        _fused_mlp_kernel,
        out_shape=tuple(jax.ShapeDtypeStruct((N, w), jnp.bfloat16) for w in widths),
        grid=(pl.cdiv(N, tm),),
        in_specs=[
            pl.BlockSpec((tm, n_in), lambda i: (i, 0)),
            pl.BlockSpec((n_in, Wt), lambda i: (0, 0)),    # resident concat weights
            pl.BlockSpec((1, Wt), lambda i: (0, 0)),       # resident concat bias
        ],
        out_specs=tuple(pl.BlockSpec((tm, w), lambda i: (i, 0)) for w in widths),
        compiler_params=pltpu.CompilerParams(
            dimension_semantics=("parallel",),
            vmem_limit_bytes=_vmem_limit(blk_bytes)),
        cost_estimate=pl.CostEstimate(flops=int(flops), transcendentals=0,
                                      bytes_accessed=int(bytes_accessed)),
    )(x, w_cat, b_cat)


# -----------------------------------------------------------------------------
# Kernel 2: Biaffine (bias_x=True, bias_y=True), bias folded in-kernel,
#           gridded over (channel-chunks, batch)
#   out[b, o, s, t] = xd[b,s]·W[o,:d,:d]·xh[b,t] + xd[b,s]·W[o,:d,d]
#                     + W[o,d,:d]·xh[b,t] + W[o,d,d]
# -----------------------------------------------------------------------------
def _biaffine_kernel(xd_ref, xht_ref, wm_ref, wc_ref, wr_ref, wb_ref, o_ref):
    xd = xd_ref[0]                                    # [S, d] bf16
    xht = xht_ref[0]                                  # [d, S] bf16 (pre-transposed)

    # bias_x column term: col[s, o] = xd[s,:] . W[o,:d,d]
    col = jax.lax.dot_general(xd, wc_ref[...], (((1,), (1,)), ((), ())),
                              preferred_element_type=jnp.float32)     # [S, C]
    # bias_y row term + corner: row[o, t] = W[o,d,:d] . xh[t,:] + W[o,d,d]
    row = jnp.dot(wr_ref[...], xht, preferred_element_type=jnp.float32)  # [C, S]
    row = row + wb_ref[...]

    # batched first contraction across the whole channel chunk:
    #   tmp[:, o*d:(o+1)*d] = xd @ W[o,:d,:d]
    tmp = jnp.dot(xd, wm_ref[...], preferred_element_type=jnp.float32)   # [S, C*d]
    # NOTE: bf16 round-trip before the second MXU matmul (reference keeps f32;
    # acceptable for scores, keep f32 here if exact parity is required).
    tmp = tmp.astype(jnp.bfloat16)

    d = xht.shape[0]
    C = wr_ref.shape[0]
    for o in range(C):                                # C <= 8: small static unroll
        core = jnp.dot(tmp[:, o * d:(o + 1) * d], xht,
                       preferred_element_type=jnp.float32)               # [S, S]
        o_ref[0, o] = core + col[:, o:o + 1] + row[o:o + 1, :]


def biaffine_pallas(xd, xh, w, max_chunk=8):
    """xd, xh: [B, S_pad, d_pad] bf16 (zero padded) ; w: [n_out, d+1, d+1] f32
    -> [B, n_out, S_pad, S_pad] f32 (channel-major, lane-dense in S)."""
    B, S_pad, d_pad = xd.shape
    n_out = w.shape[0]
    d = w.shape[1] - 1
    C = n_out if n_out <= max_chunk else max_chunk
    n_out_pad = _round_up(n_out, C)
    n_chunks = n_out_pad // C

    # split + zero-pad the (d+1)x(d+1) weight into aligned pieces
    wm = _pad_axis(_pad_axis(_pad_axis(w[:, :d, :d], 1, d_pad), 2, d_pad), 0, n_out_pad)
    wc = _pad_axis(_pad_axis(w[:, :d, d], 1, d_pad), 0, n_out_pad)
    wr = _pad_axis(_pad_axis(w[:, d, :d], 1, d_pad), 0, n_out_pad)
    wb = _pad_axis(w[:, d, d].reshape(n_out, 1), 0, n_out_pad).astype(jnp.float32)

    # [d_pad, n_out_pad*d_pad] so the first contraction is batched over channels
    wm_flat = jnp.transpose(wm, (1, 0, 2)).reshape(
        d_pad, n_out_pad * d_pad).astype(jnp.bfloat16)
    wc = wc.astype(jnp.bfloat16)
    wr = wr.astype(jnp.bfloat16)

    # pre-transpose xh once so in-kernel contractions are plain [M,K]x[K,N]
    xht = jnp.transpose(xh, (0, 2, 1))                # [B, d_pad, S_pad]

    flops = 2 * B * n_out_pad * (S_pad * d_pad * d_pad + S_pad * S_pad * d_pad)
    bytes_accessed = (2 * B * S_pad * d_pad * 2
                      + n_out_pad * d_pad * d_pad * 2
                      + 2 * n_out_pad * d_pad * 2 + n_out_pad * 4
                      + B * n_out_pad * S_pad * S_pad * 4)
    blk_bytes = (2 * (2 * S_pad * d_pad * 2            # xd + xht
                      + C * d_pad * d_pad * 2          # wm chunk
                      + 2 * C * d_pad * 2 + C * 4      # wc, wr, wb
                      + C * S_pad * S_pad * 4)         # out chunk
                 + S_pad * C * d_pad * 6 + S_pad * S_pad * 4)   # intermediates

    out = pl.pallas_call(
        _biaffine_kernel,
        out_shape=jax.ShapeDtypeStruct((B, n_out_pad, S_pad, S_pad), jnp.float32),
        grid=(n_chunks, B),                           # chunk outer -> wm reused over B
        in_specs=[
            pl.BlockSpec((1, S_pad, d_pad), lambda c, b: (b, 0, 0)),
            pl.BlockSpec((1, d_pad, S_pad), lambda c, b: (b, 0, 0)),
            pl.BlockSpec((d_pad, C * d_pad), lambda c, b: (0, c)),   # streamed chunk
            pl.BlockSpec((C, d_pad), lambda c, b: (c, 0)),
            pl.BlockSpec((C, d_pad), lambda c, b: (c, 0)),
            pl.BlockSpec((C, 1), lambda c, b: (c, 0)),
        ],
        out_specs=pl.BlockSpec((1, C, S_pad, S_pad), lambda c, b: (b, c, 0, 0)),
        compiler_params=pltpu.CompilerParams(
            dimension_semantics=("parallel", "parallel"),
            vmem_limit_bytes=_vmem_limit(blk_bytes)),
        cost_estimate=pl.CostEstimate(flops=int(flops), transcendentals=0,
                                      bytes_accessed=int(bytes_accessed)),
    )(xd, xht, wm_flat, wc, wr, wb)
    return out[:, :n_out]                             # drop padded channels


# -----------------------------------------------------------------------------
# Model (parameter setup + forward glue)
# -----------------------------------------------------------------------------
def init_params(key, *, vocab, n_bert, n_tags, tag_dim, n_edge_mlp, n_label_mlp,
                n_labels):
    n_in = n_bert + tag_dim
    ks = jax.random.split(key, 8)
    s = 0.02
    return {
        # simplified encoder: subword embedding table (mean-pooled per word)
        "enc_emb": jax.random.normal(ks[0], (vocab, n_bert), jnp.float32) * s,
        "tag_emb": jax.random.normal(ks[1], (n_tags, tag_dim), jnp.float32) * s,
        "edge_d_w": jax.random.normal(ks[2], (n_in, n_edge_mlp), jnp.float32) * s,
        "edge_d_b": jnp.zeros((1, n_edge_mlp), jnp.float32),
        "edge_h_w": jax.random.normal(ks[3], (n_in, n_edge_mlp), jnp.float32) * s,
        "edge_h_b": jnp.zeros((1, n_edge_mlp), jnp.float32),
        "label_d_w": jax.random.normal(ks[4], (n_in, n_label_mlp), jnp.float32) * s,
        "label_d_b": jnp.zeros((1, n_label_mlp), jnp.float32),
        "label_h_w": jax.random.normal(ks[5], (n_in, n_label_mlp), jnp.float32) * s,
        "label_h_b": jnp.zeros((1, n_label_mlp), jnp.float32),
        # Biaffine weights: [n_out, d+1, d+1] (bias_x=bias_y=True)
        "edge_attn_w": jax.random.normal(
            ks[6], (2, n_edge_mlp + 1, n_edge_mlp + 1), jnp.float32) * s,
        "label_attn_w": jax.random.normal(
            ks[7], (n_labels, n_label_mlp + 1, n_label_mlp + 1), jnp.float32) * s,
    }


@functools.partial(jax.jit, static_argnames=("pad_index",))
def semantic_dependency_forward(params, subwords, tags, pad_index=0):
    """subwords: [B, S, F] int32 ; tags: [B, S] int32.
    Returns (s_edge [B, S, S, 2], s_label [B, S, S, n_labels]), f32."""
    B, S, _F = subwords.shape

    # --- encoder (simplified stand-in): embedding lookup + mean pool ---------
    sub_emb = params["enc_emb"][subwords]                       # [B, S, F, n_bert]
    sub_mask = (subwords != pad_index).astype(jnp.float32)      # [B, S, F]
    summed = jnp.sum(sub_emb * sub_mask[..., None], axis=2)     # [B, S, n_bert]
    cnt = jnp.clip(jnp.sum(sub_mask, axis=2), 1.0)[..., None]
    bert_out = summed / cnt                                     # [B, S, n_bert]

    # --- tag embedding + concat ----------------------------------------------
    tag_out = params["tag_emb"][tags]                           # [B, S, 64]
    x = jnp.concatenate([bert_out, tag_out], axis=-1)           # [B, S, n_in]
    n_in = x.shape[-1]

    # --- pad S and n_in so every downstream block is (8,128)-aligned ---------
    S_pad = _round_up(S, 128)
    n_in_pad = _round_up(n_in, 128)
    x = _pad_axis(_pad_axis(x, 1, S_pad), 2, n_in_pad)
    x2d = x.reshape(B * S_pad, n_in_pad).astype(jnp.bfloat16)

    # --- four MLPs as one concatenated matmul (widths padded to 128-mult) ----
    ws, bs, widths = [], [], []
    for nm in ("edge_d", "edge_h", "label_d", "label_h"):
        w_i, b_i = params[nm + "_w"], params[nm + "_b"]
        wp = _round_up(w_i.shape[1], 128)
        ws.append(_pad_axis(_pad_axis(w_i, 0, n_in_pad), 1, wp).astype(jnp.bfloat16))
        bs.append(_pad_axis(b_i, 1, wp))
        widths.append(wp)
    w_cat = jnp.concatenate(ws, axis=1)                          # [n_in_pad, W_total]
    b_cat = jnp.concatenate(bs, axis=1)                          # [1, W_total] f32

    edge_d, edge_h, label_d, label_h = fused_mlp_pallas(
        x2d, w_cat, b_cat, tuple(widths))
    edge_d = edge_d.reshape(B, S_pad, widths[0])
    edge_h = edge_h.reshape(B, S_pad, widths[1])
    label_d = label_d.reshape(B, S_pad, widths[2])
    label_h = label_h.reshape(B, S_pad, widths[3])

    # --- Biaffine attentions (channel-major / lane-dense, channel-chunked) ---
    s_edge = biaffine_pallas(edge_d, edge_h, params["edge_attn_w"])      # [B,2,Sp,Sp]
    s_label = biaffine_pallas(label_d, label_h, params["label_attn_w"])  # [B,L,Sp,Sp]

    # [B, n_out, S_pad, S_pad] is the Pallas-native lane-dense layout; slice the
    # padding and permute only for torch `.permute(0, 2, 3, 1)` parity.
    # Consumers that can read channel-major should skip this transpose.
    s_edge = jnp.transpose(s_edge[:, :, :S, :S], (0, 2, 3, 1))   # [B, S, S, 2]
    s_label = jnp.transpose(s_label[:, :, :S, :S], (0, 2, 3, 1))  # [B, S, S, L]
    return s_edge, s_label


# -----------------------------------------------------------------------------
# Main
# -----------------------------------------------------------------------------
if __name__ == "__main__":
    # small, shape-consistent config
    B, S, F = 2, 8, 4          # batch, words per sentence, subwords per word
    VOCAB = 50
    N_BERT = 64                # substitute encoder width (n_in = 64+64 = 128)
    N_TAGS = 10
    TAG_DIM = 64               # fixed in the reference module
    N_EDGE_MLP = 128           # lane-aligned stand-in for the 600 default
    N_LABEL_MLP = 128
    N_LABELS = 8

    key = jax.random.PRNGKey(0)
    kp, ks1, ks2, kt = jax.random.split(key, 4)

    params = init_params(
        kp, vocab=VOCAB, n_bert=N_BERT, n_tags=N_TAGS, tag_dim=TAG_DIM,
        n_edge_mlp=N_EDGE_MLP, n_label_mlp=N_LABEL_MLP, n_labels=N_LABELS)

    # subwords: first subword of each word is non-pad; rest may be pad (0)
    first = jax.random.randint(ks1, (B, S, 1), 1, VOCAB, dtype=jnp.int32)
    rest = jax.random.randint(ks2, (B, S, F - 1), 0, VOCAB, dtype=jnp.int32)
    subwords = jnp.concatenate([first, rest], axis=-1)          # [B, S, F]
    tags = jax.random.randint(kt, (B, S), 0, N_TAGS, dtype=jnp.int32)

    s_edge, s_label = semantic_dependency_forward(params, subwords, tags)
    jax.block_until_ready((s_edge, s_label))

    assert s_edge.shape == (B, S, S, 2), s_edge.shape
    assert s_label.shape == (B, S, S, N_LABELS), s_label.shape
    assert s_edge.dtype == jnp.float32 and s_label.dtype == jnp.float32

    print("KERNEL_OK")
</pallas_src>

<mosaic_0001>
module attributes {stable_mosaic.version = 11 : i64} {
  func.func @_fused_mlp_kernel(%arg0: i32, %arg1: memref<256x128xbf16, #tpu.memory_space<vmem>>, %arg2: memref<128x512xbf16, #tpu.memory_space<vmem>>, %arg3: memref<1x512xf32, #tpu.memory_space<vmem>>, %arg4: memref<256x128xbf16, #tpu.memory_space<vmem>>, %arg5: memref<256x128xbf16, #tpu.memory_space<vmem>>, %arg6: memref<256x128xbf16, #tpu.memory_space<vmem>>, %arg7: memref<256x128xbf16, #tpu.memory_space<vmem>>) attributes {dimension_semantics = [#tpu.dimension_semantics<parallel>], iteration_bounds = array<i64: 1>, scalar_prefetch = 0 : i64, scratch_operands = 0 : i64, tpu.core_type = #tpu.core_type<tc>, window_params = [{transform_indices = @transform_0, window_bounds = array<i64: 256, 128>}, {pipeline_mode = #tpu.pipeline_mode<synchronous>, transform_indices = @transform_1, window_bounds = array<i64: 128, 512>}, {pipeline_mode = #tpu.pipeline_mode<synchronous>, transform_indices = @transform_2, window_bounds = array<i64: 1, 512>}, {transform_indices = @transform_3, window_bounds = array<i64: 256, 128>}, {transform_indices = @transform_4, window_bounds = array<i64: 256, 128>}, {transform_indices = @transform_5, window_bounds = array<i64: 256, 128>}, {transform_indices = @transform_6, window_bounds = array<i64: 256, 128>}]} {
    %c0 = arith.constant 0 : index
    %c0_0 = arith.constant 0 : index
    %0 = vector.load %arg1[%c0, %c0_0] : memref<256x128xbf16, #tpu.memory_space<vmem>>, vector<256x128xbf16>
    %c0_1 = arith.constant 0 : index
    %c0_2 = arith.constant 0 : index
    %1 = vector.load %arg2[%c0_1, %c0_2] : memref<128x512xbf16, #tpu.memory_space<vmem>>, vector<128x512xbf16>
    %cst = arith.constant dense<0.000000e+00> : vector<256x512xf32>
    %2 = tpu.matmul %0, %1, %cst {dimension_numbers = #tpu.dot_dimension_numbers<[1], [0], [0], [1], [0, 0, 1, 1], [], []>} : vector<256x128xbf16>, vector<128x512xbf16>, vector<256x512xf32> -> vector<256x512xf32>
    %c0_3 = arith.constant 0 : index
    %c0_4 = arith.constant 0 : index
    %3 = vector.load %arg3[%c0_3, %c0_4] : memref<1x512xf32, #tpu.memory_space<vmem>>, vector<1x512xf32>
    %4 = vector.broadcast %3 : vector<1x512xf32> to vector<256x512xf32>
    %5 = arith.addf %2, %4 : vector<256x512xf32>
    %cst_5 = arith.constant 0.000000e+00 : f32
    %6 = vector.broadcast %cst_5 : f32 to vector<256x512xf32>
    %7 = arith.cmpf oge, %5, %6 : vector<256x512xf32>
    %cst_6 = arith.constant 1.000000e-01 : f32
    %8 = vector.broadcast %cst_6 : f32 to vector<256x512xf32>
    %9 = arith.mulf %8, %5 : vector<256x512xf32>
    %10 = arith.select %7, %5, %9 : vector<256x512xi1>, vector<256x512xf32>
    %11 = arith.truncf %10 : vector<256x512xf32> to vector<256x512xbf16>
    %12 = vector.extract_strided_slice %11 {offsets = [0, 0], sizes = [256, 128], strides = [1, 1]} : vector<256x512xbf16> to vector<256x128xbf16>
    %c0_7 = arith.constant 0 : index
    %c0_8 = arith.constant 0 : index
    %13 = vector.load %arg4[%c0_7, %c0_8] : memref<256x128xbf16, #tpu.memory_space<vmem>>, vector<256x128xbf16>
    tpu.vector_store %arg4[%c0_7, %c0_8], %12 {strides = array<i32>} : memref<256x128xbf16, #tpu.memory_space<vmem>>, vector<256x128xbf16>,
    %14 = vector.extract_strided_slice %11 {offsets = [0, 128], sizes = [256, 128], strides = [1, 1]} : vector<256x512xbf16> to vector<256x128xbf16>
    %c0_9 = arith.constant 0 : index
    %c0_10 = arith.constant 0 : index
    %15 = vector.load %arg5[%c0_9, %c0_10] : memref<256x128xbf16, #tpu.memory_space<vmem>>, vector<256x128xbf16>
    tpu.vector_store %arg5[%c0_9, %c0_10], %14 {strides = array<i32>} : memref<256x128xbf16, #tpu.memory_space<vmem>>, vector<256x128xbf16>,
    %16 = vector.extract_strided_slice %11 {offsets = [0, 256], sizes = [256, 128], strides = [1, 1]} : vector<256x512xbf16> to vector<256x128xbf16>
    %c0_11 = arith.constant 0 : index
    %c0_12 = arith.constant 0 : index
    %17 = vector.load %arg6[%c0_11, %c0_12] : memref<256x128xbf16, #tpu.memory_space<vmem>>, vector<256x128xbf16>
    tpu.vector_store %arg6[%c0_11, %c0_12], %16 {strides = array<i32>} : memref<256x128xbf16, #tpu.memory_space<vmem>>, vector<256x128xbf16>,
    %18 = vector.extract_strided_slice %11 {offsets = [0, 384], sizes = [256, 128], strides = [1, 1]} : vector<256x512xbf16> to vector<256x128xbf16>
    %c0_13 = arith.constant 0 : index
    %c0_14 = arith.constant 0 : index
    %19 = vector.load %arg7[%c0_13, %c0_14] : memref<256x128xbf16, #tpu.memory_space<vmem>>, vector<256x128xbf16>
    tpu.vector_store %arg7[%c0_13, %c0_14], %18 {strides = array<i32>} : memref<256x128xbf16, #tpu.memory_space<vmem>>, vector<256x128xbf16>,
    return
  }
  func.func @transform_0(%arg0: i32) -> (i32, i32) {
    %c0_i32 = arith.constant 0 : i32
    %c0_i32_0 = arith.constant 0 : i32
    return %arg0, %c0_i32 : i32, i32
  }
  func.func @transform_1(%arg0: i32) -> (i32, i32) {
    %c0_i32 = arith.constant 0 : i32
    %c0_i32_0 = arith.constant 0 : i32
    %c0_i32_1 = arith.constant 0 : i32
    return %c0_i32, %c0_i32_0 : i32, i32
  }
  func.func @transform_2(%arg0: i32) -> (i32, i32) {
    %c0_i32 = arith.constant 0 : i32
    %c0_i32_0 = arith.constant 0 : i32
    %c0_i32_1 = arith.constant 0 : i32
    return %c0_i32, %c0_i32_0 : i32, i32
  }
  func.func @transform_3(%arg0: i32) -> (i32, i32) {
    %c0_i32 = arith.constant 0 : i32
    %c0_i32_0 = arith.constant 0 : i32
    return %arg0, %c0_i32 : i32, i32
  }
  func.func @transform_4(%arg0: i32) -> (i32, i32) {
    %c0_i32 = arith.constant 0 : i32
    %c0_i32_0 = arith.constant 0 : i32
    return %arg0, %c0_i32 : i32, i32
  }
  func.func @transform_5(%arg0: i32) -> (i32, i32) {
    %c0_i32 = arith.constant 0 : i32
    %c0_i32_0 = arith.constant 0 : i32
    return %arg0, %c0_i32 : i32, i32
  }
  func.func @transform_6(%arg0: i32) -> (i32, i32) {
    %c0_i32 = arith.constant 0 : i32
    %c0_i32_0 = arith.constant 0 : i32
    return %arg0, %c0_i32 : i32, i32
  }
}

module attributes {stable_mosaic.version = 11 : i64} {
  func.func @_biaffine_kernel(%arg0: i32, %arg1: i32, %arg2: memref<1x128x128xbf16, #tpu.memory_space<vmem>>, %arg3: memref<1x128x128xbf16, #tpu.memory_space<vmem>>, %arg4: memref<128x256xbf16, #tpu.memory_space<vmem>>, %arg5: memref<2x128xbf16, #tpu.memory_space<vmem>>, %arg6: memref<2x128xbf16, #tpu.memory_space<vmem>>, %arg7: memref<2x1xf32, #tpu.memory_space<vmem>>, %arg8: memref<1x2x128x128xf32, #tpu.memory_space<vmem>>) attributes {dimension_semantics = [#tpu.dimension_semantics<parallel>, #tpu.dimension_semantics<parallel>], iteration_bounds = array<i64: 1, 2>, scalar_prefetch = 0 : i64, scratch_operands = 0 : i64, tpu.core_type = #tpu.core_type<tc>, window_params = [{transform_indices = @transform_0, window_bounds = array<i64: 1, 128, 128>}, {transform_indices = @transform_1, window_bounds = array<i64: 1, 128, 128>}, {transform_indices = @transform_2, window_bounds = array<i64: 128, 256>}, {transform_indices = @transform_3, window_bounds = array<i64: 2, 128>}, {transform_indices = @transform_4, window_bounds = array<i64: 2, 128>}, {transform_indices = @transform_5, window_bounds = array<i64: 2, 1>}, {transform_indices = @transform_6, window_bounds = array<i64: 1, 2, 128, 128>}]} {
    %c0 = arith.constant 0 : index
    %c0_0 = arith.constant 0 : index
    %c0_1 = arith.constant 0 : index
    %0 = vector.load %arg2[%c0, %c0_0, %c0_1] : memref<1x128x128xbf16, #tpu.memory_space<vmem>>, vector<1x128x128xbf16>
    %1 = vector.shape_cast %0 : vector<1x128x128xbf16> to vector<128x128xbf16>
    %c0_2 = arith.constant 0 : index
    %c0_3 = arith.constant 0 : index
    %c0_4 = arith.constant 0 : index
    %2 = vector.load %arg3[%c0_2, %c0_3, %c0_4] : memref<1x128x128xbf16, #tpu.memory_space<vmem>>, vector<1x128x128xbf16>
    %3 = vector.shape_cast %2 : vector<1x128x128xbf16> to vector<128x128xbf16>
    %c0_5 = arith.constant 0 : index
    %c0_6 = arith.constant 0 : index
    %4 = vector.load %arg5[%c0_5, %c0_6] : memref<2x128xbf16, #tpu.memory_space<vmem>>, vector<2x128xbf16>
    %cst = arith.constant dense<0.000000e+00> : vector<128x2xf32>
    %5 = tpu.matmul %1, %4, %cst {dimension_numbers = #tpu.dot_dimension_numbers<[1], [1], [0], [0], [0, 0, 1, 0], [], []>} : vector<128x128xbf16>, vector<2x128xbf16>, vector<128x2xf32> -> vector<128x2xf32>
    %c0_7 = arith.constant 0 : index
    %c0_8 = arith.constant 0 : index
    %6 = vector.load %arg6[%c0_7, %c0_8] : memref<2x128xbf16, #tpu.memory_space<vmem>>, vector<2x128xbf16>
    %cst_9 = arith.constant dense<0.000000e+00> : vector<2x128xf32>
    %7 = tpu.matmul %6, %3, %cst_9 {dimension_numbers = #tpu.dot_dimension_numbers<[1], [0], [0], [1], [0, 0, 1, 1], [], []>} : vector<2x128xbf16>, vector<128x128xbf16>, vector<2x128xf32> -> vector<2x128xf32>
    %c0_10 = arith.constant 0 : index
    %c0_11 = arith.constant 0 : index
    %8 = vector.load %arg7[%c0_10, %c0_11] : memref<2x1xf32, #tpu.memory_space<vmem>>, vector<2x1xf32>
    %9 = vector.broadcast %8 : vector<2x1xf32> to vector<2x128xf32>
    %10 = arith.addf %7, %9 : vector<2x128xf32>
    %c0_12 = arith.constant 0 : index
    %c0_13 = arith.constant 0 : index
    %11 = vector.load %arg4[%c0_12, %c0_13] : memref<128x256xbf16, #tpu.memory_space<vmem>>, vector<128x256xbf16>
    %cst_14 = arith.constant dense<0.000000e+00> : vector<128x256xf32>
    %12 = tpu.matmul %1, %11, %cst_14 {dimension_numbers = #tpu.dot_dimension_numbers<[1], [0], [0], [1], [0, 0, 1, 1], [], []>} : vector<128x128xbf16>, vector<128x256xbf16>, vector<128x256xf32> -> vector<128x256xf32>
    %13 = arith.truncf %12 : vector<128x256xf32> to vector<128x256xbf16>
    %14 = vector.extract_strided_slice %13 {offsets = [0, 0], sizes = [128, 128], strides = [1, 1]} : vector<128x256xbf16> to vector<128x128xbf16>
    %cst_15 = arith.constant dense<0.000000e+00> : vector<128x128xf32>
    %15 = tpu.matmul %14, %3, %cst_15 {dimension_numbers = #tpu.dot_dimension_numbers<[1], [0], [0], [1], [0, 0, 1, 1], [], []>} : vector<128x128xbf16>, vector<128x128xbf16>, vector<128x128xf32> -> vector<128x128xf32>
    %16 = vector.extract_strided_slice %5 {offsets = [0, 0], sizes = [128, 1], strides = [1, 1]} : vector<128x2xf32> to vector<128x1xf32>
    %17 = vector.broadcast %16 : vector<128x1xf32> to vector<128x128xf32>
    %18 = arith.addf %15, %17 : vector<128x128xf32>
    %19 = vector.extract_strided_slice %10 {offsets = [0, 0], sizes = [1, 128], strides = [1, 1]} : vector<2x128xf32> to vector<1x128xf32>
    %20 = vector.broadcast %19 : vector<1x128xf32> to vector<128x128xf32>
    %21 = arith.addf %18, %20 : vector<128x128xf32>
    %c0_16 = arith.constant 0 : index
    %c0_17 = arith.constant 0 : index
    %c0_18 = arith.constant 0 : index
    %c0_19 = arith.constant 0 : index
    %22 = vector.load %arg8[%c0_16, %c0_17, %c0_18, %c0_19] : memref<1x2x128x128xf32, #tpu.memory_space<vmem>>, vector<1x1x128x128xf32>
    %23 = vector.shape_cast %22 : vector<1x1x128x128xf32> to vector<128x128xf32>
    %24 = vector.shape_cast %21 : vector<128x128xf32> to vector<1x1x128x128xf32>
    tpu.vector_store %arg8[%c0_16, %c0_17, %c0_18, %c0_19], %24 {strides = array<i32>} : memref<1x2x128x128xf32, #tpu.memory_space<vmem>>, vector<1x1x128x128xf32>,
    %25 = vector.extract_strided_slice %13 {offsets = [0, 128], sizes = [128, 128], strides = [1, 1]} : vector<128x256xbf16> to vector<128x128xbf16>
    %cst_20 = arith.constant dense<0.000000e+00> : vector<128x128xf32>
    %26 = tpu.matmul %25, %3, %cst_20 {dimension_numbers = #tpu.dot_dimension_numbers<[1], [0], [0], [1], [0, 0, 1, 1], [], []>} : vector<128x128xbf16>, vector<128x128xbf16>, vector<128x128xf32> -> vector<128x128xf32>
    %27 = vector.extract_strided_slice %5 {offsets = [0, 1], sizes = [128, 1], strides = [1, 1]} : vector<128x2xf32> to vector<128x1xf32>
    %28 = vector.broadcast %27 : vector<128x1xf32> to vector<128x128xf32>
    %29 = arith.addf %26, %28 : vector<128x128xf32>
    %30 = vector.extract_strided_slice %10 {offsets = [1, 0], sizes = [1, 128], strides = [1, 1]} : vector<2x128xf32> to vector<1x128xf32>
    %31 = vector.broadcast %30 : vector<1x128xf32> to vector<128x128xf32>
    %32 = arith.addf %29, %31 : vector<128x128xf32>
    %c0_21 = arith.constant 0 : index
    %c1 = arith.constant 1 : index
    %c0_22 = arith.constant 0 : index
    %c0_23 = arith.constant 0 : index
    %33 = vector.load %arg8[%c0_21, %c1, %c0_22, %c0_23] : memref<1x2x128x128xf32, #tpu.memory_space<vmem>>, vector<1x1x128x128xf32>
    %34 = vector.shape_cast %33 : vector<1x1x128x128xf32> to vector<128x128xf32>
    %35 = vector.shape_cast %32 : vector<128x128xf32> to vector<1x1x128x128xf32>
    tpu.vector_store %arg8[%c0_21, %c1, %c0_22, %c0_23], %35 {strides = array<i32>} : memref<1x2x128x128xf32, #tpu.memory_space<vmem>>, vector<1x1x128x128xf32>,
    return
  }
  func.func @transform_0(%arg0: i32, %arg1: i32) -> (i32, i32, i32) {
    %c0_i32 = arith.constant 0 : i32
    %c0_i32_0 = arith.constant 0 : i32
    %c0_i32_1 = arith.constant 0 : i32
    return %arg1, %c0_i32, %c0_i32_0 : i32, i32, i32
  }
  func.func @transform_1(%arg0: i32, %arg1: i32) -> (i32, i32, i32) {
    %c0_i32 = arith.constant 0 : i32
    %c0_i32_0 = arith.constant 0 : i32
    %c0_i32_1 = arith.constant 0 : i32
    return %arg1, %c0_i32, %c0_i32_0 : i32, i32, i32
  }
  func.func @transform_2(%arg0: i32, %arg1: i32) -> (i32, i32) {
    %c0_i32 = arith.constant 0 : i32
    %c0_i32_0 = arith.constant 0 : i32
    return %c0_i32, %arg0 : i32, i32
  }
  func.func @transform_3(%arg0: i32, %arg1: i32) -> (i32, i32) {
    %c0_i32 = arith.constant 0 : i32
    %c0_i32_0 = arith.constant 0 : i32
    return %arg0, %c0_i32 : i32, i32
  }
  func.func @transform_4(%arg0: i32, %arg1: i32) -> (i32, i32) {
    %c0_i32 = arith.constant 0 : i32
    %c0_i32_0 = arith.constant 0 : i32
    return %arg0, %c0_i32 : i32, i32
  }
  func.func @transform_5(%arg0: i32, %arg1: i32) -> (i32, i32) {
    %c0_i32 = arith.constant 0 : i32
    %c0_i32_0 = arith.constant 0 : i32
    return %arg0, %c0_i32 : i32, i32
  }
  func.func @transform_6(%arg0: i32, %arg1: i32) -> (i32, i32, i32, i32) {
    %c0_i32 = arith.constant 0 : i32
    %c0_i32_0 = arith.constant 0 : i32
    %c0_i32_1 = arith.constant 0 : i32
    return %arg1, %arg0, %c0_i32, %c0_i32_0 : i32, i32, i32, i32
  }
}

module attributes {stable_mosaic.version = 11 : i64} {
  func.func @_biaffine_kernel(%arg0: i32, %arg1: i32, %arg2: memref<1x128x128xbf16, #tpu.memory_space<vmem>>, %arg3: memref<1x128x128xbf16, #tpu.memory_space<vmem>>, %arg4: memref<128x1024xbf16, #tpu.memory_space<vmem>>, %arg5: memref<8x128xbf16, #tpu.memory_space<vmem>>, %arg6: memref<8x128xbf16, #tpu.memory_space<vmem>>, %arg7: memref<8x1xf32, #tpu.memory_space<vmem>>, %arg8: memref<1x8x128x128xf32, #tpu.memory_space<vmem>>) attributes {dimension_semantics = [#tpu.dimension_semantics<parallel>, #tpu.dimension_semantics<parallel>], iteration_bounds = array<i64: 1, 2>, scalar_prefetch = 0 : i64, scratch_operands = 0 : i64, tpu.core_type = #tpu.core_type<tc>, window_params = [{transform_indices = @transform_0, window_bounds = array<i64: 1, 128, 128>}, {transform_indices = @transform_1, window_bounds = array<i64: 1, 128, 128>}, {transform_indices = @transform_2, window_bounds = array<i64: 128, 1024>}, {transform_indices = @transform_3, window_bounds = array<i64: 8, 128>}, {transform_indices = @transform_4, window_bounds = array<i64: 8, 128>}, {transform_indices = @transform_5, window_bounds = array<i64: 8, 1>}, {transform_indices = @transform_6, window_bounds = array<i64: 1, 8, 128, 128>}]} {
    %c0 = arith.constant 0 : index
    %c0_0 = arith.constant 0 : index
    %c0_1 = arith.constant 0 : index
    %0 = vector.load %arg2[%c0, %c0_0, %c0_1] : memref<1x128x128xbf16, #tpu.memory_space<vmem>>, vector<1x128x128xbf16>
    %1 = vector.shape_cast %0 : vector<1x128x128xbf16> to vector<128x128xbf16>
    %c0_2 = arith.constant 0 : index
    %c0_3 = arith.constant 0 : index
    %c0_4 = arith.constant 0 : index
    %2 = vector.load %arg3[%c0_2, %c0_3, %c0_4] : memref<1x128x128xbf16, #tpu.memory_space<vmem>>, vector<1x128x128xbf16>
    %3 = vector.shape_cast %2 : vector<1x128x128xbf16> to vector<128x128xbf16>
    %c0_5 = arith.constant 0 : index
    %c0_6 = arith.constant 0 : index
    %4 = vector.load %arg5[%c0_5, %c0_6] : memref<8x128xbf16, #tpu.memory_space<vmem>>, vector<8x128xbf16>
    %cst = arith.constant dense<0.000000e+00> : vector<128x8xf32>
    %5 = tpu.matmul %1, %4, %cst {dimension_numbers = #tpu.dot_dimension_numbers<[1], [1], [0], [0], [0, 0, 1, 0], [], []>} : vector<128x128xbf16>, vector<8x128xbf16>, vector<128x8xf32> -> vector<128x8xf32>
    %c0_7 = arith.constant 0 : index
    %c0_8 = arith.constant 0 : index
    %6 = vector.load %arg6[%c0_7, %c0_8] : memref<8x128xbf16, #tpu.memory_space<vmem>>, vector<8x128xbf16>
    %cst_9 = arith.constant dense<0.000000e+00> : vector<8x128xf32>
    %7 = tpu.matmul %6, %3, %cst_9 {dimension_numbers = #tpu.dot_dimension_numbers<[1], [0], [0], [1], [0, 0, 1, 1], [], []>} : vector<8x128xbf16>, vector<128x128xbf16>, vector<8x128xf32> -> vector<8x128xf32>
    %c0_10 = arith.constant 0 : index
    %c0_11 = arith.constant 0 : index
    %8 = vector.load %arg7[%c0_10, %c0_11] : memref<8x1xf32, #tpu.memory_space<vmem>>, vector<8x1xf32>
    %9 = vector.broadcast %8 : vector<8x1xf32> to vector<8x128xf32>
    %10 = arith.addf %7, %9 : vector<8x128xf32>
    %c0_12 = arith.constant 0 : index
    %c0_13 = arith.constant 0 : index
    %11 = vector.load %arg4[%c0_12, %c0_13] : memref<128x1024xbf16, #tpu.memory_space<vmem>>, vector<128x1024xbf16>
    %cst_14 = arith.constant dense<0.000000e+00> : vector<128x1024xf32>
    %12 = tpu.matmul %1, %11, %cst_14 {dimension_numbers = #tpu.dot_dimension_numbers<[1], [0], [0], [1], [0, 0, 1, 1], [], []>} : vector<128x128xbf16>, vector<128x1024xbf16>, vector<128x1024xf32> -> vector<128x1024xf32>
    %13 = arith.truncf %12 : vector<128x1024xf32> to vector<128x1024xbf16>
    %14 = vector.extract_strided_slice %13 {offsets = [0, 0], sizes = [128, 128], strides = [1, 1]} : vector<128x1024xbf16> to vector<128x128xbf16>
    %cst_15 = arith.constant dense<0.000000e+00> : vector<128x128xf32>
    %15 = tpu.matmul %14, %3, %cst_15 {dimension_numbers = #tpu.dot_dimension_numbers<[1], [0], [0], [1], [0, 0, 1, 1], [], []>} : vector<128x128xbf16>, vector<128x128xbf16>, vector<128x128xf32> -> vector<128x128xf32>
    %16 = vector.extract_strided_slice %5 {offsets = [0, 0], sizes = [128, 1], strides = [1, 1]} : vector<128x8xf32> to vector<128x1xf32>
    %17 = vector.broadcast %16 : vector<128x1xf32> to vector<128x128xf32>
    %18 = arith.addf %15, %17 : vector<128x128xf32>
    %19 = vector.extract_strided_slice %10 {offsets = [0, 0], sizes = [1, 128], strides = [1, 1]} : vector<8x128xf32> to vector<1x128xf32>
    %20 = vector.broadcast %19 : vector<1x128xf32> to vector<128x128xf32>
    %21 = arith.addf %18, %20 : vector<128x128xf32>
    %c0_16 = arith.constant 0 : index
    %c0_17 = arith.constant 0 : index
    %c0_18 = arith.constant 0 : index
    %c0_19 = arith.constant 0 : index
    %22 = vector.load %arg8[%c0_16, %c0_17, %c0_18, %c0_19] : memref<1x8x128x128xf32, #tpu.memory_space<vmem>>, vector<1x1x128x128xf32>
    %23 = vector.shape_cast %22 : vector<1x1x128x128xf32> to vector<128x128xf32>
    %24 = vector.shape_cast %21 : vector<128x128xf32> to vector<1x1x128x128xf32>
    tpu.vector_store %arg8[%c0_16, %c0_17, %c0_18, %c0_19], %24 {strides = array<i32>} : memref<1x8x128x128xf32, #tpu.memory_space<vmem>>, vector<1x1x128x128xf32>,
    %25 = vector.extract_strided_slice %13 {offsets = [0, 128], sizes = [128, 128], strides = [1, 1]} : vector<128x1024xbf16> to vector<128x128xbf16>
    %cst_20 = arith.constant dense<0.000000e+00> : vector<128x128xf32>
    %26 = tpu.matmul %25, %3, %cst_20 {dimension_numbers = #tpu.dot_dimension_numbers<[1], [0], [0], [1], [0, 0, 1, 1], [], []>} : vector<128x128xbf16>, vector<128x128xbf16>, vector<128x128xf32> -> vector<128x128xf32>
    %27 = vector.extract_strided_slice %5 {offsets = [0, 1], sizes = [128, 1], strides = [1, 1]} : vector<128x8xf32> to vector<128x1xf32>
    %28 = vector.broadcast %27 : vector<128x1xf32> to vector<128x128xf32>
    %29 = arith.addf %26, %28 : vector<128x128xf32>
    %30 = vector.extract_strided_slice %10 {offsets = [1, 0], sizes = [1, 128], strides = [1, 1]} : vector<8x128xf32> to vector<1x128xf32>
    %31 = vector.broadcast %30 : vector<1x128xf32> to vector<128x128xf32>
    %32 = arith.addf %29, %31 : vector<128x128xf32>
    %c0_21 = arith.constant 0 : index
    %c1 = arith.constant 1 : index
    %c0_22 = arith.constant 0 : index
    %c0_23 = arith.constant 0 : index
    %33 = vector.load %arg8[%c0_21, %c1, %c0_22, %c0_23] : memref<1x8x128x128xf32, #tpu.memory_space<vmem>>, vector<1x1x128x128xf32>
    %34 = vector.shape_cast %33 : vector<1x1x128x128xf32> to vector<128x128xf32>
    %35 = vector.shape_cast %32 : vector<128x128xf32> to vector<1x1x128x128xf32>
    tpu.vector_store %arg8[%c0_21, %c1, %c0_22, %c0_23], %35 {strides = array<i32>} : memref<1x8x128x128xf32, #tpu.memory_space<vmem>>, vector<1x1x128x128xf32>,
    %36 = vector.extract_strided_slice %13 {offsets = [0, 256], sizes = [128, 128], strides = [1, 1]} : vector<128x1024xbf16> to vector<128x128xbf16>
    %cst_24 = arith.constant dense<0.000000e+00> : vector<128x128xf32>
    %37 = tpu.matmul %36, %3, %cst_24 {dimension_numbers = #tpu.dot_dimension_numbers<[1], [0], [0], [1], [0, 0, 1, 1], [], []>} : vector<128x128xbf16>, vector<128x128xbf16>, vector<128x128xf32> -> vector<128x128xf32>
    %38 = vector.extract_strided_slice %5 {offsets = [0, 2], sizes = [128, 1], strides = [1, 1]} : vector<128x8xf32> to vector<128x1xf32>
    %39 = vector.broadcast %38 : vector<128x1xf32> to vector<128x128xf32>
    %40 = arith.addf %37, %39 : vector<128x128xf32>
    %41 = vector.extract_strided_slice %10 {offsets = [2, 0], sizes = [1, 128], strides = [1, 1]} : vector<8x128xf32> to vector<1x128xf32>
    %42 = vector.broadcast %41 : vector<1x128xf32> to vector<128x128xf32>
    %43 = arith.addf %40, %42 : vector<128x128xf32>
    %c0_25 = arith.constant 0 : index
    %c2 = arith.constant 2 : index
    %c0_26 = arith.constant 0 : index
    %c0_27 = arith.constant 0 : index
    %44 = vector.load %arg8[%c0_25, %c2, %c0_26, %c0_27] : memref<1x8x128x128xf32, #tpu.memory_space<vmem>>, vector<1x1x128x128xf32>
    %45 = vector.shape_cast %44 : vector<1x1x128x128xf32> to vector<128x128xf32>
    %46 = vector.shape_cast %43 : vector<128x128xf32> to vector<1x1x128x128xf32>
    tpu.vector_store %arg8[%c0_25, %c2, %c0_26, %c0_27], %46 {strides = array<i32>} : memref<1x8x128x128xf32, #tpu.memory_space<vmem>>, vector<1x1x128x128xf32>,
    %47 = vector.extract_strided_slice %13 {offsets = [0, 384], sizes = [128, 128], strides = [1, 1]} : vector<128x1024xbf16> to vector<128x128xbf16>
    %cst_28 = arith.constant dense<0.000000e+00> : vector<128x128xf32>
    %48 = tpu.matmul %47, %3, %cst_28 {dimension_numbers = #tpu.dot_dimension_numbers<[1], [0], [0], [1], [0, 0, 1, 1], [], []>} : vector<128x128xbf16>, vector<128x128xbf16>, vector<128x128xf32> -> vector<128x128xf32>
    %49 = vector.extract_strided_slice %5 {offsets = [0, 3], sizes = [128, 1], strides = [1, 1]} : vector<128x8xf32> to vector<128x1xf32>
    %50 = vector.broadcast %49 : vector<128x1xf32> to vector<128x128xf32>
    %51 = arith.addf %48, %50 : vector<128x128xf32>
    %52 = vector.extract_strided_slice %10 {offsets = [3, 0], sizes = [1, 128], strides = [1, 1]} : vector<8x128xf32> to vector<1x128xf32>
    %53 = vector.broadcast %52 : vector<1x128xf32> to vector<128x128xf32>
    %54 = arith.addf %51, %53 : vector<128x128xf32>
    %c0_29 = arith.constant 0 : index
    %c3 = arith.constant 3 : index
    %c0_30 = arith.constant 0 : index
    %c0_31 = arith.constant 0 : index
    %55 = vector.load %arg8[%c0_29, %c3, %c0_30, %c0_31] : memref<1x8x128x128xf32, #tpu.memory_space<vmem>>, vector<1x1x128x128xf32>
    %56 = vector.shape_cast %55 : vector<1x1x128x128xf32> to vector<128x128xf32>
    %57 = vector.shape_cast %54 : vector<128x128xf32> to vector<1x1x128x128xf32>
    tpu.vector_store %arg8[%c0_29, %c3, %c0_30, %c0_31], %57 {strides = array<i32>} : memref<1x8x128x128xf32, #tpu.memory_space<vmem>>, vector<1x1x128x128xf32>,
    %58 = vector.extract_strided_slice %13 {offsets = [0, 512], sizes = [128, 128], strides = [1, 1]} : vector<128x1024xbf16> to vector<128x128xbf16>
    %cst_32 = arith.constant dense<0.000000e+00> : vector<128x128xf32>
    %59 = tpu.matmul %58, %3, %cst_32 {dimension_numbers = #tpu.dot_dimension_numbers<[1], [0], [0], [1], [0, 0, 1, 1], [], []>} : vector<128x128xbf16>, vector<128x128xbf16>, vector<128x128xf32> -> vector<128x128xf32>
    %60 = vector.extract_strided_slice %5 {offsets = [0, 4], sizes = [128, 1], strides = [1, 1]} : vector<128x8xf32> to vector<128x1xf32>
    %61 = vector.broadcast %60 : vector<128x1xf32> to vector<128x128xf32>
    %62 = arith.addf %59, %61 : vector<128x128xf32>
    %63 = vector.extract_strided_slice %10 {offsets = [4, 0], sizes = [1, 128], strides = [1, 1]} : vector<8x128xf32> to vector<1x128xf32>
    %64 = vector.broadcast %63 : vector<1x128xf32> to vector<128x128xf32>
    %65 = arith.addf %62, %64 : vector<128x128xf32>
    %c0_33 = arith.constant 0 : index
    %c4 = arith.constant 4 : index
    %c0_34 = arith.constant 0 : index
    %c0_35 = arith.constant 0 : index
    %66 = vector.load %arg8[%c0_33, %c4, %c0_34, %c0_35] : memref<1x8x128x128xf32, #tpu.memory_space<vmem>>, vector<1x1x128x128xf32>
    %67 = vector.shape_cast %66 : vector<1x1x128x128xf32> to vector<128x128xf32>
    %68 = vector.shape_cast %65 : vector<128x128xf32> to vector<1x1x128x128xf32>
    tpu.vector_store %arg8[%c0_33, %c4, %c0_34, %c0_35], %68 {strides = array<i32>} : memref<1x8x128x128xf32, #tpu.memory_space<vmem>>, vector<1x1x128x128xf32>,
    %69 = vector.extract_strided_slice %13 {offsets = [0, 640], sizes = [128, 128], strides = [1, 1]} : vector<128x1024xbf16> to vector<128x128xbf16>
    %cst_36 = arith.constant dense<0.000000e+00> : vector<128x128xf32>
    %70 = tpu.matmul %69, %3, %cst_36 {dimension_numbers = #tpu.dot_dimension_numbers<[1], [0], [0], [1], [0, 0, 1, 1], [], []>} : vector<128x128xbf16>, vector<128x128xbf16>, vector<128x128xf32> -> vector<128x128xf32>
    %71 = vector.extract_strided_slice %5 {offsets = [0, 5], sizes = [128, 1], strides = [1, 1]} : vector<128x8xf32> to vector<128x1xf32>
    %72 = vector.broadcast %71 : vector<128x1xf32> to vector<128x128xf32>
    %73 = arith.addf %70, %72 : vector<128x128xf32>
    %74 = vector.extract_strided_slice %10 {offsets = [5, 0], sizes = [1, 128], strides = [1, 1]} : vector<8x128xf32> to vector<1x128xf32>
    %75 = vector.broadcast %74 : vector<1x128xf32> to vector<128x128xf32>
    %76 = arith.addf %73, %75 : vector<128x128xf32>
    %c0_37 = arith.constant 0 : index
    %c5 = arith.constant 5 : index
    %c0_38 = arith.constant 0 : index
    %c0_39 = arith.constant 0 : index
    %77 = vector.load %arg8[%c0_37, %c5, %c0_38, %c0_39] : memref<1x8x128x128xf32, #tpu.memory_space<vmem>>, vector<1x1x128x128xf32>
    %78 = vector.shape_cast %77 : vector<1x1x128x128xf32> to vector<128x128xf32>
    %79 = vector.shape_cast %76 : vector<128x128xf32> to vector<1x1x128x128xf32>
    tpu.vector_store %arg8[%c0_37, %c5, %c0_38, %c0_39], %79 {strides = array<i32>} : memref<1x8x128x128xf32, #tpu.memory_space<vmem>>, vector<1x1x128x128xf32>,
    %80 = vector.extract_strided_slice %13 {offsets = [0, 768], sizes = [128, 128], strides = [1, 1]} : vector<128x1024xbf16> to vector<128x128xbf16>
    %cst_40 = arith.constant dense<0.000000e+00> : vector<128x128xf32>
    %81 = tpu.matmul %80, %3, %cst_40 {dimension_numbers = #tpu.dot_dimension_numbers<[1], [0], [0], [1], [0, 0, 1, 1], [], []>} : vector<128x128xbf16>, vector<128x128xbf16>, vector<128x128xf32> -> vector<128x128xf32>
    %82 = vector.extract_strided_slice %5 {offsets = [0, 6], sizes = [128, 1], strides = [1, 1]} : vector<128x8xf32> to vector<128x1xf32>
    %83 = vector.broadcast %82 : vector<128x1xf32> to vector<128x128xf32>
    %84 = arith.addf %81, %83 : vector<128x128xf32>
    %85 = vector.extract_strided_slice %10 {offsets = [6, 0], sizes = [1, 128], strides = [1, 1]} : vector<8x128xf32> to vector<1x128xf32>
    %86 = vector.broadcast %85 : vector<1x128xf32> to vector<128x128xf32>
    %87 = arith.addf %84, %86 : vector<128x128xf32>
    %c0_41 = arith.constant 0 : index
    %c6 = arith.constant 6 : index
    %c0_42 = arith.constant 0 : index
    %c0_43 = arith.constant 0 : index
    %88 = vector.load %arg8[%c0_41, %c6, %c0_42, %c0_43] : memref<1x8x128x128xf32, #tpu.memory_space<vmem>>, vector<1x1x128x128xf32>
    %89 = vector.shape_cast %88 : vector<1x1x128x128xf32> to vector<128x128xf32>
    %90 = vector.shape_cast %87 : vector<128x128xf32> to vector<1x1x128x128xf32>
    tpu.vector_store %arg8[%c0_41, %c6, %c0_42, %c0_43], %90 {strides = array<i32>} : memref<1x8x128x128xf32, #tpu.memory_space<vmem>>, vector<1x1x128x128xf32>,
    %91 = vector.extract_strided_slice %13 {offsets = [0, 896], sizes = [128, 128], strides = [1, 1]} : vector<128x1024xbf16> to vector<128x128xbf16>
    %cst_44 = arith.constant dense<0.000000e+00> : vector<128x128xf32>
    %92 = tpu.matmul %91, %3, %cst_44 {dimension_numbers = #tpu.dot_dimension_numbers<[1], [0], [0], [1], [0, 0, 1, 1], [], []>} : vector<128x128xbf16>, vector<128x128xbf16>, vector<128x128xf32> -> vector<128x128xf32>
    %93 = vector.extract_strided_slice %5 {offsets = [0, 7], sizes = [128, 1], strides = [1, 1]} : vector<128x8xf32> to vector<128x1xf32>
    %94 = vector.broadcast %93 : vector<128x1xf32> to vector<128x128xf32>
    %95 = arith.addf %92, %94 : vector<128x128xf32>
    %96 = vector.extract_strided_slice %10 {offsets = [7, 0], sizes = [1, 128], strides = [1, 1]} : vector<8x128xf32> to vector<1x128xf32>
    %97 = vector.broadcast %96 : vector<1x128xf32> to vector<128x128xf32>
    %98 = arith.addf %95, %97 : vector<128x128xf32>
    %c0_45 = arith.constant 0 : index
    %c7 = arith.constant 7 : index
    %c0_46 = arith.constant 0 : index
    %c0_47 = arith.constant 0 : index
    %99 = vector.load %arg8[%c0_45, %c7, %c0_46, %c0_47] : memref<1x8x128x128xf32, #tpu.memory_space<vmem>>, vector<1x1x128x128xf32>
    %100 = vector.shape_cast %99 : vector<1x1x128x128xf32> to vector<128x128xf32>
    %101 = vector.shape_cast %98 : vector<128x128xf32> to vector<1x1x128x128xf32>
    tpu.vector_store %arg8[%c0_45, %c7, %c0_46, %c0_47], %101 {strides = array<i32>} : memref<1x8x128x128xf32, #tpu.memory_space<vmem>>, vector<1x1x128x128xf32>,
    return
  }
  func.func @transform_0(%arg0: i32, %arg1: i32) -> (i32, i32, i32) {
    %c0_i32 = arith.constant 0 : i32
    %c0_i32_0 = arith.constant 0 : i32
    %c0_i32_1 = arith.constant 0 : i32
    return %arg1, %c0_i32, %c0_i32_0 : i32, i32, i32
  }
  func.func @transform_1(%arg0: i32, %arg1: i32) -> (i32, i32, i32) {
    %c0_i32 = arith.constant 0 : i32
    %c0_i32_0 = arith.constant 0 : i32
    %c0_i32_1 = arith.constant 0 : i32
    return %arg1, %c0_i32, %c0_i32_0 : i32, i32, i32
  }
  func.func @transform_2(%arg0: i32, %arg1: i32) -> (i32, i32) {
    %c0_i32 = arith.constant 0 : i32
    %c0_i32_0 = arith.constant 0 : i32
    return %c0_i32, %arg0 : i32, i32
  }
  func.func @transform_3(%arg0: i32, %arg1: i32) -> (i32, i32) {
    %c0_i32 = arith.constant 0 : i32
    %c0_i32_0 = arith.constant 0 : i32
    return %arg0, %c0_i32 : i32, i32
  }
  func.func @transform_4(%arg0: i32, %arg1: i32) -> (i32, i32) {
    %c0_i32 = arith.constant 0 : i32
    %c0_i32_0 = arith.constant 0 : i32
    return %arg0, %c0_i32 : i32, i32
  }
  func.func @transform_5(%arg0: i32, %arg1: i32) -> (i32, i32) {
    %c0_i32 = arith.constant 0 : i32
    %c0_i32_0 = arith.constant 0 : i32
    return %arg0, %c0_i32 : i32, i32
  }
  func.func @transform_6(%arg0: i32, %arg1: i32) -> (i32, i32, i32, i32) {
    %c0_i32 = arith.constant 0 : i32
    %c0_i32_0 = arith.constant 0 : i32
    %c0_i32_1 = arith.constant 0 : i32
    return %arg1, %arg0, %c0_i32, %c0_i32_0 : i32, i32, i32, i32
  }
}

</mosaic_0001>

<bundles_post_ra>
// kernel: semantic_dependency_forward.4
= control target key start
LH: loop header
LB: loop body
LE: loop exit
PB: predicated region body
PF: predicated region fallthrough
CT: control target
= control target key end

     0   :  { %s1625_s21 = smov 0   ;;  %s1627_s22 = smov 0   ;;  %s1932_s0 = inlined_call_operand.vmem [shape: bf16[2,128,128], index: 0, kind: input, shape index: {}]   ;;  %s1933_s1 = inlined_call_operand.vmem [shape: bf16[2,128,128], index: 1, kind: input, shape index: {}]   ;;  %s1934_s2 = inlined_call_operand.vmem [shape: bf16[128,256], index: 2, kind: input, shape index: {}]   ;;  %s1935_s3 = inlined_call_operand.vmem [shape: bf16[2,128], index: 3, kind: input, shape index: {}]   ;;  %s1936_s4 = inlined_call_operand.vmem [shape: bf16[2,128], index: 4, kind: input, shape index: {}]   ;;  %s1937_s5 = inlined_call_operand.vmem [shape: f32[2,1], index: 5, kind: input, shape index: {}]   ;;  %s1938_s6 = inlined_call_operand.vmem [shape: f32[2,2,128,128], index: 6, kind: output, shape index: {}]  }
   0x1   :  { %s1629_s23 = smov 0  }
   0x2 LB: > { %s25_s24 = sadd.s32 1, %s1582_s22  ;;  %p1323_p0 = scmp.ge.s32.totalorder %s1586_s23, 1  ;;  %s1586_s23 = sphi %s1629_s23, %s16_s23   ;;  %s1582_s22 = sphi %s1627_s22, %s1940_s22   ;;  %s1578_s21 = sphi %s1625_s21, %s1939_s21  }
   0x3   : > { %p26_p1 = scmp.ge.s32.totalorder %s25_s24, 2  ;;  %p272_p2 = scmp.lt.s32.totalorder %s1586_s23, 3 }
   0x5   : > { %s1942_s24 = smov (%p26_p1, %s25_s24), 0  ;;  %p273_p3 = pnand %p1323_p0, %p272_p2 }
   0x6   : > { %p327_p4 = scmp.lt.s32.totalorder (!%p273_p3), %s1578_s21, 1 }
   0x7   : > { %276 = sbr.rel (%p273_p3) target bundleno = 482 (0x1e2), region = 44 }
   0xc   : > { %v397_v0 = vld [vmem:[%s1935_s3] sm:$0x1]  ;;  %v1452_v1 = vld [vmem:[%s1934_s2 + $0x70] sm:$0xf]  ;;  %v1510_v2 = vld [vmem:[%s1934_s2 + $0x74] sm:$0xf0] }
   0xd   : > { %453 = vmatpush.bf16.xpose.msra.mxu0 %v397_v0  ;;  %1511 = vmatpush.bf16.xpose.msra.mxu2 %v397_v0  ;;  %s1944_s21 = smov (!%p327_p4, %s1578_s21), 1  ;;  %v1453_v3 = vor.u32 %v1510_v2, %v1452_v1  ;;  %v1444_v4 = vld [vmem:[%s1934_s2 + $0x60] sm:$0xf]  ;;  %v1508_v5 = vld [vmem:[%s1934_s2 + $0x64] sm:$0xf0]  ;;  %v1588_v58 = vmov 0  }
   0xe   : > { %1512 = vmatpush.bf16.xpose.msra.mxu3 %v397_v0  ;;  %v1509_v6 = vld [vmem:[%s1934_s2 + $0x74] sm:$0xf]  ;;  %s1476_s13 = sshll.u32 %s1944_s21, 6  ;;  %v1454_v7 = vld [vmem:[%s1934_s2 + $0x78] sm:$0xf0]  ;;  %v1445_v9 = vor.u32 %v1508_v5, %v1444_v4  ;;  %1539 = vset.pattern.permute.xlu0 %v1588_v58  ;;  %v1589_v59 = vmov 1  }
   0xf   : > { %v1507_v8 = vld [vmem:[%s1934_s2 + $0x64] sm:$0xf]  ;;  %s1675_s20 = scalar_lea.vmem %s1932_s0, %s1476_s13  ;;  %v1436_v10 = vld [vmem:[%s1934_s2 + $0x50] sm:$0xf]  ;;  %v1506_v11 = vld [vmem:[%s1934_s2 + $0x54] sm:$0xf0]  ;;  %v1457_v12 = vor.u32 %v1509_v6, %v1454_v7  ;;  %1540 = vset.pattern.permute.xlu2 %v1589_v59  ;;  %1542 = vset.pattern.permute.xlu1 %v1588_v58  ;;  %s1787_s19 = scalar_lea.vmem %s1933_s1, %s1476_s13 }
  0x10   : > { %v1446_v13 = vld [vmem:[%s1934_s2 + $0x68] sm:$0xf0]  ;;  %v1687_v14 = vld [vmem:[%s1675_s20] sm:$0xff]  ;;  %v1690_v15 = vld [vmem:[%s1675_s20 + $0x10] sm:$0xff]  ;;  %v1437_v18 = vor.u32 %v1506_v11, %v1436_v10  ;;  %s1478_s26 = sshll.u32 %s1944_s21, 8 }
  0x11   : > { %v1693_v16 = vld [vmem:[%s1675_s20 + $0x30] sm:$0xff]  ;;  %v1449_v17 = vor.u32 %v1507_v8, %v1446_v13  ;;  %v1438_v20 = vld [vmem:[%s1934_s2 + $0x58] sm:$0xf0]  ;;  %v1428_v21 = vld [vmem:[%s1934_s2 + $0x40] sm:$0xf]  ;;  %s1848_s29 = scalar_lea.vmem %s1938_s6, %s1478_s26 }
  0x12   : > { %v1505_v19 = vld [vmem:[%s1934_s2 + $0x54] sm:$0xf]  ;;  %v1504_v22 = vld [vmem:[%s1934_s2 + $0x44] sm:$0xf0]  ;;  %v1503_v24 = vld [vmem:[%s1934_s2 + $0x44] sm:$0xf] }
  0x13   : > { %v1441_v23 = vor.u32 %v1505_v19, %v1438_v20  ;;  %v1430_v25 = vld [vmem:[%s1934_s2 + $0x48] sm:$0xf0]  ;;  %v1429_v26 = vor.u32 %v1504_v22, %v1428_v21  ;;  %v1420_v27 = vld [vmem:[%s1934_s2 + $0x30] sm:$0xf]  ;;  %v1502_v28 = vld [vmem:[%s1934_s2 + $0x34] sm:$0xf0] }
  0x14   : > { %454 = vmatmul.bf16.vlgmr.msra.gmra.mxu0 %v1687_v14  ;;  %464 = vmatmul.bf16.vlgmr.msra.gmra.mxu2 %v1690_v15  ;;  %v1433_v29 = vor.u32 %v1503_v24, %v1430_v25  ;;  %v1501_v30 = vld [vmem:[%s1934_s2 + $0x34] sm:$0xf]  ;;  %v1422_v31 = vld [vmem:[%s1934_s2 + $0x38] sm:$0xf0]  ;;  %v1421_v32 = vor.u32 %v1502_v28, %v1420_v27  ;;  %v1412_v33 = vld [vmem:[%s1934_s2 + $0x20] sm:$0xf] }
  0x15   : > { %659 = vmatpush.bf16.msrb.mxu2 %v1453_v3  ;;  %484 = vmatmul.bf16.vlgmr.msra.gmra.mxu3 %v1693_v16  ;;  %v1500_v34 = vld [vmem:[%s1934_s2 + $0x24] sm:$0xf0]  ;;  %v1482_v35 = vld [vmem:[%s1675_s20 + $0x18] sm:$0xff]  ;;  %v1425_v36 = vor.u32 %v1501_v30, %v1422_v31  ;;  %v1499_v38 = vld [vmem:[%s1934_s2 + $0x24] sm:$0xf] }
  0x16   : > { %708 = vmatpush.bf16.msrb.mxu3 %v1457_v12  ;;  %v1480_v37 = vld [vmem:[%s1675_s20 + $0x8] sm:$0xff]  ;;  %v1743_v40 = vld [vmem:[%s1675_s20 + $0x38] sm:$0xff]  ;;  %v1413_v41 = vor.u32 %v1500_v34, %v1412_v33  ;;  %v1497_v43 = vld [vmem:[%s1934_s2 + $0x14] sm:$0xf] }
  0x17   : > { %v1414_v39 = vld [vmem:[%s1934_s2 + $0x28] sm:$0xf0]  ;;  %v1404_v44 = vld [vmem:[%s1934_s2 + $0x10] sm:$0xf]  ;;  %v1498_v45 = vld [vmem:[%s1934_s2 + $0x14] sm:$0xf0] }
  0x18   : > { %v1417_v42 = vor.u32 %v1499_v38, %v1414_v39  ;;  %v1406_v46 = vld [vmem:[%s1934_s2 + $0x18] sm:$0xf0]  ;;  %v1405_v47 = vor.u32 %v1498_v45, %v1404_v44  ;;  %v1396_v48 = vld [vmem:[%s1934_s2] sm:$0xf]  ;;  %v1496_v49 = vld [vmem:[%s1934_s2 + $0x4] sm:$0xf0] }
  0x19   : > { %660 = vmatpush.bf16.msrb.mxu2 %v1445_v9  ;;  %v1409_v50 = vor.u32 %v1497_v43, %v1406_v46  ;;  %v1495_v51 = vld [vmem:[%s1934_s2 + $0x4] sm:$0xf]  ;;  %v1398_v52 = vld [vmem:[%s1934_s2 + $0x8] sm:$0xf0]  ;;  %v1397_v53 = vor.u32 %v1496_v49, %v1396_v48  ;;  %v496_v57 = vld [vmem:[%s1937_s5] sm:$0x3] }
  0x1a   : > { %709 = vmatpush.bf16.msrb.mxu3 %v1449_v17  ;;  %v1401_v54 = vor.u32 %v1495_v51, %v1398_v52  ;;  %v1483_v55 = vld [vmem:[%s1675_s20 + $0x20] sm:$0xff]  ;;  %v1484_v56 = vld [vmem:[%s1675_s20 + $0x28] sm:$0xff]  ;;  %499 = vperm.xlu0 %1539, %v496_v57   ;;  %v1494_v60 = vld [vmem:[%s1787_s19 + $0x38] sm:$0xff] }
  0x1b   : > { %550 = vmatpush.bf16.msra.mxu1 %v1494_v60  ;;  %1079 = vmatpush.bf16.msrb.mxu0 %v1494_v60  ;;  %v1493_v61 = vld [vmem:[%s1787_s19 + $0x30] sm:$0xff]  ;;  %v1492_v62 = vld [vmem:[%s1787_s19 + $0x28] sm:$0xff]  ;;  %v1491_v0 = vld [vmem:[%s1787_s19 + $0x20] sm:$0xff] }
  0x1c   : > { %v1490_v3 = vld [vmem:[%s1787_s19 + $0x18] sm:$0xff]  ;;  %v1489_v4 = vld [vmem:[%s1787_s19 + $0x10] sm:$0xff]  ;;  %v1488_v8 = vld [vmem:[%s1787_s19 + $0x8] sm:$0xff] }
  0x1d   : > { %661 = vmatpush.bf16.msrb.mxu2 %v1437_v18  ;;  %v1487_v9 = vld [vmem:[%s1787_s19] sm:$0xff] }
  0x1e   : > { %710 = vmatpush.bf16.msrb.mxu3 %v1441_v23  ;;  %v495_v13 = vld [vmem:[%s1936_s4] sm:$0x1] }
  0x1f   : > { %551 = vmatpush.bf16.msra.mxu1 %v1493_v61  ;;  %1080 = vmatpush.bf16.msrb.mxu0 %v1493_v61 }
  0x21   : > { %662 = vmatpush.bf16.msrb.mxu2 %v1429_v26 }
  0x22   : > { %711 = vmatpush.bf16.msrb.mxu3 %v1433_v29 }
  0x23   : > { %552 = vmatpush.bf16.msra.mxu1 %v1492_v62  ;;  %1081 = vmatpush.bf16.msrb.mxu0 %v1492_v62 }
  0x24   : > { %469 = vmatmul.bf16.gmra.mxu2 %v1482_v35  ;;  %459 = vmatmul.bf16.gmra.mxu0 %v1480_v37 }
  0x25   : > { %663 = vmatpush.bf16.msrb.mxu2 %v1421_v32  ;;  %489 = vmatmul.bf16.gmra.mxu3 %v1743_v40 }
  0x26   : > { %712 = vmatpush.bf16.msrb.mxu3 %v1425_v36 }
  0x27   : > { %553 = vmatpush.bf16.msra.mxu1 %v1491_v0  ;;  %1082 = vmatpush.bf16.msrb.mxu0 %v1491_v0 }
  0x29   : > { %664 = vmatpush.bf16.msrb.mxu2 %v1413_v41 }
  0x2a   : > { %713 = vmatpush.bf16.msrb.mxu3 %v1417_v42 }
  0x2b   : > { %554 = vmatpush.bf16.msra.mxu1 %v1490_v3  ;;  %1083 = vmatpush.bf16.msrb.mxu0 %v1490_v3 }
  0x2d   : > { %665 = vmatpush.bf16.msrb.mxu2 %v1405_v47 }
  0x2e   : > { %714 = vmatpush.bf16.msrb.mxu3 %v1409_v50 }
  0x2f   : > { %555 = vmatpush.bf16.msra.mxu1 %v1489_v4  ;;  %1084 = vmatpush.bf16.msrb.mxu0 %v1489_v4 }
  0x31   : > { %666 = vmatpush.bf16.msrb.mxu2 %v1397_v53 }
  0x32   : > { %715 = vmatpush.bf16.msrb.mxu3 %v1401_v54 }
  0x33   : > { %556 = vmatpush.bf16.msra.mxu1 %v1488_v8  ;;  %1085 = vmatpush.bf16.msrb.mxu0 %v1488_v8 }
  0x34   : > { %474 = vmatmul.bf16.gmra.mxu2 %v1483_v55 }
  0x35   : > { %716 = vmatmul.bf16.vlgmr.msrb.gmra.mxu3 %v1687_v14 }
  0x37   : > { %557 = vmatpush.bf16.msra.mxu1 %v1487_v9  ;;  %1086 = vmatpush.bf16.msrb.mxu0 %v1487_v9 }
  0x3a   : > { %558 = vmatmul.bf16.vlgmr.msra.gmra.mxu1 %v495_v13 }
  0x3b   : > { %901 = vmatpush.bf16.msrb.mxu1 %v1494_v60 }
  0x3f   : > { %902 = vmatpush.bf16.msrb.mxu1 %v1493_v61 }
  0x43   : > { %903 = vmatpush.bf16.msrb.mxu1 %v1492_v62 }
  0x44   : > { %479 = vmatmul.bf16.gmra.mxu2 %v1484_v56 }
  0x45   : > { %721 = vmatmul.bf16.gmra.mxu3 %v1480_v37 }
  0x47   : > { %904 = vmatpush.bf16.msrb.mxu1 %v1491_v0 }
  0x4b   : > { %905 = vmatpush.bf16.msrb.mxu1 %v1490_v3 }
  0x4f   : > { %906 = vmatpush.bf16.msrb.mxu1 %v1489_v4 }
  0x53   : > { %907 = vmatpush.bf16.msrb.mxu1 %v1488_v8 }
  0x54   : > { %667 = vmatmul.bf16.vlgmr.msrb.gmra.mxu2 %v1687_v14 }
  0x55   : > { %726 = vmatmul.bf16.gmra.mxu3 %v1690_v15 }
  0x57   : > { %908 = vmatpush.bf16.msrb.mxu1 %v1487_v9 }
  0x64   : > { %672 = vmatmul.bf16.gmra.mxu2 %v1480_v37 }
  0x65   : > { %731 = vmatmul.bf16.gmra.mxu3 %v1482_v35 }
  0x74   : > { %677 = vmatmul.bf16.gmra.mxu2 %v1690_v15 }
  0x75   : > { %736 = vmatmul.bf16.gmra.mxu3 %v1483_v55 }
  0x84   : > { %682 = vmatmul.bf16.gmra.mxu2 %v1482_v35 }
  0x85   : > { %741 = vmatmul.bf16.gmra.mxu3 %v1484_v56 }
  0x91   : > { %v455_v63 = vpop.f32.mrf.mxu0 }
  0x92   : > { %984 = vperm.xlu2 %1540, %v455_v63   ;;  %775 = vperm.xlu0 %1539, %v455_v63  }
  0x94   : > { %687 = vmatmul.bf16.gmra.mxu2 %v1483_v55 }
  0x95   : > { %746 = vmatmul.bf16.gmra.mxu3 %v1693_v16 }
  0x97   : > { %v465_v1 = vpop.f32.mrf.mxu2 }
  0x98   : > { %v485_v2 = vpop.f32.mrf.mxu3 }
  0x99   : > { %835 = vperm.xlu1 %1542, %v485_v2   ;;  %v457_v6 = vpop.f32.mrf.mxu0 }
  0x9a   : > { %1541 = vset.pattern.permute.xlu2 %v1588_v58  ;;  %1544 = vset.pattern.permute.xlu0 %v1589_v59 }
  0x9b   : > { %795 = vperm.xlu2 %1541, %v465_v1   ;;  %1032 = vperm.xlu0 %1544, %v485_v2  }
  0x9f   : > { %v467_v5 = vpop.f32.mrf.mxu2 }
  0xa0   : > { %v1798_v7 = vpop.f32.mrf.mxu3 }
  0xa1   : > { %1543 = vset.pattern.permute.xlu1 %v1589_v59  ;;  %v460_v11 = vpop.f32.mrf.mxu0 }
  0xa2   : > { %1000 = vperm.xlu1 %1543, %v465_v1  }
  0xa3   : > { %840 = vperm.xlu2 %1541, %v1798_v7   ;;  %988 = vperm.xlu0 %1544, %v457_v6  }
  0xa4   : > { %692 = vmatmul.bf16.gmra.mxu2 %v1484_v56 }
  0xa5   : > { %751 = vmatmul.bf16.gmra.mxu3 %v1743_v40 }
  0xa7   : > { %v470_v10 = vpop.f32.mrf.mxu2 }
  0xa8   : > { %v1805_v12 = vpop.f32.mrf.mxu3 }
  0xa9   : > { %v462_v17 = vpop.f32.mrf.mxu0 }
  0xaa   : > { %1545 = vset.pattern.permute.xlu1 %v1588_v58 }
  0xab   : > { %780 = vperm.xlu1 %1545, %v457_v6   ;;  %1547 = vset.pattern.permute.xlu2 %v1589_v59 }
  0xac   : > { %1546 = vset.pattern.permute.xlu0 %v1588_v58  ;;  %1004 = vperm.xlu2 %1547, %v467_v5  }
  0xad   : > { %800 = vperm.xlu0 %1546, %v467_v5  }
  0xaf   : > { %v472_v14 = vpop.f32.mrf.mxu2 }
  0xb0   : > { %v492_v15 = vpop.f32.mrf.mxu3 }
  0xb3   : > { %785 = vperm.xlu1 %1545, %v460_v11  }
  0xb4   : > { %697 = vmatmul.bf16.gmra.mxu2 %v1693_v16  ;;  %1551 = vset.pattern.permute.xlu2 %v1588_v58 }
  0xb5   : > { %845 = vperm.xlu0 %1546, %v1805_v12   ;;  %790 = vperm.xlu2 %1551, %v462_v17  }
  0xb7   : > { %v475_v18 = vpop.f32.mrf.mxu2 }
  0xb8   : > { %v717_v19 = vpop.f32.mrf.mxu3 }
  0xbb   : > { %1548 = vset.pattern.permute.xlu1 %v1589_v59 }
  0xbc   : > { %992 = vperm.xlu1 %1548, %v460_v11  }
  0xbd   : > { %1550 = vset.pattern.permute.xlu0 %v1589_v59  ;;  %1552 = vset.pattern.permute.xlu2 %v1589_v59 }
  0xbe   : > { %1008 = vperm.xlu0 %1550, %v470_v10   ;;  %996 = vperm.xlu2 %1552, %v462_v17  }
  0xbf   : > { %v477_v20 = vpop.f32.mrf.mxu2 }
  0xc0   : > { %v719_v16 = vpop.f32.mrf.mxu3 }
  0xc4   : > { %1549 = vset.pattern.permute.xlu1 %v1588_v58  ;;  %702 = vmatmul.bf16.gmra.mxu2 %v1743_v40 }
  0xc5   : > { %805 = vperm.xlu1 %1549, %v470_v10  }
  0xc6   : > { %1555 = vset.pattern.permute.xlu0 %v1588_v58  ;;  %1553 = vset.pattern.permute.xlu2 %v1588_v58 }
  0xc7   : > { %815 = vperm.xlu0 %1555, %v475_v18   ;;  %v480_v21 = vpop.f32.mrf.mxu2  ;;  %810 = vperm.xlu2 %1553, %v472_v14  }
  0xc8   : > { %v722_v22 = vpop.f32.mrf.mxu3 }
  0xcd   : > { %850 = vperm.xlu1 %1549, %v492_v15  }
  0xcf   : > { %1558 = vset.pattern.permute.xlu0 %v1589_v59  ;;  %v482_v23 = vpop.f32.mrf.mxu2  ;;  %1556 = vset.pattern.permute.xlu2 %v1589_v59 }
  0xd0   : > { %1020 = vperm.xlu0 %1558, %v477_v20   ;;  %1016 = vperm.xlu2 %1556, %v475_v18   ;;  %v724_v25 = vpop.f32.mrf.mxu3 }
  0xd5   : > { %1554 = vset.pattern.permute.xlu1 %v1589_v59 }
  0xd6   : > { %1012 = vperm.xlu1 %1554, %v472_v14  }
  0xd7   : > { %v668_v24 = vpop.f32.mrf.mxu2 }
  0xd8   : > { %1561 = vset.pattern.permute.xlu0 %v1588_v58  ;;  %1559 = vset.pattern.permute.xlu2 %v1588_v58  ;;  %v757_v26 = vpack.c.bf16 %v717_v19, %v668_v24  ;;  %v727_v29 = vpop.f32.mrf.mxu3 }
  0xd9   : > { %830 = vperm.xlu0 %1561, %v482_v23   ;;  %825 = vperm.xlu2 %1559, %v480_v21  }
  0xda   : > { %v869_v30 = vunpack.c.l.b16 %v757_v26  ;;  %v1047_v31 = vunpack.c.h.b16 %v757_v26 }
  0xde   : > { %1557 = vset.pattern.permute.xlu1 %v1588_v58 }
  0xdf   : > { %820 = vperm.xlu1 %1557, %v477_v20   ;;  %v670_v27 = vpop.f32.mrf.mxu2 }
  0xe0   : > { %v758_v28 = vpack.c.bf16 %v719_v16, %v670_v27  ;;  %v729_v37 = vpop.f32.mrf.mxu3  ;;  %v559_v16 = vpop.f32.mrf.mxu1 }
  0xe1   : > { %1563 = vset.pattern.permute.xlu0 %v1589_v59  ;;  %1562 = vset.pattern.permute.xlu2 %v1589_v59 }
  0xe2   : > { %v870_v32 = vunpack.c.l.b16 %v758_v28  ;;  %v1048_v33 = vunpack.c.h.b16 %v758_v28  ;;  %1044 = vperm.xlu0 %1563, %v492_v15   ;;  %1028 = vperm.xlu2 %1562, %v482_v23  }
  0xe4   : > { %v885_v34 = vpack.c.b16 %v870_v32, %v869_v30  ;;  %v1063_v35 = vpack.c.b16 %v1048_v33, %v1047_v31 }
  0xe6   : > { %909 = vmatmul.bf16.vlgmr.msrb.gmra.mxu1 %v885_v34  ;;  %1087 = vmatmul.bf16.vlgmr.msrb.gmra.mxu0 %v1063_v35 }
  0xe7   : > { %1560 = vset.pattern.permute.xlu1 %v1589_v59  ;;  %v673_v36 = vpop.f32.mrf.mxu2 }
  0xe8   : > { %1024 = vperm.xlu1 %1560, %v480_v21   ;;  %v759_v38 = vpack.c.bf16 %v722_v22, %v673_v36  ;;  %v732_v47 = vpop.f32.mrf.mxu3 }
  0xea   : > { %1040 = vperm.xlu2 %1562, %v1805_v12   ;;  %v871_v41 = vunpack.c.l.b16 %v759_v38  ;;  %v1049_v42 = vunpack.c.h.b16 %v759_v38 }
  0xef   : > { %v675_v39 = vpop.f32.mrf.mxu2 }
  0xf0   : > { %v760_v40 = vpack.c.bf16 %v724_v25, %v675_v39  ;;  %1036 = vperm.xlu1 %1560, %v1798_v7   ;;  %v734_v51 = vpop.f32.mrf.mxu3 }
  0xf2   : > { %v872_v43 = vunpack.c.l.b16 %v760_v40  ;;  %v1050_v44 = vunpack.c.h.b16 %v760_v40 }
  0xf4   : > { %v886_v45 = vpack.c.b16 %v872_v43, %v871_v41  ;;  %v1064_v46 = vpack.c.b16 %v1050_v44, %v1049_v42 }
  0xf6   : > { %914 = vmatmul.bf16.gmra.mxu1 %v886_v45  ;;  %1092 = vmatmul.bf16.gmra.mxu0 %v1064_v46  ;;  %v985_v45 = vpop.permute.xlu2 %984  ;;  %v500_v46 = vpop.permute.xlu0 %499 }
  0xf7   : > { %v678_v48 = vpop.f32.mrf.mxu2 }
  0xf8   : > { %v761_v49 = vpack.c.bf16 %v727_v29, %v678_v48  ;;  %v737_v60 = vpop.f32.mrf.mxu3  ;;  %v561_v29 = vpop.f32.mrf.mxu1 }
  0xfa   : > { %v873_v53 = vunpack.c.l.b16 %v761_v49  ;;  %v1051_v54 = vunpack.c.h.b16 %v761_v49 }
  0xff   : > { %v680_v50 = vpop.f32.mrf.mxu2 }
 0x100   : > { %v762_v52 = vpack.c.bf16 %v729_v37, %v680_v50  ;;  %v739_v4 = vpop.f32.mrf.mxu3 }
 0x102   : > { %v874_v55 = vunpack.c.l.b16 %v762_v52  ;;  %v1052_v56 = vunpack.c.h.b16 %v762_v52 }
 0x104   : > { %v887_v57 = vpack.c.b16 %v874_v55, %v873_v53  ;;  %v1065_v58 = vpack.c.b16 %v1052_v56, %v1051_v54  ;;  %v796_v56 = vpop.permute.xlu2 %795 }
 0x106   : > { %919 = vmatmul.bf16.gmra.mxu1 %v887_v57  ;;  %1097 = vmatmul.bf16.gmra.mxu0 %v1065_v58 }
 0x107   : > { %v683_v59 = vpop.f32.mrf.mxu2 }
 0x108   : > { %v763_v61 = vpack.c.bf16 %v732_v47, %v683_v59  ;;  %v742_v8 = vpop.f32.mrf.mxu3  ;;  %v776_v59 = vpop.permute.xlu0 %775 }
 0x10a   : > { %v875_v0 = vunpack.c.l.b16 %v763_v61  ;;  %v1053_v1 = vunpack.c.h.b16 %v763_v61 }
 0x10b   : > { %v1834_v47 = vpop.permute.xlu1 %835 }
 0x10c   : > { %v1836_v61 = vpop.permute.xlu2 %840 }
 0x10f   : > { %v685_v62 = vpop.f32.mrf.mxu2 }
 0x110   : > { %v764_v63 = vpack.c.bf16 %v734_v51, %v685_v62  ;;  %v744_v20 = vpop.f32.mrf.mxu3 }
 0x112   : > { %v876_v2 = vunpack.c.l.b16 %v764_v63  ;;  %v1054_v3 = vunpack.c.h.b16 %v764_v63  ;;  %v1838_v63 = vpop.permute.xlu0 %1032 }
 0x114   : > { %v888_v5 = vpack.c.b16 %v876_v2, %v875_v0  ;;  %v1066_v6 = vpack.c.b16 %v1054_v3, %v1053_v1  ;;  %v560_v0 = vadd.f32 %v559_v16, %v500_v46 }
 0x116   : > { %924 = vmatmul.bf16.gmra.mxu1 %v888_v5  ;;  %1102 = vmatmul.bf16.gmra.mxu0 %v1066_v6  ;;  %v1841_v3 = vperm.slane %v560_v0, 0 }
 0x117   : > { %v688_v7 = vpop.f32.mrf.mxu2 }
 0x118   : > { %v765_v9 = vpack.c.bf16 %v737_v60, %v688_v7  ;;  %v747_v24 = vpop.f32.mrf.mxu3  ;;  %v1001_v60 = vpop.permute.xlu1 %1000 }
 0x11a   : > { %v877_v12 = vunpack.c.l.b16 %v765_v9  ;;  %v1055_v13 = vunpack.c.h.b16 %v765_v9  ;;  %v1005_v9 = vpop.permute.xlu2 %1004 }
 0x11f   : > { %v690_v10 = vpop.f32.mrf.mxu2 }
 0x120   : > { %v766_v11 = vpack.c.bf16 %v739_v4, %v690_v10  ;;  %v749_v33 = vpop.f32.mrf.mxu3  ;;  %v781_v62 = vpop.permute.xlu1 %780  ;;  %v1843_v4 = vperm.slane %v560_v0, 1 }
 0x122   : > { %v878_v14 = vunpack.c.l.b16 %v766_v11  ;;  %v1056_v15 = vunpack.c.h.b16 %v766_v11  ;;  %v989_v11 = vpop.permute.xlu0 %988 }
 0x124   : > { %v889_v17 = vpack.c.b16 %v878_v14, %v877_v12  ;;  %v1067_v18 = vpack.c.b16 %v1056_v15, %v1055_v13 }
 0x126   : > { %929 = vmatmul.bf16.gmra.mxu1 %v889_v17  ;;  %1107 = vmatmul.bf16.gmra.mxu0 %v1067_v18 }
 0x127   : > { %v693_v19 = vpop.f32.mrf.mxu2 }
 0x128   : > { %v767_v21 = vpack.c.bf16 %v742_v8, %v693_v19  ;;  %v752_v43 = vpop.f32.mrf.mxu3  ;;  %v786_v10 = vpop.permute.xlu1 %785 }
 0x129   : > { %v791_v19 = vpop.permute.xlu2 %790 }
 0x12a   : > { %v879_v25 = vunpack.c.l.b16 %v767_v21  ;;  %v1057_v26 = vunpack.c.h.b16 %v767_v21 }
 0x12f   : > { %v695_v22 = vpop.f32.mrf.mxu2 }
 0x130   : > { %v768_v23 = vpack.c.bf16 %v744_v20, %v695_v22  ;;  %v754_v49 = vpop.f32.mrf.mxu3  ;;  %v993_v20 = vpop.permute.xlu1 %992 }
 0x132   : > { %v880_v27 = vunpack.c.l.b16 %v768_v23  ;;  %v1058_v28 = vunpack.c.h.b16 %v768_v23 }
 0x134   : > { %v890_v30 = vpack.c.b16 %v880_v27, %v879_v25  ;;  %v1068_v31 = vpack.c.b16 %v1058_v28, %v1057_v26  ;;  %v997_v26 = vpop.permute.xlu2 %996 }
 0x136   : > { %934 = vmatmul.bf16.gmra.mxu1 %v890_v30  ;;  %1112 = vmatmul.bf16.gmra.mxu0 %v1068_v31  ;;  %v801_v31 = vpop.permute.xlu0 %800 }
 0x137   : > { %v698_v32 = vpop.f32.mrf.mxu2 }
 0x138   : > { %v769_v34 = vpack.c.bf16 %v747_v24, %v698_v32 }
 0x13a   : > { %v881_v37 = vunpack.c.l.b16 %v769_v34  ;;  %v1059_v38 = vunpack.c.h.b16 %v769_v34 }
 0x13f   : > { %v700_v35 = vpop.f32.mrf.mxu2 }
 0x140   : > { %v770_v36 = vpack.c.bf16 %v749_v33, %v700_v35 }
 0x142   : > { %v882_v39 = vunpack.c.l.b16 %v770_v36  ;;  %v1060_v40 = vunpack.c.h.b16 %v770_v36 }
 0x144   : > { %v891_v41 = vpack.c.b16 %v882_v39, %v881_v37  ;;  %v1069_v42 = vpack.c.b16 %v1060_v40, %v1059_v38  ;;  %v806_v38 = vpop.permute.xlu1 %805 }
 0x146   : > { %939 = vmatmul.bf16.gmra.mxu1 %v891_v41  ;;  %1117 = vmatmul.bf16.gmra.mxu0 %v1069_v42  ;;  %v1868_v41 = vpop.permute.xlu0 %845 }
 0x147   : > { %v703_v44 = vpop.f32.mrf.mxu2 }
 0x148   : > { %v771_v48 = vpack.c.bf16 %v752_v43, %v703_v44 }
 0x14a   : > { %v883_v52 = vunpack.c.l.b16 %v771_v48  ;;  %v1061_v53 = vunpack.c.h.b16 %v771_v48 }
 0x14f   : > { %v705_v50 = vpop.f32.mrf.mxu2 }
 0x150   : > { %v772_v51 = vpack.c.bf16 %v754_v49, %v705_v50  ;;  %v1874_v49 = vpop.permute.xlu1 %850  ;;  %v1009_v50 = vpop.permute.xlu0 %1008 }
 0x152   : > { %v884_v54 = vunpack.c.l.b16 %v772_v51  ;;  %v1062_v55 = vunpack.c.h.b16 %v772_v51 }
 0x154   : > { %v892_v57 = vpack.c.b16 %v884_v54, %v883_v52  ;;  %v1070_v58 = vpack.c.b16 %v1062_v55, %v1061_v53 }
 0x156   : > { %944 = vmatmul.bf16.gmra.mxu1 %v892_v57  ;;  %1122 = vmatmul.bf16.gmra.mxu0 %v1070_v58  ;;  %v811_v57 = vpop.permute.xlu2 %810 }
 0x158   : > { %v1013_v58 = vpop.permute.xlu1 %1012 }
 0x163   : > { %v910_v1 = vpop.f32.mrf.mxu1  ;;  %v1088_v2 = vpop.f32.mrf.mxu0 }
 0x164   : > { %v911_v5 = vadd.f32 %v910_v1, %v776_v59  ;;  %v1089_v6 = vadd.f32 %v1088_v2, %v985_v45 }
 0x166   : > { %v951_v7 = vadd.f32 %v1841_v3, %v911_v5  ;;  %v1129_v8 = vadd.f32 %v1843_v4, %v1089_v6  ;;  %v816_v5 = vpop.permute.xlu0 %815  ;;  %v1017_v6 = vpop.permute.xlu2 %1016 }
 0x168   : > { %967 = vst [vmem:[%s1848_s29] sm:$0xff] %v951_v7 }
 0x169   : > { %1458 = vst [vmem:[%s1848_s29 + $0x80] sm:$0xff] %v1129_v8 }
 0x16b   : > { %v912_v12 = vpop.f32.mrf.mxu1  ;;  %v1090_v13 = vpop.f32.mrf.mxu0 }
 0x16c   : > { %v913_v14 = vadd.f32 %v912_v12, %v781_v62  ;;  %v1091_v15 = vadd.f32 %v1090_v13, %v989_v11  ;;  %v821_v13 = vpop.permute.xlu1 %820 }
 0x16e   : > { %v952_v17 = vadd.f32 %v1841_v3, %v913_v14  ;;  %v1130_v18 = vadd.f32 %v1843_v4, %v1091_v15  ;;  %v1021_v14 = vpop.permute.xlu0 %1020 }
 0x170   : > { %968 = vst [vmem:[%s1848_s29 + $0x8] sm:$0xff] %v952_v17 }
 0x171   : > { %1459 = vst [vmem:[%s1848_s29 + $0x88] sm:$0xff] %v1130_v18 }
 0x173   : > { %v915_v16 = vpop.f32.mrf.mxu1  ;;  %v1093_v21 = vpop.f32.mrf.mxu0 }
 0x174   : > { %v916_v22 = vadd.f32 %v915_v16, %v786_v10  ;;  %v1094_v23 = vadd.f32 %v1093_v21, %v993_v20  ;;  %v826_v21 = vpop.permute.xlu2 %825 }
 0x176   : > { %v953_v24 = vadd.f32 %v1841_v3, %v916_v22  ;;  %v1131_v25 = vadd.f32 %v1843_v4, %v1094_v23  ;;  %v1025_v22 = vpop.permute.xlu1 %1024 }
 0x178   : > { %969 = vst [vmem:[%s1848_s29 + $0x10] sm:$0xff] %v953_v24 }
 0x179   : > { %1460 = vst [vmem:[%s1848_s29 + $0x90] sm:$0xff] %v1131_v25 }
 0x17b   : > { %v917_v27 = vpop.f32.mrf.mxu1  ;;  %v1095_v28 = vpop.f32.mrf.mxu0 }
 0x17c   : > { %v918_v29 = vadd.f32 %v917_v27, %v791_v19  ;;  %v1096_v30 = vadd.f32 %v1095_v28, %v997_v26 }
 0x17e   : > { %v954_v32 = vadd.f32 %v1841_v3, %v918_v29  ;;  %v1132_v33 = vadd.f32 %v1843_v4, %v1096_v30  ;;  %v1029_v29 = vpop.permute.xlu2 %1028  ;;  %v831_v30 = vpop.permute.xlu0 %830 }
 0x180   : > { %970 = vst [vmem:[%s1848_s29 + $0x18] sm:$0xff] %v954_v32 }
 0x181   : > { %1461 = vst [vmem:[%s1848_s29 + $0x98] sm:$0xff] %v1132_v33 }
 0x183   : > { %v920_v34 = vpop.f32.mrf.mxu1  ;;  %v1098_v35 = vpop.f32.mrf.mxu0 }
 0x184   : > { %v921_v36 = vadd.f32 %v920_v34, %v796_v56  ;;  %v1099_v37 = vadd.f32 %v1098_v35, %v1001_v60 }
 0x186   : > { %v955_v39 = vadd.f32 %v1841_v3, %v921_v36  ;;  %v1133_v40 = vadd.f32 %v1843_v4, %v1099_v37 }
 0x188   : > { %971 = vst [vmem:[%s1848_s29 + $0x20] sm:$0xff] %v955_v39 }
 0x189   : > { %1462 = vst [vmem:[%s1848_s29 + $0xa0] sm:$0xff] %v1133_v40 }
 0x18b   : > { %v922_v42 = vpop.f32.mrf.mxu1  ;;  %v1100_v43 = vpop.f32.mrf.mxu0 }
 0x18c   : > { %v923_v44 = vadd.f32 %v922_v42, %v801_v31  ;;  %v1101_v45 = vadd.f32 %v1100_v43, %v1005_v9 }
 0x18e   : > { %v956_v46 = vadd.f32 %v1841_v3, %v923_v44  ;;  %v1134_v48 = vadd.f32 %v1843_v4, %v1101_v45  ;;  %v1037_v44 = vpop.permute.xlu1 %1036 }
 0x190   : > { %972 = vst [vmem:[%s1848_s29 + $0x28] sm:$0xff] %v956_v46 }
 0x191   : > { %1463 = vst [vmem:[%s1848_s29 + $0xa8] sm:$0xff] %v1134_v48 }
 0x193   : > { %v925_v51 = vpop.f32.mrf.mxu1  ;;  %v1103_v52 = vpop.f32.mrf.mxu0 }
 0x194   : > { %v926_v53 = vadd.f32 %v925_v51, %v806_v38  ;;  %v1104_v54 = vadd.f32 %v1103_v52, %v1009_v50 }
 0x196   : > { %v957_v55 = vadd.f32 %v1841_v3, %v926_v53  ;;  %v1135_v56 = vadd.f32 %v1843_v4, %v1104_v54 }
 0x198   : > { %973 = vst [vmem:[%s1848_s29 + $0x30] sm:$0xff] %v957_v55 }
 0x199   : > { %1464 = vst [vmem:[%s1848_s29 + $0xb0] sm:$0xff] %v1135_v56 }
 0x19b   : > { %v927_v59 = vpop.f32.mrf.mxu1  ;;  %v1105_v60 = vpop.f32.mrf.mxu0 }
 0x19c   : > { %v928_v62 = vadd.f32 %v927_v59, %v811_v57  ;;  %v1106_v0 = vadd.f32 %v1105_v60, %v1013_v58 }
 0x19e   : > { %v958_v1 = vadd.f32 %v1841_v3, %v928_v62  ;;  %v1136_v2 = vadd.f32 %v1843_v4, %v1106_v0 }
 0x1a0   : > { %974 = vst [vmem:[%s1848_s29 + $0x38] sm:$0xff] %v958_v1 }
 0x1a1   : > { %1465 = vst [vmem:[%s1848_s29 + $0xb8] sm:$0xff] %v1136_v2 }
 0x1a3   : > { %v930_v7 = vpop.f32.mrf.mxu1  ;;  %v1108_v8 = vpop.f32.mrf.mxu0 }
 0x1a4   : > { %v931_v9 = vadd.f32 %v930_v7, %v816_v5  ;;  %v1109_v10 = vadd.f32 %v1108_v8, %v1017_v6 }
 0x1a6   : > { %v959_v11 = vadd.f32 %v1841_v3, %v931_v9  ;;  %v1137_v12 = vadd.f32 %v1843_v4, %v1109_v10 }
 0x1a8   : > { %975 = vst [vmem:[%s1848_s29 + $0x40] sm:$0xff] %v959_v11 }
 0x1a9   : > { %1466 = vst [vmem:[%s1848_s29 + $0xc0] sm:$0xff] %v1137_v12 }
 0x1ab   : > { %v932_v15 = vpop.f32.mrf.mxu1  ;;  %v1110_v17 = vpop.f32.mrf.mxu0 }
 0x1ac   : > { %v933_v18 = vadd.f32 %v932_v15, %v821_v13  ;;  %v1111_v19 = vadd.f32 %v1110_v17, %v1021_v14 }
 0x1ae   : > { %v960_v20 = vadd.f32 %v1841_v3, %v933_v18  ;;  %v1138_v16 = vadd.f32 %v1843_v4, %v1111_v19 }
 0x1b0   : > { %976 = vst [vmem:[%s1848_s29 + $0x48] sm:$0xff] %v960_v20 }
 0x1b1   : > { %1467 = vst [vmem:[%s1848_s29 + $0xc8] sm:$0xff] %v1138_v16 }
 0x1b3   : > { %v935_v23 = vpop.f32.mrf.mxu1  ;;  %v1113_v24 = vpop.f32.mrf.mxu0 }
 0x1b4   : > { %v936_v25 = vadd.f32 %v935_v23, %v826_v21  ;;  %v1114_v26 = vadd.f32 %v1113_v24, %v1025_v22 }
 0x1b6   : > { %v961_v27 = vadd.f32 %v1841_v3, %v936_v25  ;;  %v1139_v28 = vadd.f32 %v1843_v4, %v1114_v26 }
 0x1b8   : > { %977 = vst [vmem:[%s1848_s29 + $0x50] sm:$0xff] %v961_v27 }
 0x1b9   : > { %1468 = vst [vmem:[%s1848_s29 + $0xd0] sm:$0xff] %v1139_v28 }
 0x1bb   : > { %v937_v31 = vpop.f32.mrf.mxu1  ;;  %v1115_v32 = vpop.f32.mrf.mxu0 }
 0x1bc   : > { %v938_v33 = vadd.f32 %v937_v31, %v831_v30  ;;  %v1116_v34 = vadd.f32 %v1115_v32, %v1029_v29 }
 0x1be   : > { %v962_v35 = vadd.f32 %v1841_v3, %v938_v33  ;;  %v1140_v36 = vadd.f32 %v1843_v4, %v1116_v34 }
 0x1c0   : > { %978 = vst [vmem:[%s1848_s29 + $0x58] sm:$0xff] %v962_v35 }
 0x1c1   : > { %1469 = vst [vmem:[%s1848_s29 + $0xd8] sm:$0xff] %v1140_v36 }
 0x1c3   : > { %v940_v37 = vpop.f32.mrf.mxu1  ;;  %v1118_v38 = vpop.f32.mrf.mxu0 }
 0x1c4   : > { %v941_v39 = vadd.f32 %v940_v37, %v1834_v47  ;;  %v1119_v40 = vadd.f32 %v1118_v38, %v1838_v63  ;;  %v1041_v63 = vpop.permute.xlu2 %1040 }
 0x1c6   : > { %v963_v42 = vadd.f32 %v1841_v3, %v941_v39  ;;  %v1141_v43 = vadd.f32 %v1843_v4, %v1119_v40 }
 0x1c8   : > { %979 = vst [vmem:[%s1848_s29 + $0x60] sm:$0xff] %v963_v42 }
 0x1c9   : > { %1470 = vst [vmem:[%s1848_s29 + $0xe0] sm:$0xff] %v1141_v43 }
 0x1cb   : > { %v942_v45 = vpop.f32.mrf.mxu1  ;;  %v1120_v46 = vpop.f32.mrf.mxu0 }
 0x1cc   : > { %v943_v48 = vadd.f32 %v942_v45, %v1836_v61  ;;  %v1121_v50 = vadd.f32 %v1120_v46, %v1037_v44  ;;  %v1045_v61 = vpop.permute.xlu0 %1044 }
 0x1ce   : > { %v964_v51 = vadd.f32 %v1841_v3, %v943_v48  ;;  %v1142_v47 = vadd.f32 %v1843_v4, %v1121_v50 }
 0x1d0   : > { %980 = vst [vmem:[%s1848_s29 + $0x68] sm:$0xff] %v964_v51 }
 0x1d1   : > { %1471 = vst [vmem:[%s1848_s29 + $0xe8] sm:$0xff] %v1142_v47 }
 0x1d3   : > { %v945_v52 = vpop.f32.mrf.mxu1  ;;  %v1123_v53 = vpop.f32.mrf.mxu0 }
 0x1d4   : > { %v946_v54 = vadd.f32 %v945_v52, %v1868_v41  ;;  %v1124_v55 = vadd.f32 %v1123_v53, %v1041_v63 }
 0x1d6   : > { %v965_v56 = vadd.f32 %v1841_v3, %v946_v54  ;;  %v1143_v57 = vadd.f32 %v1843_v4, %v1124_v55 }
 0x1d8   : > { %981 = vst [vmem:[%s1848_s29 + $0x70] sm:$0xff] %v965_v56 }
 0x1d9   : > { %1472 = vst [vmem:[%s1848_s29 + $0xf0] sm:$0xff] %v1143_v57 }
 0x1db   : > { %v947_v58 = vpop.f32.mrf.mxu1  ;;  %v1125_v59 = vpop.f32.mrf.mxu0 }
 0x1dc   : > { %v948_v60 = vadd.f32 %v947_v58, %v1874_v49  ;;  %v1126_v62 = vadd.f32 %v1125_v59, %v1045_v61 }
 0x1de   : > { %v966_v0 = vadd.f32 %v1841_v3, %v948_v60  ;;  %v1144_v1 = vadd.f32 %v1843_v4, %v1126_v62 }
 0x1e0   : > { %982 = vst [vmem:[%s1848_s29 + $0x78] sm:$0xff] %v966_v0 }
 0x1e1   : > { %1473 = vst [vmem:[%s1848_s29 + $0xf8] sm:$0xff] %v1144_v1 }
 0x1e2 PF: > { %s16_s23 = sadd.s32 1, %s1586_s23   ;;  %s1939_s21 = smov %s1582_s22 }
 0x1e3   : > { %p13_p5 = scmp.ge.s32.totalorder %s16_s23, 4   ;;  %s1940_s22 = smov %s1942_s24 }
 0x1e5   :  { %15 = sbr.rel (!%p13_p5) target bundleno = 2 (0x2), region = 90 }

// kernel: semantic_dependency_forward.3
= control target key start
LH: loop header
LB: loop body
LE: loop exit
PB: predicated region body
PF: predicated region fallthrough
CT: control target
= control target key end

     0   :  { %s2620_s1 = inlined_call_operand.vmem [shape: bf16[128,512], index: 1, kind: input, shape index: {}]   ;;  %s2621_s0 = inlined_call_operand.vmem [shape: bf16[256,128], index: 0, kind: input, shape index: {}]   ;;  %s2622_s2 = inlined_call_operand.vmem [shape: f32[1,512], index: 2, kind: input, shape index: {}]   ;;  %s2623_s4 = inlined_call_operand.vmem [shape: bf16[256,128], index: 4, kind: output, shape index: {1}]   ;;  %s2624_s3 = inlined_call_operand.vmem [shape: bf16[256,128], index: 3, kind: output, shape index: {0}]   ;;  %s2625_s6 = inlined_call_operand.vmem [shape: bf16[256,128], index: 6, kind: output, shape index: {3}]   ;;  %s2626_s5 = inlined_call_operand.vmem [shape: bf16[256,128], index: 5, kind: output, shape index: {2}]  }
   0x1   :  { %v1666_v0 = vld [vmem:[%s2620_s1 + $0xe0] sm:$0xf]  ;;  %v1726_v1 = vld [vmem:[%s2620_s1 + $0xec] sm:$0xf0]  ;;  %v1724_v2 = vld [vmem:[%s2620_s1 + $0xe4] sm:$0xf] }
   0x2   :  { %v1667_v3 = vor.u32 %v1726_v1, %v1666_v0  ;;  %v1668_v4 = vld [vmem:[%s2620_s1 + $0xf0] sm:$0xf0]  ;;  %v1674_v5 = vld [vmem:[%s2620_s1 + $0xe8] sm:$0xf]  ;;  %v1727_v6 = vld [vmem:[%s2620_s1 + $0xf4] sm:$0xf0] }
   0x3   :  { %v1671_v7 = vor.u32 %v1724_v2, %v1668_v4  ;;  %v1675_v8 = vor.u32 %v1727_v6, %v1674_v5  ;;  %v1725_v9 = vld [vmem:[%s2620_s1 + $0xec] sm:$0xf]  ;;  %v1676_v10 = vld [vmem:[%s2620_s1 + $0xf8] sm:$0xf0]  ;;  %v1650_v11 = vld [vmem:[%s2620_s1 + $0xc0] sm:$0xf] }
   0x4   :  { %348 = vmatpush.bf16.msra.mxu0 %v1667_v3  ;;  %v1679_v12 = vor.u32 %v1725_v9, %v1676_v10  ;;  %v1722_v13 = vld [vmem:[%s2620_s1 + $0xcc] sm:$0xf0]  ;;  %v1720_v14 = vld [vmem:[%s2620_s1 + $0xc4] sm:$0xf]  ;;  %v1652_v15 = vld [vmem:[%s2620_s1 + $0xd0] sm:$0xf0] }
   0x5   :  { %437 = vmatpush.bf16.msra.mxu1 %v1671_v7  ;;  %526 = vmatpush.bf16.msra.mxu2 %v1675_v8  ;;  %v1651_v16 = vor.u32 %v1722_v13, %v1650_v11  ;;  %v1655_v17 = vor.u32 %v1720_v14, %v1652_v15  ;;  %v1658_v18 = vld [vmem:[%s2620_s1 + $0xc8] sm:$0xf]  ;;  %v1723_v19 = vld [vmem:[%s2620_s1 + $0xd4] sm:$0xf0]  ;;  %v1721_v20 = vld [vmem:[%s2620_s1 + $0xcc] sm:$0xf] }
   0x6   :  { %615 = vmatpush.bf16.msra.mxu3 %v1679_v12  ;;  %v1659_v21 = vor.u32 %v1723_v19, %v1658_v18  ;;  %v1660_v22 = vld [vmem:[%s2620_s1 + $0xd8] sm:$0xf0]  ;;  %v1634_v23 = vld [vmem:[%s2620_s1 + $0xa0] sm:$0xf]  ;;  %v1718_v24 = vld [vmem:[%s2620_s1 + $0xac] sm:$0xf0] }
   0x7   :  { %v1663_v25 = vor.u32 %v1721_v20, %v1660_v22  ;;  %v1716_v26 = vld [vmem:[%s2620_s1 + $0xa4] sm:$0xf]  ;;  %v1636_v27 = vld [vmem:[%s2620_s1 + $0xb0] sm:$0xf0]  ;;  %v1642_v28 = vld [vmem:[%s2620_s1 + $0xa8] sm:$0xf]  ;;  %v1635_v29 = vor.u32 %v1718_v24, %v1634_v23 }
   0x8   :  { %349 = vmatpush.bf16.msra.mxu0 %v1651_v16  ;;  %v1719_v30 = vld [vmem:[%s2620_s1 + $0xb4] sm:$0xf0]  ;;  %v1717_v31 = vld [vmem:[%s2620_s1 + $0xac] sm:$0xf]  ;;  %v1644_v32 = vld [vmem:[%s2620_s1 + $0xb8] sm:$0xf0]  ;;  %v1639_v33 = vor.u32 %v1716_v26, %v1636_v27 }
   0x9   :  { %438 = vmatpush.bf16.msra.mxu1 %v1655_v17  ;;  %527 = vmatpush.bf16.msra.mxu2 %v1659_v21  ;;  %v1643_v34 = vor.u32 %v1719_v30, %v1642_v28  ;;  %v1618_v35 = vld [vmem:[%s2620_s1 + $0x80] sm:$0xf]  ;;  %v1714_v36 = vld [vmem:[%s2620_s1 + $0x8c] sm:$0xf0]  ;;  %v1712_v37 = vld [vmem:[%s2620_s1 + $0x84] sm:$0xf]  ;;  %v1647_v38 = vor.u32 %v1717_v31, %v1644_v32 }
   0xa   :  { %616 = vmatpush.bf16.msra.mxu3 %v1663_v25  ;;  %v1620_v39 = vld [vmem:[%s2620_s1 + $0x90] sm:$0xf0]  ;;  %v1626_v40 = vld [vmem:[%s2620_s1 + $0x88] sm:$0xf]  ;;  %v1715_v41 = vld [vmem:[%s2620_s1 + $0x94] sm:$0xf0]  ;;  %v1619_v44 = vor.u32 %v1714_v36, %v1618_v35 }
   0xb   :  { %v1713_v42 = vld [vmem:[%s2620_s1 + $0x8c] sm:$0xf]  ;;  %v1628_v43 = vld [vmem:[%s2620_s1 + $0x98] sm:$0xf0]  ;;  %v1623_v45 = vor.u32 %v1712_v37, %v1620_v39  ;;  %v1627_v46 = vor.u32 %v1715_v41, %v1626_v40  ;;  %v1602_v47 = vld [vmem:[%s2620_s1 + $0x60] sm:$0xf] }
   0xc   :  { %350 = vmatpush.bf16.msra.mxu0 %v1635_v29  ;;  %v1710_v48 = vld [vmem:[%s2620_s1 + $0x6c] sm:$0xf0]  ;;  %v1708_v49 = vld [vmem:[%s2620_s1 + $0x64] sm:$0xf]  ;;  %v1631_v50 = vor.u32 %v1713_v42, %v1628_v43  ;;  %v1604_v51 = vld [vmem:[%s2620_s1 + $0x70] sm:$0xf0] }
   0xd   :  { %439 = vmatpush.bf16.msra.mxu1 %v1639_v33  ;;  %528 = vmatpush.bf16.msra.mxu2 %v1643_v34  ;;  %v1610_v52 = vld [vmem:[%s2620_s1 + $0x68] sm:$0xf]  ;;  %v1711_v53 = vld [vmem:[%s2620_s1 + $0x74] sm:$0xf0]  ;;  %v1709_v54 = vld [vmem:[%s2620_s1 + $0x6c] sm:$0xf]  ;;  %v1603_v56 = vor.u32 %v1710_v48, %v1602_v47  ;;  %v1607_v57 = vor.u32 %v1708_v49, %v1604_v51 }
   0xe   :  { %617 = vmatpush.bf16.msra.mxu3 %v1647_v38  ;;  %v1612_v55 = vld [vmem:[%s2620_s1 + $0x78] sm:$0xf0]  ;;  %v1611_v58 = vor.u32 %v1711_v53, %v1610_v52  ;;  %v1586_v59 = vld [vmem:[%s2620_s1 + $0x40] sm:$0xf]  ;;  %v1706_v60 = vld [vmem:[%s2620_s1 + $0x4c] sm:$0xf0] }
   0xf   :  { %v1704_v61 = vld [vmem:[%s2620_s1 + $0x44] sm:$0xf]  ;;  %v1615_v62 = vor.u32 %v1709_v54, %v1612_v55  ;;  %v1588_v63 = vld [vmem:[%s2620_s1 + $0x50] sm:$0xf0]  ;;  %v1594_v0 = vld [vmem:[%s2620_s1 + $0x48] sm:$0xf]  ;;  %v1587_v4 = vor.u32 %v1706_v60, %v1586_v59 }
  0x10   :  { %351 = vmatpush.bf16.msra.mxu0 %v1619_v44  ;;  %v1707_v1 = vld [vmem:[%s2620_s1 + $0x54] sm:$0xf0]  ;;  %v1705_v2 = vld [vmem:[%s2620_s1 + $0x4c] sm:$0xf]  ;;  %v1596_v3 = vld [vmem:[%s2620_s1 + $0x58] sm:$0xf0]  ;;  %v1591_v5 = vor.u32 %v1704_v61, %v1588_v63 }
  0x11   :  { %440 = vmatpush.bf16.msra.mxu1 %v1623_v45  ;;  %529 = vmatpush.bf16.msra.mxu2 %v1627_v46  ;;  %v1595_v6 = vor.u32 %v1707_v1, %v1594_v0  ;;  %v1570_v7 = vld [vmem:[%s2620_s1 + $0x20] sm:$0xf]  ;;  %v1702_v8 = vld [vmem:[%s2620_s1 + $0x2c] sm:$0xf0]  ;;  %v1700_v9 = vld [vmem:[%s2620_s1 + $0x24] sm:$0xf]  ;;  %v1599_v10 = vor.u32 %v1705_v2, %v1596_v3 }
  0x12   :  { %618 = vmatpush.bf16.msra.mxu3 %v1631_v50  ;;  %v1572_v11 = vld [vmem:[%s2620_s1 + $0x30] sm:$0xf0]  ;;  %v1578_v12 = vld [vmem:[%s2620_s1 + $0x28] sm:$0xf]  ;;  %v1703_v13 = vld [vmem:[%s2620_s1 + $0x34] sm:$0xf0]  ;;  %v1571_v16 = vor.u32 %v1702_v8, %v1570_v7 }
  0x13   :  { %v1701_v14 = vld [vmem:[%s2620_s1 + $0x2c] sm:$0xf]  ;;  %v1580_v15 = vld [vmem:[%s2620_s1 + $0x38] sm:$0xf0]  ;;  %v1575_v17 = vor.u32 %v1700_v9, %v1572_v11  ;;  %v1579_v18 = vor.u32 %v1703_v13, %v1578_v12  ;;  %v1554_v19 = vld [vmem:[%s2620_s1] sm:$0xf] }
  0x14   :  { %352 = vmatpush.bf16.msra.mxu0 %v1603_v56  ;;  %v1698_v20 = vld [vmem:[%s2620_s1 + $0xc] sm:$0xf0]  ;;  %v1696_v21 = vld [vmem:[%s2620_s1 + $0x4] sm:$0xf]  ;;  %v1583_v22 = vor.u32 %v1701_v14, %v1580_v15  ;;  %v1556_v23 = vld [vmem:[%s2620_s1 + $0x10] sm:$0xf0] }
  0x15   :  { %441 = vmatpush.bf16.msra.mxu1 %v1607_v57  ;;  %530 = vmatpush.bf16.msra.mxu2 %v1611_v58  ;;  %v1562_v24 = vld [vmem:[%s2620_s1 + $0x8] sm:$0xf]  ;;  %v1699_v25 = vld [vmem:[%s2620_s1 + $0x14] sm:$0xf0]  ;;  %v1697_v26 = vld [vmem:[%s2620_s1 + $0xc] sm:$0xf]  ;;  %v1555_v28 = vor.u32 %v1698_v20, %v1554_v19  ;;  %v1559_v29 = vor.u32 %v1696_v21, %v1556_v23 }
  0x16   :  { %619 = vmatpush.bf16.msra.mxu3 %v1615_v62  ;;  %v1564_v27 = vld [vmem:[%s2620_s1 + $0x18] sm:$0xf0]  ;;  %v1563_v30 = vor.u32 %v1699_v25, %v1562_v24  ;;  %v1680_v32 = vld [vmem:[%s2621_s0] sm:$0xff]  ;;  %v1681_v33 = vld [vmem:[%s2621_s0 + $0x8] sm:$0xff] }
  0x17   :  { %v1567_v31 = vor.u32 %v1697_v26, %v1564_v27  ;;  %v1682_v34 = vld [vmem:[%s2621_s0 + $0x10] sm:$0xff]  ;;  %v1683_v35 = vld [vmem:[%s2621_s0 + $0x18] sm:$0xff]  ;;  %v1684_v36 = vld [vmem:[%s2621_s0 + $0x20] sm:$0xff] }
  0x18   :  { %353 = vmatpush.bf16.msra.mxu0 %v1587_v4  ;;  %v1685_v37 = vld [vmem:[%s2621_s0 + $0x28] sm:$0xff]  ;;  %v1686_v38 = vld [vmem:[%s2621_s0 + $0x30] sm:$0xff]  ;;  %v1687_v39 = vld [vmem:[%s2621_s0 + $0x38] sm:$0xff] }
  0x19   :  { %442 = vmatpush.bf16.msra.mxu1 %v1591_v5  ;;  %531 = vmatpush.bf16.msra.mxu2 %v1595_v6  ;;  %v82_v40 = vld [vmem:[%s2622_s2] sm:$0xf]  ;;  %v1689_v12 = vld [vmem:[%s2621_s0 + $0x48] sm:$0xff] }
  0x1a   :  { %620 = vmatpush.bf16.msra.mxu3 %v1599_v10  ;;  %v2172_v41 = vperm.slane %v82_v40, 0  ;;  %v2174_v42 = vperm.slane %v82_v40, 1  ;;  %v1688_v43 = vld [vmem:[%s2621_s0 + $0x40] sm:$0xff]  ;;  %v2181_v50 = vperm.slane %v82_v40, 2  ;;  %v2183_v52 = vperm.slane %v82_v40, 3 }
  0x1c   :  { %354 = vmatpush.bf16.msra.mxu0 %v1571_v16 }
  0x1d   :  { %443 = vmatpush.bf16.msra.mxu1 %v1575_v17  ;;  %532 = vmatpush.bf16.msra.mxu2 %v1579_v18 }
  0x1e   :  { %621 = vmatpush.bf16.msra.mxu3 %v1583_v22 }
  0x20   :  { %355 = vmatpush.bf16.msra.mxu0 %v1555_v28 }
  0x21   :  { %444 = vmatpush.bf16.msra.mxu1 %v1559_v29  ;;  %533 = vmatpush.bf16.msra.mxu2 %v1563_v30 }
  0x22   :  { %622 = vmatpush.bf16.msra.mxu3 %v1567_v31 }
  0x23   :  { %356 = vmatmul.bf16.vlgmr.msra.gmra.mxu0 %v1680_v32 }
  0x24   :  { %445 = vmatmul.bf16.vlgmr.msra.gmra.mxu1 %v1680_v32  ;;  %534 = vmatmul.bf16.vlgmr.msra.gmra.mxu2 %v1680_v32 }
  0x25   :  { %623 = vmatmul.bf16.vlgmr.msra.gmra.mxu3 %v1680_v32 }
  0x33   :  { %361 = vmatmul.bf16.gmra.mxu0 %v1681_v33 }
  0x34   :  { %450 = vmatmul.bf16.gmra.mxu1 %v1681_v33  ;;  %539 = vmatmul.bf16.gmra.mxu2 %v1681_v33 }
  0x35   :  { %628 = vmatmul.bf16.gmra.mxu3 %v1681_v33 }
  0x43   :  { %366 = vmatmul.bf16.gmra.mxu0 %v1682_v34 }
  0x44   :  { %455 = vmatmul.bf16.gmra.mxu1 %v1682_v34  ;;  %544 = vmatmul.bf16.gmra.mxu2 %v1682_v34 }
  0x45   :  { %633 = vmatmul.bf16.gmra.mxu3 %v1682_v34 }
  0x53   :  { %371 = vmatmul.bf16.gmra.mxu0 %v1683_v35 }
  0x54   :  { %460 = vmatmul.bf16.gmra.mxu1 %v1683_v35  ;;  %549 = vmatmul.bf16.gmra.mxu2 %v1683_v35 }
  0x55   :  { %638 = vmatmul.bf16.gmra.mxu3 %v1683_v35 }
  0x63   :  { %376 = vmatmul.bf16.gmra.mxu0 %v1684_v36 }
  0x64   :  { %465 = vmatmul.bf16.gmra.mxu1 %v1684_v36  ;;  %554 = vmatmul.bf16.gmra.mxu2 %v1684_v36 }
  0x65   :  { %643 = vmatmul.bf16.gmra.mxu3 %v1684_v36 }
  0x73   :  { %381 = vmatmul.bf16.gmra.mxu0 %v1685_v37 }
  0x74   :  { %470 = vmatmul.bf16.gmra.mxu1 %v1685_v37  ;;  %559 = vmatmul.bf16.gmra.mxu2 %v1685_v37 }
  0x75   :  { %648 = vmatmul.bf16.gmra.mxu3 %v1685_v37 }
  0x83   :  { %386 = vmatmul.bf16.gmra.mxu0 %v1686_v38 }
  0x84   :  { %475 = vmatmul.bf16.gmra.mxu1 %v1686_v38  ;;  %564 = vmatmul.bf16.gmra.mxu2 %v1686_v38 }
  0x85   :  { %653 = vmatmul.bf16.gmra.mxu3 %v1686_v38 }
  0x93   :  { %391 = vmatmul.bf16.gmra.mxu0 %v1687_v39 }
  0x94   :  { %480 = vmatmul.bf16.gmra.mxu1 %v1687_v39  ;;  %569 = vmatmul.bf16.gmra.mxu2 %v1687_v39 }
  0x95   :  { %658 = vmatmul.bf16.gmra.mxu3 %v1687_v39 }
  0xa0   :  { %v357_v44 = vpop.f32.mrf.mxu0 }
  0xa1   :  { %v358_v45 = vadd.f32 %v357_v44, %v2172_v41  ;;  %v446_v46 = vpop.f32.mrf.mxu1 }
  0xa2   :  { %v447_v47 = vadd.f32 %v446_v46, %v2174_v42 }
  0xa3   :  { %vm704_vm0 = vcmp.ge.f32.partialorder %v358_v45, 0.0  ;;  %v832_v48 = vmul.f32 0.1, %v358_v45  ;;  %396 = vmatmul.bf16.gmra.mxu0 %v1688_v43 }
  0xa4   :  { %vm705_vm1 = vcmp.ge.f32.partialorder %v447_v47, 0.0  ;;  %v833_v49 = vmul.f32 0.1, %v447_v47  ;;  %485 = vmatmul.bf16.gmra.mxu1 %v1688_v43  ;;  %574 = vmatmul.bf16.gmra.mxu2 %v1688_v43 }
  0xa5   :  { %v960_v51 = vsel %vm704_vm0, %v358_v45, %v832_v48  ;;  %663 = vmatmul.bf16.gmra.mxu3 %v1688_v43 }
  0xa6   :  { %v961_v53 = vsel %vm705_vm1, %v447_v47, %v833_v49 }
  0xa7   :  { %v1088_v54 = vpack.c.bf16 %v961_v53, %v960_v51  ;;  %v535_v55 = vpop.f32.mrf.mxu2 }
  0xa8   :  { %v536_v56 = vadd.f32 %v535_v55, %v2181_v50  ;;  %v624_v57 = vpop.f32.mrf.mxu3  ;;  %v359_v58 = vpop.f32.mrf.mxu0 }
  0xa9   :  { %v1216_v59 = vrot.slane %v1088_v54, 4  ;;  %v625_v60 = vadd.f32 %v624_v57, %v2183_v52  ;;  %v360_v61 = vadd.f32 %v359_v58, %v2172_v41  ;;  %v448_v62 = vpop.f32.mrf.mxu1 }
  0xaa   :  { %vm706_vm2 = vcmp.ge.f32.partialorder %v536_v56, 0.0  ;;  %v834_v63 = vmul.f32 0.1, %v536_v56  ;;  %v449_v0 = vadd.f32 %v448_v62, %v2174_v42 }
  0xab   :  { %1280 = vst [vmem:[%s2623_s4] sm:$0xf] %v1216_v59  ;;  %vm707_vm3 = vcmp.ge.f32.partialorder %v625_v60, 0.0  ;;  %v835_v1 = vmul.f32 0.1, %v625_v60  ;;  %vm708_vm4 = vcmp.ge.f32.partialorder %v360_v61, 0.0  ;;  %v1690_v59 = vld [vmem:[%s2621_s0 + $0x50] sm:$0xff] }
  0xac   :  { %v962_v2 = vsel %vm706_vm2, %v536_v56, %v834_v63  ;;  %v836_v3 = vmul.f32 0.1, %v360_v61  ;;  %vm709_vm5 = vcmp.ge.f32.partialorder %v449_v0, 0.0  ;;  %v837_v4 = vmul.f32 0.1, %v449_v0 }
  0xad   :  { %v963_v5 = vsel %vm707_vm3, %v625_v60, %v835_v1 }
  0xae   :  { %v1089_v6 = vpack.c.bf16 %v963_v5, %v962_v2  ;;  %v964_v7 = vsel %vm708_vm4, %v360_v61, %v836_v3  ;;  %v965_v8 = vsel %vm709_vm5, %v449_v0, %v837_v4 }
  0xaf   :  { %v1731_v9 = vpack.c.bf16 %v964_v7, %v960_v51  ;;  %v1090_v10 = vpack.c.bf16 %v965_v8, %v964_v7  ;;  %v537_v11 = vpop.f32.mrf.mxu2 }
  0xb0   :  { %v1376_v13 = vrot.slane %v1089_v6, 4  ;;  %v538_v14 = vadd.f32 %v537_v11, %v2181_v50  ;;  %v626_v15 = vpop.f32.mrf.mxu3  ;;  %v362_v16 = vpop.f32.mrf.mxu0 }
  0xb1   :  { %1732 = vst [vmem:[%s2624_s3] sm:$0xff] %v1731_v9   ;;  %v1217_v17 = vrot.slane %v1090_v10, 4  ;;  %v627_v18 = vadd.f32 %v626_v15, %v2183_v52  ;;  %v363_v19 = vadd.f32 %v362_v16, %v2172_v41  ;;  %v451_v20 = vpop.f32.mrf.mxu1 }
  0xb2   :  { %1440 = vst [vmem:[%s2625_s6] sm:$0xf] %v1376_v13  ;;  %vm710_vm6 = vcmp.ge.f32.partialorder %v538_v14, 0.0  ;;  %v838_v21 = vmul.f32 0.1, %v538_v14  ;;  %v452_v22 = vadd.f32 %v451_v20, %v2174_v42 }
  0xb3   :  { %1281 = vst [vmem:[%s2623_s4 + $0x4] sm:$0xf] %v1217_v17  ;;  %vm711_vm7 = vcmp.ge.f32.partialorder %v627_v18, 0.0  ;;  %v839_v23 = vmul.f32 0.1, %v627_v18  ;;  %vm712_vm8 = vcmp.ge.f32.partialorder %v363_v19, 0.0  ;;  %401 = vmatmul.bf16.gmra.mxu0 %v1689_v12 }
  0xb4   :  { %v966_v24 = vsel %vm710_vm6, %v538_v14, %v838_v21  ;;  %v840_v25 = vmul.f32 0.1, %v363_v19  ;;  %vm713_vm9 = vcmp.ge.f32.partialorder %v452_v22, 0.0  ;;  %v841_v26 = vmul.f32 0.1, %v452_v22  ;;  %490 = vmatmul.bf16.gmra.mxu1 %v1689_v12  ;;  %579 = vmatmul.bf16.gmra.mxu2 %v1689_v12 }
  0xb5   :  { %v1811_v27 = vpack.c.bf16 %v966_v24, %v962_v2  ;;  %v967_v28 = vsel %vm711_vm7, %v627_v18, %v839_v23  ;;  %668 = vmatmul.bf16.gmra.mxu3 %v1689_v12 }
  0xb6   :  { %v1091_v29 = vpack.c.bf16 %v967_v28, %v966_v24  ;;  %v968_v30 = vsel %vm712_vm8, %v363_v19, %v840_v25  ;;  %v969_v31 = vsel %vm713_vm9, %v452_v22, %v841_v26 }
  0xb7   :  { %1812 = vst [vmem:[%s2626_s5] sm:$0xff] %v1811_v27   ;;  %v1092_v32 = vpack.c.bf16 %v969_v31, %v968_v30  ;;  %v540_v33 = vpop.f32.mrf.mxu2 }
  0xb8   :  { %v1377_v34 = vrot.slane %v1091_v29, 4  ;;  %v541_v35 = vadd.f32 %v540_v33, %v2181_v50  ;;  %v629_v36 = vpop.f32.mrf.mxu3  ;;  %v364_v37 = vpop.f32.mrf.mxu0 }
  0xb9   :  { %v1218_v38 = vrot.slane %v1092_v32, 4  ;;  %v630_v39 = vadd.f32 %v629_v36, %v2183_v52  ;;  %v365_v40 = vadd.f32 %v364_v37, %v2172_v41  ;;  %v453_v43 = vpop.f32.mrf.mxu1 }
  0xba   :  { %1441 = vst [vmem:[%s2625_s6 + $0x4] sm:$0xf] %v1377_v34  ;;  %vm714_vm10 = vcmp.ge.f32.partialorder %v541_v35, 0.0  ;;  %v842_v44 = vmul.f32 0.1, %v541_v35  ;;  %v454_v45 = vadd.f32 %v453_v43, %v2174_v42 }
  0xbb   :  { %1282 = vst [vmem:[%s2623_s4 + $0x8] sm:$0xf] %v1218_v38  ;;  %vm715_vm11 = vcmp.ge.f32.partialorder %v630_v39, 0.0  ;;  %v843_v46 = vmul.f32 0.1, %v630_v39  ;;  %vm716_vm12 = vcmp.ge.f32.partialorder %v365_v40, 0.0 }
  0xbc   :  { %v970_v47 = vsel %vm714_vm10, %v541_v35, %v842_v44  ;;  %v844_v48 = vmul.f32 0.1, %v365_v40  ;;  %vm717_vm13 = vcmp.ge.f32.partialorder %v454_v45, 0.0  ;;  %v845_v49 = vmul.f32 0.1, %v454_v45  ;;  %v1691_v38 = vld [vmem:[%s2621_s0 + $0x58] sm:$0xff] }
  0xbd   :  { %v971_v51 = vsel %vm715_vm11, %v630_v39, %v843_v46 }
  0xbe   :  { %v1093_v53 = vpack.c.bf16 %v971_v51, %v970_v47  ;;  %v972_v54 = vsel %vm716_vm12, %v365_v40, %v844_v48  ;;  %v973_v55 = vsel %vm717_vm13, %v454_v45, %v845_v49 }
  0xbf   :  { %v1736_v56 = vpack.c.bf16 %v972_v54, %v968_v30  ;;  %v1094_v57 = vpack.c.bf16 %v973_v55, %v972_v54  ;;  %v542_v58 = vpop.f32.mrf.mxu2 }
  0xc0   :  { %v1378_v60 = vrot.slane %v1093_v53, 4  ;;  %v543_v61 = vadd.f32 %v542_v58, %v2181_v50  ;;  %v631_v62 = vpop.f32.mrf.mxu3  ;;  %v367_v63 = vpop.f32.mrf.mxu0 }
  0xc1   :  { %1888 = vst [vmem:[%s2624_s3 + $0x8] sm:$0xff] %v1736_v56   ;;  %v1219_v0 = vrot.slane %v1094_v57, 4  ;;  %v632_v1 = vadd.f32 %v631_v62, %v2183_v52  ;;  %v368_v2 = vadd.f32 %v367_v63, %v2172_v41  ;;  %v456_v3 = vpop.f32.mrf.mxu1 }
  0xc2   :  { %1442 = vst [vmem:[%s2625_s6 + $0x8] sm:$0xf] %v1378_v60  ;;  %vm718_vm14 = vcmp.ge.f32.partialorder %v543_v61, 0.0  ;;  %v846_v4 = vmul.f32 0.1, %v543_v61  ;;  %v457_v5 = vadd.f32 %v456_v3, %v2174_v42 }
  0xc3   :  { %1283 = vst [vmem:[%s2623_s4 + $0xc] sm:$0xf] %v1219_v0  ;;  %vm719_vm15 = vcmp.ge.f32.partialorder %v632_v1, 0.0  ;;  %v847_v6 = vmul.f32 0.1, %v632_v1  ;;  %vm720_vm0 = vcmp.ge.f32.partialorder %v368_v2, 0.0  ;;  %406 = vmatmul.bf16.gmra.mxu0 %v1690_v59 }
  0xc4   :  { %v974_v7 = vsel %vm718_vm14, %v543_v61, %v846_v4  ;;  %v848_v8 = vmul.f32 0.1, %v368_v2  ;;  %vm721_vm1 = vcmp.ge.f32.partialorder %v457_v5, 0.0  ;;  %v849_v9 = vmul.f32 0.1, %v457_v5  ;;  %495 = vmatmul.bf16.gmra.mxu1 %v1690_v59  ;;  %584 = vmatmul.bf16.gmra.mxu2 %v1690_v59 }
  0xc5   :  { %v1816_v10 = vpack.c.bf16 %v974_v7, %v970_v47  ;;  %v975_v11 = vsel %vm719_vm15, %v632_v1, %v847_v6  ;;  %673 = vmatmul.bf16.gmra.mxu3 %v1690_v59 }
  0xc6   :  { %v1095_v12 = vpack.c.bf16 %v975_v11, %v974_v7  ;;  %v976_v13 = vsel %vm720_vm0, %v368_v2, %v848_v8  ;;  %v977_v14 = vsel %vm721_vm1, %v457_v5, %v849_v9 }
  0xc7   :  { %1903 = vst [vmem:[%s2626_s5 + $0x8] sm:$0xff] %v1816_v10   ;;  %v1096_v15 = vpack.c.bf16 %v977_v14, %v976_v13  ;;  %v545_v16 = vpop.f32.mrf.mxu2 }
  0xc8   :  { %v1379_v17 = vrot.slane %v1095_v12, 4  ;;  %v546_v18 = vadd.f32 %v545_v16, %v2181_v50  ;;  %v634_v19 = vpop.f32.mrf.mxu3  ;;  %v369_v20 = vpop.f32.mrf.mxu0 }
  0xc9   :  { %v1220_v21 = vrot.slane %v1096_v15, 4  ;;  %v635_v22 = vadd.f32 %v634_v19, %v2183_v52  ;;  %v370_v23 = vadd.f32 %v369_v20, %v2172_v41  ;;  %v458_v24 = vpop.f32.mrf.mxu1 }
  0xca   :  { %1443 = vst [vmem:[%s2625_s6 + $0xc] sm:$0xf] %v1379_v17  ;;  %vm722_vm2 = vcmp.ge.f32.partialorder %v546_v18, 0.0  ;;  %v850_v25 = vmul.f32 0.1, %v546_v18  ;;  %v459_v26 = vadd.f32 %v458_v24, %v2174_v42 }
  0xcb   :  { %1284 = vst [vmem:[%s2623_s4 + $0x10] sm:$0xf] %v1220_v21  ;;  %vm723_vm3 = vcmp.ge.f32.partialorder %v635_v22, 0.0  ;;  %v851_v27 = vmul.f32 0.1, %v635_v22  ;;  %vm724_vm4 = vcmp.ge.f32.partialorder %v370_v23, 0.0 }
  0xcc   :  { %v978_v28 = vsel %vm722_vm2, %v546_v18, %v850_v25  ;;  %v852_v29 = vmul.f32 0.1, %v370_v23  ;;  %vm725_vm5 = vcmp.ge.f32.partialorder %v459_v26, 0.0  ;;  %v853_v30 = vmul.f32 0.1, %v459_v26  ;;  %v1692_v21 = vld [vmem:[%s2621_s0 + $0x60] sm:$0xff] }
  0xcd   :  { %v979_v31 = vsel %vm723_vm3, %v635_v22, %v851_v27 }
  0xce   :  { %v1097_v32 = vpack.c.bf16 %v979_v31, %v978_v28  ;;  %v980_v33 = vsel %vm724_vm4, %v370_v23, %v852_v29  ;;  %v981_v34 = vsel %vm725_vm5, %v459_v26, %v853_v30 }
  0xcf   :  { %v1741_v35 = vpack.c.bf16 %v980_v33, %v976_v13  ;;  %v1098_v36 = vpack.c.bf16 %v981_v34, %v980_v33  ;;  %v547_v37 = vpop.f32.mrf.mxu2 }
  0xd0   :  { %v1380_v39 = vrot.slane %v1097_v32, 4  ;;  %v548_v40 = vadd.f32 %v547_v37, %v2181_v50  ;;  %v636_v43 = vpop.f32.mrf.mxu3  ;;  %v372_v44 = vpop.f32.mrf.mxu0 }
  0xd1   :  { %1889 = vst [vmem:[%s2624_s3 + $0x10] sm:$0xff] %v1741_v35   ;;  %v1221_v45 = vrot.slane %v1098_v36, 4  ;;  %v637_v46 = vadd.f32 %v636_v43, %v2183_v52  ;;  %v373_v47 = vadd.f32 %v372_v44, %v2172_v41  ;;  %v461_v48 = vpop.f32.mrf.mxu1 }
  0xd2   :  { %1444 = vst [vmem:[%s2625_s6 + $0x10] sm:$0xf] %v1380_v39  ;;  %vm726_vm6 = vcmp.ge.f32.partialorder %v548_v40, 0.0  ;;  %v854_v49 = vmul.f32 0.1, %v548_v40  ;;  %v462_v51 = vadd.f32 %v461_v48, %v2174_v42 }
  0xd3   :  { %1285 = vst [vmem:[%s2623_s4 + $0x14] sm:$0xf] %v1221_v45  ;;  %vm727_vm7 = vcmp.ge.f32.partialorder %v637_v46, 0.0  ;;  %v855_v53 = vmul.f32 0.1, %v637_v46  ;;  %vm728_vm8 = vcmp.ge.f32.partialorder %v373_v47, 0.0  ;;  %411 = vmatmul.bf16.gmra.mxu0 %v1691_v38 }
  0xd4   :  { %v982_v54 = vsel %vm726_vm6, %v548_v40, %v854_v49  ;;  %v856_v55 = vmul.f32 0.1, %v373_v47  ;;  %vm729_vm9 = vcmp.ge.f32.partialorder %v462_v51, 0.0  ;;  %v857_v56 = vmul.f32 0.1, %v462_v51  ;;  %500 = vmatmul.bf16.gmra.mxu1 %v1691_v38  ;;  %589 = vmatmul.bf16.gmra.mxu2 %v1691_v38 }
  0xd5   :  { %v1821_v57 = vpack.c.bf16 %v982_v54, %v978_v28  ;;  %v983_v58 = vsel %vm727_vm7, %v637_v46, %v855_v53  ;;  %678 = vmatmul.bf16.gmra.mxu3 %v1691_v38 }
  0xd6   :  { %v1099_v59 = vpack.c.bf16 %v983_v58, %v982_v54  ;;  %v984_v60 = vsel %vm728_vm8, %v373_v47, %v856_v55  ;;  %v985_v61 = vsel %vm729_vm9, %v462_v51, %v857_v56 }
  0xd7   :  { %1904 = vst [vmem:[%s2626_s5 + $0x10] sm:$0xff] %v1821_v57   ;;  %v1100_v62 = vpack.c.bf16 %v985_v61, %v984_v60  ;;  %v550_v63 = vpop.f32.mrf.mxu2 }
  0xd8   :  { %v1381_v0 = vrot.slane %v1099_v59, 4  ;;  %v551_v1 = vadd.f32 %v550_v63, %v2181_v50  ;;  %v639_v2 = vpop.f32.mrf.mxu3  ;;  %v374_v3 = vpop.f32.mrf.mxu0 }
  0xd9   :  { %v1222_v4 = vrot.slane %v1100_v62, 4  ;;  %v640_v5 = vadd.f32 %v639_v2, %v2183_v52  ;;  %v375_v6 = vadd.f32 %v374_v3, %v2172_v41  ;;  %v463_v7 = vpop.f32.mrf.mxu1 }
  0xda   :  { %1445 = vst [vmem:[%s2625_s6 + $0x14] sm:$0xf] %v1381_v0  ;;  %vm730_vm10 = vcmp.ge.f32.partialorder %v551_v1, 0.0  ;;  %v858_v8 = vmul.f32 0.1, %v551_v1  ;;  %v464_v9 = vadd.f32 %v463_v7, %v2174_v42 }
  0xdb   :  { %1286 = vst [vmem:[%s2623_s4 + $0x18] sm:$0xf] %v1222_v4  ;;  %vm731_vm11 = vcmp.ge.f32.partialorder %v640_v5, 0.0  ;;  %v859_v10 = vmul.f32 0.1, %v640_v5  ;;  %vm732_vm12 = vcmp.ge.f32.partialorder %v375_v6, 0.0 }
  0xdc   :  { %v986_v11 = vsel %vm730_vm10, %v551_v1, %v858_v8  ;;  %v860_v12 = vmul.f32 0.1, %v375_v6  ;;  %vm733_vm13 = vcmp.ge.f32.partialorder %v464_v9, 0.0  ;;  %v861_v13 = vmul.f32 0.1, %v464_v9  ;;  %v1693_v4 = vld [vmem:[%s2621_s0 + $0x68] sm:$0xff] }
  0xdd   :  { %v987_v14 = vsel %vm731_vm11, %v640_v5, %v859_v10 }
  0xde   :  { %v1101_v15 = vpack.c.bf16 %v987_v14, %v986_v11  ;;  %v988_v16 = vsel %vm732_vm12, %v375_v6, %v860_v12  ;;  %v989_v17 = vsel %vm733_vm13, %v464_v9, %v861_v13 }
  0xdf   :  { %v1746_v18 = vpack.c.bf16 %v988_v16, %v984_v60  ;;  %v1102_v19 = vpack.c.bf16 %v989_v17, %v988_v16  ;;  %v552_v20 = vpop.f32.mrf.mxu2 }
  0xe0   :  { %v1382_v22 = vrot.slane %v1101_v15, 4  ;;  %v553_v23 = vadd.f32 %v552_v20, %v2181_v50  ;;  %v641_v24 = vpop.f32.mrf.mxu3  ;;  %v377_v25 = vpop.f32.mrf.mxu0 }
  0xe1   :  { %1890 = vst [vmem:[%s2624_s3 + $0x18] sm:$0xff] %v1746_v18   ;;  %v1223_v26 = vrot.slane %v1102_v19, 4  ;;  %v642_v27 = vadd.f32 %v641_v24, %v2183_v52  ;;  %v378_v28 = vadd.f32 %v377_v25, %v2172_v41  ;;  %v466_v29 = vpop.f32.mrf.mxu1 }
  0xe2   :  { %1446 = vst [vmem:[%s2625_s6 + $0x18] sm:$0xf] %v1382_v22  ;;  %vm734_vm14 = vcmp.ge.f32.partialorder %v553_v23, 0.0  ;;  %v862_v30 = vmul.f32 0.1, %v553_v23  ;;  %v467_v31 = vadd.f32 %v466_v29, %v2174_v42 }
  0xe3   :  { %1287 = vst [vmem:[%s2623_s4 + $0x1c] sm:$0xf] %v1223_v26  ;;  %vm735_vm15 = vcmp.ge.f32.partialorder %v642_v27, 0.0  ;;  %v863_v32 = vmul.f32 0.1, %v642_v27  ;;  %vm736_vm0 = vcmp.ge.f32.partialorder %v378_v28, 0.0  ;;  %416 = vmatmul.bf16.gmra.mxu0 %v1692_v21 }
  0xe4   :  { %v990_v33 = vsel %vm734_vm14, %v553_v23, %v862_v30  ;;  %v864_v34 = vmul.f32 0.1, %v378_v28  ;;  %vm737_vm1 = vcmp.ge.f32.partialorder %v467_v31, 0.0  ;;  %v865_v35 = vmul.f32 0.1, %v467_v31  ;;  %505 = vmatmul.bf16.gmra.mxu1 %v1692_v21  ;;  %594 = vmatmul.bf16.gmra.mxu2 %v1692_v21 }
  0xe5   :  { %v1826_v36 = vpack.c.bf16 %v990_v33, %v986_v11  ;;  %v991_v37 = vsel %vm735_vm15, %v642_v27, %v863_v32  ;;  %683 = vmatmul.bf16.gmra.mxu3 %v1692_v21 }
  0xe6   :  { %v1103_v38 = vpack.c.bf16 %v991_v37, %v990_v33  ;;  %v992_v39 = vsel %vm736_vm0, %v378_v28, %v864_v34  ;;  %v993_v40 = vsel %vm737_vm1, %v467_v31, %v865_v35 }
  0xe7   :  { %1905 = vst [vmem:[%s2626_s5 + $0x18] sm:$0xff] %v1826_v36   ;;  %v1104_v43 = vpack.c.bf16 %v993_v40, %v992_v39  ;;  %v555_v44 = vpop.f32.mrf.mxu2 }
  0xe8   :  { %v1383_v45 = vrot.slane %v1103_v38, 4  ;;  %v556_v46 = vadd.f32 %v555_v44, %v2181_v50  ;;  %v644_v47 = vpop.f32.mrf.mxu3  ;;  %v379_v48 = vpop.f32.mrf.mxu0 }
  0xe9   :  { %v1224_v49 = vrot.slane %v1104_v43, 4  ;;  %v645_v51 = vadd.f32 %v644_v47, %v2183_v52  ;;  %v380_v53 = vadd.f32 %v379_v48, %v2172_v41  ;;  %v468_v54 = vpop.f32.mrf.mxu1 }
  0xea   :  { %1447 = vst [vmem:[%s2625_s6 + $0x1c] sm:$0xf] %v1383_v45  ;;  %vm738_vm2 = vcmp.ge.f32.partialorder %v556_v46, 0.0  ;;  %v866_v55 = vmul.f32 0.1, %v556_v46  ;;  %v469_v56 = vadd.f32 %v468_v54, %v2174_v42 }
  0xeb   :  { %1288 = vst [vmem:[%s2623_s4 + $0x20] sm:$0xf] %v1224_v49  ;;  %vm739_vm3 = vcmp.ge.f32.partialorder %v645_v51, 0.0  ;;  %v867_v57 = vmul.f32 0.1, %v645_v51  ;;  %vm740_vm4 = vcmp.ge.f32.partialorder %v380_v53, 0.0 }
  0xec   :  { %v994_v58 = vsel %vm738_vm2, %v556_v46, %v866_v55  ;;  %v868_v59 = vmul.f32 0.1, %v380_v53  ;;  %vm741_vm5 = vcmp.ge.f32.partialorder %v469_v56, 0.0  ;;  %v869_v60 = vmul.f32 0.1, %v469_v56  ;;  %v1694_v49 = vld [vmem:[%s2621_s0 + $0x70] sm:$0xff] }
  0xed   :  { %v995_v61 = vsel %vm739_vm3, %v645_v51, %v867_v57 }
  0xee   :  { %v1105_v62 = vpack.c.bf16 %v995_v61, %v994_v58  ;;  %v996_v63 = vsel %vm740_vm4, %v380_v53, %v868_v59  ;;  %v997_v0 = vsel %vm741_vm5, %v469_v56, %v869_v60 }
  0xef   :  { %v1751_v1 = vpack.c.bf16 %v996_v63, %v992_v39  ;;  %v1106_v2 = vpack.c.bf16 %v997_v0, %v996_v63  ;;  %v557_v3 = vpop.f32.mrf.mxu2 }
  0xf0   :  { %v1384_v5 = vrot.slane %v1105_v62, 4  ;;  %v558_v6 = vadd.f32 %v557_v3, %v2181_v50  ;;  %v646_v7 = vpop.f32.mrf.mxu3  ;;  %v382_v8 = vpop.f32.mrf.mxu0 }
  0xf1   :  { %1891 = vst [vmem:[%s2624_s3 + $0x20] sm:$0xff] %v1751_v1   ;;  %v1225_v9 = vrot.slane %v1106_v2, 4  ;;  %v647_v10 = vadd.f32 %v646_v7, %v2183_v52  ;;  %v383_v11 = vadd.f32 %v382_v8, %v2172_v41  ;;  %v471_v12 = vpop.f32.mrf.mxu1 }
  0xf2   :  { %1448 = vst [vmem:[%s2625_s6 + $0x20] sm:$0xf] %v1384_v5  ;;  %vm742_vm6 = vcmp.ge.f32.partialorder %v558_v6, 0.0  ;;  %v870_v13 = vmul.f32 0.1, %v558_v6  ;;  %v472_v14 = vadd.f32 %v471_v12, %v2174_v42 }
  0xf3   :  { %1289 = vst [vmem:[%s2623_s4 + $0x24] sm:$0xf] %v1225_v9  ;;  %vm743_vm7 = vcmp.ge.f32.partialorder %v647_v10, 0.0  ;;  %v871_v15 = vmul.f32 0.1, %v647_v10  ;;  %vm744_vm8 = vcmp.ge.f32.partialorder %v383_v11, 0.0  ;;  %421 = vmatmul.bf16.gmra.mxu0 %v1693_v4 }
  0xf4   :  { %v998_v16 = vsel %vm742_vm6, %v558_v6, %v870_v13  ;;  %v872_v17 = vmul.f32 0.1, %v383_v11  ;;  %vm745_vm9 = vcmp.ge.f32.partialorder %v472_v14, 0.0  ;;  %v873_v18 = vmul.f32 0.1, %v472_v14  ;;  %510 = vmatmul.bf16.gmra.mxu1 %v1693_v4  ;;  %599 = vmatmul.bf16.gmra.mxu2 %v1693_v4 }
  0xf5   :  { %v1831_v19 = vpack.c.bf16 %v998_v16, %v994_v58  ;;  %v999_v20 = vsel %vm743_vm7, %v647_v10, %v871_v15  ;;  %688 = vmatmul.bf16.gmra.mxu3 %v1693_v4 }
  0xf6   :  { %v1107_v21 = vpack.c.bf16 %v999_v20, %v998_v16  ;;  %v1000_v22 = vsel %vm744_vm8, %v383_v11, %v872_v17  ;;  %v1001_v23 = vsel %vm745_vm9, %v472_v14, %v873_v18 }
  0xf7   :  { %1906 = vst [vmem:[%s2626_s5 + $0x20] sm:$0xff] %v1831_v19   ;;  %v1108_v24 = vpack.c.bf16 %v1001_v23, %v1000_v22  ;;  %v560_v25 = vpop.f32.mrf.mxu2 }
  0xf8   :  { %v1385_v26 = vrot.slane %v1107_v21, 4  ;;  %v561_v27 = vadd.f32 %v560_v25, %v2181_v50  ;;  %v649_v28 = vpop.f32.mrf.mxu3  ;;  %v384_v29 = vpop.f32.mrf.mxu0 }
  0xf9   :  { %v1226_v30 = vrot.slane %v1108_v24, 4  ;;  %v650_v31 = vadd.f32 %v649_v28, %v2183_v52  ;;  %v385_v32 = vadd.f32 %v384_v29, %v2172_v41  ;;  %v473_v33 = vpop.f32.mrf.mxu1 }
  0xfa   :  { %1449 = vst [vmem:[%s2625_s6 + $0x24] sm:$0xf] %v1385_v26  ;;  %vm746_vm10 = vcmp.ge.f32.partialorder %v561_v27, 0.0  ;;  %v874_v34 = vmul.f32 0.1, %v561_v27  ;;  %v474_v35 = vadd.f32 %v473_v33, %v2174_v42 }
  0xfb   :  { %1290 = vst [vmem:[%s2623_s4 + $0x28] sm:$0xf] %v1226_v30  ;;  %vm747_vm11 = vcmp.ge.f32.partialorder %v650_v31, 0.0  ;;  %v875_v36 = vmul.f32 0.1, %v650_v31  ;;  %vm748_vm12 = vcmp.ge.f32.partialorder %v385_v32, 0.0 }
  0xfc   :  { %v1002_v37 = vsel %vm746_vm10, %v561_v27, %v874_v34  ;;  %v876_v38 = vmul.f32 0.1, %v385_v32  ;;  %vm749_vm13 = vcmp.ge.f32.partialorder %v474_v35, 0.0  ;;  %v877_v39 = vmul.f32 0.1, %v474_v35  ;;  %v1695_v30 = vld [vmem:[%s2621_s0 + $0x78] sm:$0xff] }
  0xfd   :  { %v1003_v40 = vsel %vm747_vm11, %v650_v31, %v875_v36 }
  0xfe   :  { %v1109_v43 = vpack.c.bf16 %v1003_v40, %v1002_v37  ;;  %v1004_v44 = vsel %vm748_vm12, %v385_v32, %v876_v38  ;;  %v1005_v45 = vsel %vm749_vm13, %v474_v35, %v877_v39 }
  0xff   :  { %v1756_v46 = vpack.c.bf16 %v1004_v44, %v1000_v22  ;;  %v1110_v47 = vpack.c.bf16 %v1005_v45, %v1004_v44  ;;  %v562_v48 = vpop.f32.mrf.mxu2 }
 0x100   :  { %v1386_v51 = vrot.slane %v1109_v43, 4  ;;  %v563_v53 = vadd.f32 %v562_v48, %v2181_v50  ;;  %v651_v54 = vpop.f32.mrf.mxu3  ;;  %v387_v55 = vpop.f32.mrf.mxu0 }
 0x101   :  { %1892 = vst [vmem:[%s2624_s3 + $0x28] sm:$0xff] %v1756_v46   ;;  %v1227_v56 = vrot.slane %v1110_v47, 4  ;;  %v652_v57 = vadd.f32 %v651_v54, %v2183_v52  ;;  %v388_v58 = vadd.f32 %v387_v55, %v2172_v41  ;;  %v476_v59 = vpop.f32.mrf.mxu1 }
 0x102   :  { %1450 = vst [vmem:[%s2625_s6 + $0x28] sm:$0xf] %v1386_v51  ;;  %vm750_vm14 = vcmp.ge.f32.partialorder %v563_v53, 0.0  ;;  %v878_v60 = vmul.f32 0.1, %v563_v53  ;;  %v477_v61 = vadd.f32 %v476_v59, %v2174_v42 }
 0x103   :  { %1291 = vst [vmem:[%s2623_s4 + $0x2c] sm:$0xf] %v1227_v56  ;;  %vm751_vm15 = vcmp.ge.f32.partialorder %v652_v57, 0.0  ;;  %v879_v62 = vmul.f32 0.1, %v652_v57  ;;  %vm752_vm0 = vcmp.ge.f32.partialorder %v388_v58, 0.0  ;;  %426 = vmatmul.bf16.gmra.mxu0 %v1694_v49 }
 0x104   :  { %v1006_v63 = vsel %vm750_vm14, %v563_v53, %v878_v60  ;;  %v880_v0 = vmul.f32 0.1, %v388_v58  ;;  %vm753_vm1 = vcmp.ge.f32.partialorder %v477_v61, 0.0  ;;  %v881_v1 = vmul.f32 0.1, %v477_v61  ;;  %515 = vmatmul.bf16.gmra.mxu1 %v1694_v49  ;;  %604 = vmatmul.bf16.gmra.mxu2 %v1694_v49 }
 0x105   :  { %v1836_v2 = vpack.c.bf16 %v1006_v63, %v1002_v37  ;;  %v1007_v3 = vsel %vm751_vm15, %v652_v57, %v879_v62  ;;  %693 = vmatmul.bf16.gmra.mxu3 %v1694_v49 }
 0x106   :  { %v1111_v4 = vpack.c.bf16 %v1007_v3, %v1006_v63  ;;  %v1008_v5 = vsel %vm752_vm0, %v388_v58, %v880_v0  ;;  %v1009_v6 = vsel %vm753_vm1, %v477_v61, %v881_v1 }
 0x107   :  { %1907 = vst [vmem:[%s2626_s5 + $0x28] sm:$0xff] %v1836_v2   ;;  %v1112_v7 = vpack.c.bf16 %v1009_v6, %v1008_v5  ;;  %v565_v8 = vpop.f32.mrf.mxu2 }
 0x108   :  { %v1387_v9 = vrot.slane %v1111_v4, 4  ;;  %v566_v10 = vadd.f32 %v565_v8, %v2181_v50  ;;  %v654_v11 = vpop.f32.mrf.mxu3  ;;  %v389_v12 = vpop.f32.mrf.mxu0 }
 0x109   :  { %v1228_v13 = vrot.slane %v1112_v7, 4  ;;  %v655_v14 = vadd.f32 %v654_v11, %v2183_v52  ;;  %v390_v15 = vadd.f32 %v389_v12, %v2172_v41  ;;  %v478_v16 = vpop.f32.mrf.mxu1 }
 0x10a   :  { %1451 = vst [vmem:[%s2625_s6 + $0x2c] sm:$0xf] %v1387_v9  ;;  %vm754_vm2 = vcmp.ge.f32.partialorder %v566_v10, 0.0  ;;  %v882_v17 = vmul.f32 0.1, %v566_v10  ;;  %v479_v18 = vadd.f32 %v478_v16, %v2174_v42 }
 0x10b   :  { %1292 = vst [vmem:[%s2623_s4 + $0x30] sm:$0xf] %v1228_v13  ;;  %vm755_vm3 = vcmp.ge.f32.partialorder %v655_v14, 0.0  ;;  %v883_v19 = vmul.f32 0.1, %v655_v14  ;;  %vm756_vm4 = vcmp.ge.f32.partialorder %v390_v15, 0.0 }
 0x10c   :  { %v1010_v20 = vsel %vm754_vm2, %v566_v10, %v882_v17  ;;  %v884_v21 = vmul.f32 0.1, %v390_v15  ;;  %vm757_vm5 = vcmp.ge.f32.partialorder %v479_v18, 0.0  ;;  %v885_v22 = vmul.f32 0.1, %v479_v18 }
 0x10d   :  { %v1011_v23 = vsel %vm755_vm3, %v655_v14, %v883_v19 }
 0x10e   :  { %v1113_v24 = vpack.c.bf16 %v1011_v23, %v1010_v20  ;;  %v1012_v25 = vsel %vm756_vm4, %v390_v15, %v884_v21  ;;  %v1013_v26 = vsel %vm757_vm5, %v479_v18, %v885_v22 }
 0x10f   :  { %v1761_v27 = vpack.c.bf16 %v1012_v25, %v1008_v5  ;;  %v1114_v28 = vpack.c.bf16 %v1013_v26, %v1012_v25  ;;  %v567_v29 = vpop.f32.mrf.mxu2 }
 0x110   :  { %v1388_v31 = vrot.slane %v1113_v24, 4  ;;  %v568_v32 = vadd.f32 %v567_v29, %v2181_v50  ;;  %v656_v33 = vpop.f32.mrf.mxu3  ;;  %v392_v34 = vpop.f32.mrf.mxu0 }
 0x111   :  { %1893 = vst [vmem:[%s2624_s3 + $0x30] sm:$0xff] %v1761_v27   ;;  %v1229_v35 = vrot.slane %v1114_v28, 4  ;;  %v657_v36 = vadd.f32 %v656_v33, %v2183_v52  ;;  %v393_v37 = vadd.f32 %v392_v34, %v2172_v41  ;;  %v481_v38 = vpop.f32.mrf.mxu1 }
 0x112   :  { %1452 = vst [vmem:[%s2625_s6 + $0x30] sm:$0xf] %v1388_v31  ;;  %vm758_vm6 = vcmp.ge.f32.partialorder %v568_v32, 0.0  ;;  %v886_v39 = vmul.f32 0.1, %v568_v32  ;;  %v482_v40 = vadd.f32 %v481_v38, %v2174_v42 }
 0x113   :  { %1293 = vst [vmem:[%s2623_s4 + $0x34] sm:$0xf] %v1229_v35  ;;  %vm759_vm7 = vcmp.ge.f32.partialorder %v657_v36, 0.0  ;;  %v887_v43 = vmul.f32 0.1, %v657_v36  ;;  %vm760_vm8 = vcmp.ge.f32.partialorder %v393_v37, 0.0  ;;  %431 = vmatmul.bf16.gmra.mxu0 %v1695_v30 }
 0x114   :  { %v1014_v44 = vsel %vm758_vm6, %v568_v32, %v886_v39  ;;  %v888_v45 = vmul.f32 0.1, %v393_v37  ;;  %vm761_vm9 = vcmp.ge.f32.partialorder %v482_v40, 0.0  ;;  %v889_v46 = vmul.f32 0.1, %v482_v40  ;;  %520 = vmatmul.bf16.gmra.mxu1 %v1695_v30  ;;  %609 = vmatmul.bf16.gmra.mxu2 %v1695_v30 }
 0x115   :  { %v1841_v47 = vpack.c.bf16 %v1014_v44, %v1010_v20  ;;  %v1015_v48 = vsel %vm759_vm7, %v657_v36, %v887_v43  ;;  %698 = vmatmul.bf16.gmra.mxu3 %v1695_v30 }
 0x116   :  { %v1115_v49 = vpack.c.bf16 %v1015_v48, %v1014_v44  ;;  %v1016_v51 = vsel %vm760_vm8, %v393_v37, %v888_v45  ;;  %v1017_v53 = vsel %vm761_vm9, %v482_v40, %v889_v46 }
 0x117   :  { %1908 = vst [vmem:[%s2626_s5 + $0x30] sm:$0xff] %v1841_v47   ;;  %v1116_v54 = vpack.c.bf16 %v1017_v53, %v1016_v51  ;;  %v570_v55 = vpop.f32.mrf.mxu2 }
 0x118   :  { %v1389_v56 = vrot.slane %v1115_v49, 4  ;;  %v571_v57 = vadd.f32 %v570_v55, %v2181_v50  ;;  %v659_v58 = vpop.f32.mrf.mxu3  ;;  %v394_v59 = vpop.f32.mrf.mxu0 }
 0x119   :  { %v1230_v60 = vrot.slane %v1116_v54, 4  ;;  %v660_v61 = vadd.f32 %v659_v58, %v2183_v52  ;;  %v395_v62 = vadd.f32 %v394_v59, %v2172_v41  ;;  %v483_v63 = vpop.f32.mrf.mxu1 }
 0x11a   :  { %1453 = vst [vmem:[%s2625_s6 + $0x34] sm:$0xf] %v1389_v56  ;;  %vm762_vm10 = vcmp.ge.f32.partialorder %v571_v57, 0.0  ;;  %v890_v0 = vmul.f32 0.1, %v571_v57  ;;  %v484_v1 = vadd.f32 %v483_v63, %v2174_v42 }
 0x11b   :  { %1294 = vst [vmem:[%s2623_s4 + $0x38] sm:$0xf] %v1230_v60  ;;  %vm763_vm11 = vcmp.ge.f32.partialorder %v660_v61, 0.0  ;;  %v891_v2 = vmul.f32 0.1, %v660_v61  ;;  %vm764_vm12 = vcmp.ge.f32.partialorder %v395_v62, 0.0 }
 0x11c   :  { %v1018_v3 = vsel %vm762_vm10, %v571_v57, %v890_v0  ;;  %v892_v4 = vmul.f32 0.1, %v395_v62  ;;  %vm765_vm13 = vcmp.ge.f32.partialorder %v484_v1, 0.0  ;;  %v893_v5 = vmul.f32 0.1, %v484_v1 }
 0x11d   :  { %v1019_v6 = vsel %vm763_vm11, %v660_v61, %v891_v2 }
 0x11e   :  { %v1117_v7 = vpack.c.bf16 %v1019_v6, %v1018_v3  ;;  %v1020_v8 = vsel %vm764_vm12, %v395_v62, %v892_v4  ;;  %v1021_v9 = vsel %vm765_vm13, %v484_v1, %v893_v5 }
 0x11f   :  { %v1766_v10 = vpack.c.bf16 %v1020_v8, %v1016_v51  ;;  %v1118_v11 = vpack.c.bf16 %v1021_v9, %v1020_v8  ;;  %v572_v12 = vpop.f32.mrf.mxu2 }
 0x120   :  { %v1390_v13 = vrot.slane %v1117_v7, 4  ;;  %v573_v14 = vadd.f32 %v572_v12, %v2181_v50  ;;  %v661_v15 = vpop.f32.mrf.mxu3  ;;  %v397_v16 = vpop.f32.mrf.mxu0 }
 0x121   :  { %1894 = vst [vmem:[%s2624_s3 + $0x38] sm:$0xff] %v1766_v10   ;;  %v1231_v17 = vrot.slane %v1118_v11, 4  ;;  %v662_v18 = vadd.f32 %v661_v15, %v2183_v52  ;;  %v398_v19 = vadd.f32 %v397_v16, %v2172_v41  ;;  %v486_v20 = vpop.f32.mrf.mxu1 }
 0x122   :  { %1454 = vst [vmem:[%s2625_s6 + $0x38] sm:$0xf] %v1390_v13  ;;  %vm766_vm14 = vcmp.ge.f32.partialorder %v573_v14, 0.0  ;;  %v894_v21 = vmul.f32 0.1, %v573_v14  ;;  %v487_v22 = vadd.f32 %v486_v20, %v2174_v42 }
 0x123   :  { %1295 = vst [vmem:[%s2623_s4 + $0x3c] sm:$0xf] %v1231_v17  ;;  %vm767_vm15 = vcmp.ge.f32.partialorder %v662_v18, 0.0  ;;  %v895_v23 = vmul.f32 0.1, %v662_v18  ;;  %vm768_vm0 = vcmp.ge.f32.partialorder %v398_v19, 0.0 }
 0x124   :  { %v1022_v24 = vsel %vm766_vm14, %v573_v14, %v894_v21  ;;  %v896_v25 = vmul.f32 0.1, %v398_v19  ;;  %vm769_vm1 = vcmp.ge.f32.partialorder %v487_v22, 0.0  ;;  %v897_v26 = vmul.f32 0.1, %v487_v22 }
 0x125   :  { %v1846_v27 = vpack.c.bf16 %v1022_v24, %v1018_v3  ;;  %v1023_v28 = vsel %vm767_vm15, %v662_v18, %v895_v23 }
 0x126   :  { %v1119_v29 = vpack.c.bf16 %v1023_v28, %v1022_v24  ;;  %v1024_v30 = vsel %vm768_vm0, %v398_v19, %v896_v25  ;;  %v1025_v31 = vsel %vm769_vm1, %v487_v22, %v897_v26 }
 0x127   :  { %1909 = vst [vmem:[%s2626_s5 + $0x38] sm:$0xff] %v1846_v27   ;;  %v1120_v32 = vpack.c.bf16 %v1025_v31, %v1024_v30  ;;  %v575_v33 = vpop.f32.mrf.mxu2 }
 0x128   :  { %v1391_v34 = vrot.slane %v1119_v29, 4  ;;  %v576_v35 = vadd.f32 %v575_v33, %v2181_v50  ;;  %v664_v36 = vpop.f32.mrf.mxu3  ;;  %v399_v37 = vpop.f32.mrf.mxu0 }
 0x129   :  { %v1232_v38 = vrot.slane %v1120_v32, 4  ;;  %v665_v39 = vadd.f32 %v664_v36, %v2183_v52  ;;  %v400_v40 = vadd.f32 %v399_v37, %v2172_v41  ;;  %v488_v43 = vpop.f32.mrf.mxu1 }
 0x12a   :  { %1455 = vst [vmem:[%s2625_s6 + $0x3c] sm:$0xf] %v1391_v34  ;;  %vm770_vm2 = vcmp.ge.f32.partialorder %v576_v35, 0.0  ;;  %v898_v44 = vmul.f32 0.1, %v576_v35  ;;  %v489_v45 = vadd.f32 %v488_v43, %v2174_v42 }
 0x12b   :  { %1296 = vst [vmem:[%s2623_s4 + $0x40] sm:$0xf] %v1232_v38  ;;  %vm771_vm3 = vcmp.ge.f32.partialorder %v665_v39, 0.0  ;;  %v899_v46 = vmul.f32 0.1, %v665_v39  ;;  %vm772_vm4 = vcmp.ge.f32.partialorder %v400_v40, 0.0 }
 0x12c   :  { %v1026_v47 = vsel %vm770_vm2, %v576_v35, %v898_v44  ;;  %v900_v48 = vmul.f32 0.1, %v400_v40  ;;  %vm773_vm5 = vcmp.ge.f32.partialorder %v489_v45, 0.0  ;;  %v901_v49 = vmul.f32 0.1, %v489_v45 }
 0x12d   :  { %v1027_v51 = vsel %vm771_vm3, %v665_v39, %v899_v46 }
 0x12e   :  { %v1121_v53 = vpack.c.bf16 %v1027_v51, %v1026_v47  ;;  %v1028_v54 = vsel %vm772_vm4, %v400_v40, %v900_v48  ;;  %v1029_v55 = vsel %vm773_vm5, %v489_v45, %v901_v49 }
 0x12f   :  { %v1771_v56 = vpack.c.bf16 %v1028_v54, %v1024_v30  ;;  %v1122_v57 = vpack.c.bf16 %v1029_v55, %v1028_v54  ;;  %v577_v58 = vpop.f32.mrf.mxu2 }
 0x130   :  { %v1392_v59 = vrot.slane %v1121_v53, 4  ;;  %v578_v60 = vadd.f32 %v577_v58, %v2181_v50  ;;  %v666_v61 = vpop.f32.mrf.mxu3  ;;  %v402_v62 = vpop.f32.mrf.mxu0 }
 0x131   :  { %1895 = vst [vmem:[%s2624_s3 + $0x40] sm:$0xff] %v1771_v56   ;;  %v1233_v63 = vrot.slane %v1122_v57, 4  ;;  %v667_v0 = vadd.f32 %v666_v61, %v2183_v52  ;;  %v403_v1 = vadd.f32 %v402_v62, %v2172_v41  ;;  %v491_v2 = vpop.f32.mrf.mxu1 }
 0x132   :  { %1456 = vst [vmem:[%s2625_s6 + $0x40] sm:$0xf] %v1392_v59  ;;  %vm774_vm6 = vcmp.ge.f32.partialorder %v578_v60, 0.0  ;;  %v902_v3 = vmul.f32 0.1, %v578_v60  ;;  %v492_v4 = vadd.f32 %v491_v2, %v2174_v42 }
 0x133   :  { %1297 = vst [vmem:[%s2623_s4 + $0x44] sm:$0xf] %v1233_v63  ;;  %vm775_vm7 = vcmp.ge.f32.partialorder %v667_v0, 0.0  ;;  %v903_v5 = vmul.f32 0.1, %v667_v0  ;;  %vm776_vm8 = vcmp.ge.f32.partialorder %v403_v1, 0.0 }
 0x134   :  { %v1030_v6 = vsel %vm774_vm6, %v578_v60, %v902_v3  ;;  %v904_v7 = vmul.f32 0.1, %v403_v1  ;;  %vm777_vm9 = vcmp.ge.f32.partialorder %v492_v4, 0.0  ;;  %v905_v8 = vmul.f32 0.1, %v492_v4 }
 0x135   :  { %v1851_v9 = vpack.c.bf16 %v1030_v6, %v1026_v47  ;;  %v1031_v10 = vsel %vm775_vm7, %v667_v0, %v903_v5 }
 0x136   :  { %v1123_v11 = vpack.c.bf16 %v1031_v10, %v1030_v6  ;;  %v1032_v12 = vsel %vm776_vm8, %v403_v1, %v904_v7  ;;  %v1033_v13 = vsel %vm777_vm9, %v492_v4, %v905_v8 }
 0x137   :  { %1910 = vst [vmem:[%s2626_s5 + $0x40] sm:$0xff] %v1851_v9   ;;  %v1124_v14 = vpack.c.bf16 %v1033_v13, %v1032_v12  ;;  %v580_v15 = vpop.f32.mrf.mxu2 }
 0x138   :  { %v1393_v16 = vrot.slane %v1123_v11, 4  ;;  %v581_v17 = vadd.f32 %v580_v15, %v2181_v50  ;;  %v669_v18 = vpop.f32.mrf.mxu3  ;;  %v404_v19 = vpop.f32.mrf.mxu0 }
 0x139   :  { %v1234_v20 = vrot.slane %v1124_v14, 4  ;;  %v670_v21 = vadd.f32 %v669_v18, %v2183_v52  ;;  %v405_v22 = vadd.f32 %v404_v19, %v2172_v41  ;;  %v493_v23 = vpop.f32.mrf.mxu1 }
 0x13a   :  { %1457 = vst [vmem:[%s2625_s6 + $0x44] sm:$0xf] %v1393_v16  ;;  %vm778_vm10 = vcmp.ge.f32.partialorder %v581_v17, 0.0  ;;  %v906_v24 = vmul.f32 0.1, %v581_v17  ;;  %v494_v25 = vadd.f32 %v493_v23, %v2174_v42 }
 0x13b   :  { %1298 = vst [vmem:[%s2623_s4 + $0x48] sm:$0xf] %v1234_v20  ;;  %vm779_vm11 = vcmp.ge.f32.partialorder %v670_v21, 0.0  ;;  %v907_v26 = vmul.f32 0.1, %v670_v21  ;;  %vm780_vm12 = vcmp.ge.f32.partialorder %v405_v22, 0.0 }
 0x13c   :  { %v1034_v27 = vsel %vm778_vm10, %v581_v17, %v906_v24  ;;  %v908_v28 = vmul.f32 0.1, %v405_v22  ;;  %vm781_vm13 = vcmp.ge.f32.partialorder %v494_v25, 0.0  ;;  %v909_v29 = vmul.f32 0.1, %v494_v25 }
 0x13d   :  { %v1035_v30 = vsel %vm779_vm11, %v670_v21, %v907_v26 }
 0x13e   :  { %v1125_v31 = vpack.c.bf16 %v1035_v30, %v1034_v27  ;;  %v1036_v32 = vsel %vm780_vm12, %v405_v22, %v908_v28  ;;  %v1037_v33 = vsel %vm781_vm13, %v494_v25, %v909_v29 }
 0x13f   :  { %v1776_v34 = vpack.c.bf16 %v1036_v32, %v1032_v12  ;;  %v1126_v35 = vpack.c.bf16 %v1037_v33, %v1036_v32  ;;  %v582_v36 = vpop.f32.mrf.mxu2 }
 0x140   :  { %v1394_v37 = vrot.slane %v1125_v31, 4  ;;  %v583_v38 = vadd.f32 %v582_v36, %v2181_v50  ;;  %v671_v39 = vpop.f32.mrf.mxu3  ;;  %v407_v40 = vpop.f32.mrf.mxu0 }
 0x141   :  { %1896 = vst [vmem:[%s2624_s3 + $0x48] sm:$0xff] %v1776_v34   ;;  %v1235_v43 = vrot.slane %v1126_v35, 4  ;;  %v672_v44 = vadd.f32 %v671_v39, %v2183_v52  ;;  %v408_v45 = vadd.f32 %v407_v40, %v2172_v41  ;;  %v496_v46 = vpop.f32.mrf.mxu1 }
 0x142   :  { %1458 = vst [vmem:[%s2625_s6 + $0x48] sm:$0xf] %v1394_v37  ;;  %vm782_vm14 = vcmp.ge.f32.partialorder %v583_v38, 0.0  ;;  %v910_v47 = vmul.f32 0.1, %v583_v38  ;;  %v497_v48 = vadd.f32 %v496_v46, %v2174_v42 }
 0x143   :  { %1299 = vst [vmem:[%s2623_s4 + $0x4c] sm:$0xf] %v1235_v43  ;;  %vm783_vm15 = vcmp.ge.f32.partialorder %v672_v44, 0.0  ;;  %v911_v49 = vmul.f32 0.1, %v672_v44  ;;  %vm784_vm0 = vcmp.ge.f32.partialorder %v408_v45, 0.0 }
 0x144   :  { %v1038_v51 = vsel %vm782_vm14, %v583_v38, %v910_v47  ;;  %v912_v53 = vmul.f32 0.1, %v408_v45  ;;  %vm785_vm1 = vcmp.ge.f32.partialorder %v497_v48, 0.0  ;;  %v913_v54 = vmul.f32 0.1, %v497_v48 }
 0x145   :  { %v1856_v55 = vpack.c.bf16 %v1038_v51, %v1034_v27  ;;  %v1039_v56 = vsel %vm783_vm15, %v672_v44, %v911_v49 }
 0x146   :  { %v1127_v57 = vpack.c.bf16 %v1039_v56, %v1038_v51  ;;  %v1040_v58 = vsel %vm784_vm0, %v408_v45, %v912_v53  ;;  %v1041_v59 = vsel %vm785_vm1, %v497_v48, %v913_v54 }
 0x147   :  { %1911 = vst [vmem:[%s2626_s5 + $0x48] sm:$0xff] %v1856_v55   ;;  %v1128_v60 = vpack.c.bf16 %v1041_v59, %v1040_v58  ;;  %v585_v61 = vpop.f32.mrf.mxu2 }
 0x148   :  { %v1395_v62 = vrot.slane %v1127_v57, 4  ;;  %v586_v63 = vadd.f32 %v585_v61, %v2181_v50  ;;  %v674_v0 = vpop.f32.mrf.mxu3  ;;  %v409_v1 = vpop.f32.mrf.mxu0 }
 0x149   :  { %v1236_v2 = vrot.slane %v1128_v60, 4  ;;  %v675_v3 = vadd.f32 %v674_v0, %v2183_v52  ;;  %v410_v4 = vadd.f32 %v409_v1, %v2172_v41  ;;  %v498_v5 = vpop.f32.mrf.mxu1 }
 0x14a   :  { %1459 = vst [vmem:[%s2625_s6 + $0x4c] sm:$0xf] %v1395_v62  ;;  %vm786_vm2 = vcmp.ge.f32.partialorder %v586_v63, 0.0  ;;  %v914_v6 = vmul.f32 0.1, %v586_v63  ;;  %v499_v7 = vadd.f32 %v498_v5, %v2174_v42 }
 0x14b   :  { %1300 = vst [vmem:[%s2623_s4 + $0x50] sm:$0xf] %v1236_v2  ;;  %vm787_vm3 = vcmp.ge.f32.partialorder %v675_v3, 0.0  ;;  %v915_v8 = vmul.f32 0.1, %v675_v3  ;;  %vm788_vm4 = vcmp.ge.f32.partialorder %v410_v4, 0.0 }
 0x14c   :  { %v1042_v9 = vsel %vm786_vm2, %v586_v63, %v914_v6  ;;  %v916_v10 = vmul.f32 0.1, %v410_v4  ;;  %vm789_vm5 = vcmp.ge.f32.partialorder %v499_v7, 0.0  ;;  %v917_v11 = vmul.f32 0.1, %v499_v7 }
 0x14d   :  { %v1043_v12 = vsel %vm787_vm3, %v675_v3, %v915_v8 }
 0x14e   :  { %v1129_v13 = vpack.c.bf16 %v1043_v12, %v1042_v9  ;;  %v1044_v14 = vsel %vm788_vm4, %v410_v4, %v916_v10  ;;  %v1045_v15 = vsel %vm789_vm5, %v499_v7, %v917_v11 }
 0x14f   :  { %v1781_v16 = vpack.c.bf16 %v1044_v14, %v1040_v58  ;;  %v1130_v17 = vpack.c.bf16 %v1045_v15, %v1044_v14  ;;  %v587_v18 = vpop.f32.mrf.mxu2 }
 0x150   :  { %v1396_v19 = vrot.slane %v1129_v13, 4  ;;  %v588_v20 = vadd.f32 %v587_v18, %v2181_v50  ;;  %v676_v21 = vpop.f32.mrf.mxu3  ;;  %v412_v22 = vpop.f32.mrf.mxu0 }
 0x151   :  { %1897 = vst [vmem:[%s2624_s3 + $0x50] sm:$0xff] %v1781_v16   ;;  %v1237_v23 = vrot.slane %v1130_v17, 4  ;;  %v677_v24 = vadd.f32 %v676_v21, %v2183_v52  ;;  %v413_v25 = vadd.f32 %v412_v22, %v2172_v41  ;;  %v501_v26 = vpop.f32.mrf.mxu1 }
 0x152   :  { %1460 = vst [vmem:[%s2625_s6 + $0x50] sm:$0xf] %v1396_v19  ;;  %vm790_vm6 = vcmp.ge.f32.partialorder %v588_v20, 0.0  ;;  %v918_v27 = vmul.f32 0.1, %v588_v20  ;;  %v502_v28 = vadd.f32 %v501_v26, %v2174_v42 }
 0x153   :  { %1301 = vst [vmem:[%s2623_s4 + $0x54] sm:$0xf] %v1237_v23  ;;  %vm791_vm7 = vcmp.ge.f32.partialorder %v677_v24, 0.0  ;;  %v919_v29 = vmul.f32 0.1, %v677_v24  ;;  %vm792_vm8 = vcmp.ge.f32.partialorder %v413_v25, 0.0 }
 0x154   :  { %v1046_v30 = vsel %vm790_vm6, %v588_v20, %v918_v27  ;;  %v920_v31 = vmul.f32 0.1, %v413_v25  ;;  %vm793_vm9 = vcmp.ge.f32.partialorder %v502_v28, 0.0  ;;  %v921_v32 = vmul.f32 0.1, %v502_v28 }
 0x155   :  { %v1861_v33 = vpack.c.bf16 %v1046_v30, %v1042_v9  ;;  %v1047_v34 = vsel %vm791_vm7, %v677_v24, %v919_v29 }
 0x156   :  { %v1131_v35 = vpack.c.bf16 %v1047_v34, %v1046_v30  ;;  %v1048_v36 = vsel %vm792_vm8, %v413_v25, %v920_v31  ;;  %v1049_v37 = vsel %vm793_vm9, %v502_v28, %v921_v32 }
 0x157   :  { %1912 = vst [vmem:[%s2626_s5 + $0x50] sm:$0xff] %v1861_v33   ;;  %v1132_v38 = vpack.c.bf16 %v1049_v37, %v1048_v36  ;;  %v590_v39 = vpop.f32.mrf.mxu2 }
 0x158   :  { %v1397_v40 = vrot.slane %v1131_v35, 4  ;;  %v591_v43 = vadd.f32 %v590_v39, %v2181_v50  ;;  %v679_v44 = vpop.f32.mrf.mxu3  ;;  %v414_v45 = vpop.f32.mrf.mxu0 }
 0x159   :  { %v1238_v46 = vrot.slane %v1132_v38, 4  ;;  %v680_v47 = vadd.f32 %v679_v44, %v2183_v52  ;;  %v415_v48 = vadd.f32 %v414_v45, %v2172_v41  ;;  %v503_v49 = vpop.f32.mrf.mxu1 }
 0x15a   :  { %1461 = vst [vmem:[%s2625_s6 + $0x54] sm:$0xf] %v1397_v40  ;;  %vm794_vm10 = vcmp.ge.f32.partialorder %v591_v43, 0.0  ;;  %v922_v51 = vmul.f32 0.1, %v591_v43  ;;  %v504_v53 = vadd.f32 %v503_v49, %v2174_v42 }
 0x15b   :  { %1302 = vst [vmem:[%s2623_s4 + $0x58] sm:$0xf] %v1238_v46  ;;  %vm795_vm11 = vcmp.ge.f32.partialorder %v680_v47, 0.0  ;;  %v923_v54 = vmul.f32 0.1, %v680_v47  ;;  %vm796_vm12 = vcmp.ge.f32.partialorder %v415_v48, 0.0 }
 0x15c   :  { %v1050_v55 = vsel %vm794_vm10, %v591_v43, %v922_v51  ;;  %v924_v56 = vmul.f32 0.1, %v415_v48  ;;  %vm797_vm13 = vcmp.ge.f32.partialorder %v504_v53, 0.0  ;;  %v925_v57 = vmul.f32 0.1, %v504_v53 }
 0x15d   :  { %v1051_v58 = vsel %vm795_vm11, %v680_v47, %v923_v54 }
 0x15e   :  { %v1133_v59 = vpack.c.bf16 %v1051_v58, %v1050_v55  ;;  %v1052_v60 = vsel %vm796_vm12, %v415_v48, %v924_v56  ;;  %v1053_v61 = vsel %vm797_vm13, %v504_v53, %v925_v57 }
 0x15f   :  { %v1786_v62 = vpack.c.bf16 %v1052_v60, %v1048_v36  ;;  %v1134_v63 = vpack.c.bf16 %v1053_v61, %v1052_v60  ;;  %v592_v0 = vpop.f32.mrf.mxu2 }
 0x160   :  { %v1398_v1 = vrot.slane %v1133_v59, 4  ;;  %v593_v2 = vadd.f32 %v592_v0, %v2181_v50  ;;  %v681_v3 = vpop.f32.mrf.mxu3  ;;  %v417_v4 = vpop.f32.mrf.mxu0 }
 0x161   :  { %1898 = vst [vmem:[%s2624_s3 + $0x58] sm:$0xff] %v1786_v62   ;;  %v1239_v5 = vrot.slane %v1134_v63, 4  ;;  %v682_v6 = vadd.f32 %v681_v3, %v2183_v52  ;;  %v418_v7 = vadd.f32 %v417_v4, %v2172_v41  ;;  %v506_v8 = vpop.f32.mrf.mxu1 }
 0x162   :  { %1462 = vst [vmem:[%s2625_s6 + $0x58] sm:$0xf] %v1398_v1  ;;  %vm798_vm14 = vcmp.ge.f32.partialorder %v593_v2, 0.0  ;;  %v926_v9 = vmul.f32 0.1, %v593_v2  ;;  %v507_v10 = vadd.f32 %v506_v8, %v2174_v42 }
 0x163   :  { %1303 = vst [vmem:[%s2623_s4 + $0x5c] sm:$0xf] %v1239_v5  ;;  %vm799_vm15 = vcmp.ge.f32.partialorder %v682_v6, 0.0  ;;  %v927_v11 = vmul.f32 0.1, %v682_v6  ;;  %vm800_vm0 = vcmp.ge.f32.partialorder %v418_v7, 0.0 }
 0x164   :  { %v1054_v12 = vsel %vm798_vm14, %v593_v2, %v926_v9  ;;  %v928_v13 = vmul.f32 0.1, %v418_v7  ;;  %vm801_vm1 = vcmp.ge.f32.partialorder %v507_v10, 0.0  ;;  %v929_v14 = vmul.f32 0.1, %v507_v10 }
 0x165   :  { %v1866_v15 = vpack.c.bf16 %v1054_v12, %v1050_v55  ;;  %v1055_v16 = vsel %vm799_vm15, %v682_v6, %v927_v11 }
 0x166   :  { %v1135_v17 = vpack.c.bf16 %v1055_v16, %v1054_v12  ;;  %v1056_v18 = vsel %vm800_vm0, %v418_v7, %v928_v13  ;;  %v1057_v19 = vsel %vm801_vm1, %v507_v10, %v929_v14 }
 0x167   :  { %1913 = vst [vmem:[%s2626_s5 + $0x58] sm:$0xff] %v1866_v15   ;;  %v1136_v20 = vpack.c.bf16 %v1057_v19, %v1056_v18  ;;  %v595_v21 = vpop.f32.mrf.mxu2 }
 0x168   :  { %v1399_v22 = vrot.slane %v1135_v17, 4  ;;  %v596_v23 = vadd.f32 %v595_v21, %v2181_v50  ;;  %v684_v24 = vpop.f32.mrf.mxu3  ;;  %v419_v25 = vpop.f32.mrf.mxu0 }
 0x169   :  { %v1240_v26 = vrot.slane %v1136_v20, 4  ;;  %v685_v27 = vadd.f32 %v684_v24, %v2183_v52  ;;  %v420_v28 = vadd.f32 %v419_v25, %v2172_v41  ;;  %v508_v29 = vpop.f32.mrf.mxu1 }
 0x16a   :  { %1463 = vst [vmem:[%s2625_s6 + $0x5c] sm:$0xf] %v1399_v22  ;;  %vm802_vm2 = vcmp.ge.f32.partialorder %v596_v23, 0.0  ;;  %v930_v30 = vmul.f32 0.1, %v596_v23  ;;  %v509_v31 = vadd.f32 %v508_v29, %v2174_v42 }
 0x16b   :  { %1304 = vst [vmem:[%s2623_s4 + $0x60] sm:$0xf] %v1240_v26  ;;  %vm803_vm3 = vcmp.ge.f32.partialorder %v685_v27, 0.0  ;;  %v931_v32 = vmul.f32 0.1, %v685_v27  ;;  %vm804_vm4 = vcmp.ge.f32.partialorder %v420_v28, 0.0 }
 0x16c   :  { %v1058_v33 = vsel %vm802_vm2, %v596_v23, %v930_v30  ;;  %v932_v34 = vmul.f32 0.1, %v420_v28  ;;  %vm805_vm5 = vcmp.ge.f32.partialorder %v509_v31, 0.0  ;;  %v933_v35 = vmul.f32 0.1, %v509_v31 }
 0x16d   :  { %v1059_v36 = vsel %vm803_vm3, %v685_v27, %v931_v32 }
 0x16e   :  { %v1137_v37 = vpack.c.bf16 %v1059_v36, %v1058_v33  ;;  %v1060_v38 = vsel %vm804_vm4, %v420_v28, %v932_v34  ;;  %v1061_v39 = vsel %vm805_vm5, %v509_v31, %v933_v35 }
 0x16f   :  { %v1791_v40 = vpack.c.bf16 %v1060_v38, %v1056_v18  ;;  %v1138_v43 = vpack.c.bf16 %v1061_v39, %v1060_v38  ;;  %v597_v44 = vpop.f32.mrf.mxu2 }
 0x170   :  { %v1400_v45 = vrot.slane %v1137_v37, 4  ;;  %v598_v46 = vadd.f32 %v597_v44, %v2181_v50  ;;  %v686_v47 = vpop.f32.mrf.mxu3  ;;  %v422_v48 = vpop.f32.mrf.mxu0 }
 0x171   :  { %1899 = vst [vmem:[%s2624_s3 + $0x60] sm:$0xff] %v1791_v40   ;;  %v1241_v49 = vrot.slane %v1138_v43, 4  ;;  %v687_v51 = vadd.f32 %v686_v47, %v2183_v52  ;;  %v423_v53 = vadd.f32 %v422_v48, %v2172_v41  ;;  %v511_v54 = vpop.f32.mrf.mxu1 }
 0x172   :  { %1464 = vst [vmem:[%s2625_s6 + $0x60] sm:$0xf] %v1400_v45  ;;  %vm806_vm6 = vcmp.ge.f32.partialorder %v598_v46, 0.0  ;;  %v934_v55 = vmul.f32 0.1, %v598_v46  ;;  %v512_v56 = vadd.f32 %v511_v54, %v2174_v42 }
 0x173   :  { %1305 = vst [vmem:[%s2623_s4 + $0x64] sm:$0xf] %v1241_v49  ;;  %vm807_vm7 = vcmp.ge.f32.partialorder %v687_v51, 0.0  ;;  %v935_v57 = vmul.f32 0.1, %v687_v51  ;;  %vm808_vm8 = vcmp.ge.f32.partialorder %v423_v53, 0.0 }
 0x174   :  { %v1062_v58 = vsel %vm806_vm6, %v598_v46, %v934_v55  ;;  %v936_v59 = vmul.f32 0.1, %v423_v53  ;;  %vm809_vm9 = vcmp.ge.f32.partialorder %v512_v56, 0.0  ;;  %v937_v60 = vmul.f32 0.1, %v512_v56 }
 0x175   :  { %v1871_v61 = vpack.c.bf16 %v1062_v58, %v1058_v33  ;;  %v1063_v62 = vsel %vm807_vm7, %v687_v51, %v935_v57 }
 0x176   :  { %v1139_v63 = vpack.c.bf16 %v1063_v62, %v1062_v58  ;;  %v1064_v0 = vsel %vm808_vm8, %v423_v53, %v936_v59  ;;  %v1065_v1 = vsel %vm809_vm9, %v512_v56, %v937_v60 }
 0x177   :  { %1914 = vst [vmem:[%s2626_s5 + $0x60] sm:$0xff] %v1871_v61   ;;  %v1140_v2 = vpack.c.bf16 %v1065_v1, %v1064_v0  ;;  %v600_v3 = vpop.f32.mrf.mxu2 }
 0x178   :  { %v1401_v4 = vrot.slane %v1139_v63, 4  ;;  %v601_v5 = vadd.f32 %v600_v3, %v2181_v50  ;;  %v689_v6 = vpop.f32.mrf.mxu3  ;;  %v424_v7 = vpop.f32.mrf.mxu0 }
 0x179   :  { %v1242_v8 = vrot.slane %v1140_v2, 4  ;;  %v690_v9 = vadd.f32 %v689_v6, %v2183_v52  ;;  %v425_v10 = vadd.f32 %v424_v7, %v2172_v41  ;;  %v513_v11 = vpop.f32.mrf.mxu1 }
 0x17a   :  { %1465 = vst [vmem:[%s2625_s6 + $0x64] sm:$0xf] %v1401_v4  ;;  %vm810_vm10 = vcmp.ge.f32.partialorder %v601_v5, 0.0  ;;  %v938_v12 = vmul.f32 0.1, %v601_v5  ;;  %v514_v13 = vadd.f32 %v513_v11, %v2174_v42 }
 0x17b   :  { %1306 = vst [vmem:[%s2623_s4 + $0x68] sm:$0xf] %v1242_v8  ;;  %vm811_vm11 = vcmp.ge.f32.partialorder %v690_v9, 0.0  ;;  %v939_v14 = vmul.f32 0.1, %v690_v9  ;;  %vm812_vm12 = vcmp.ge.f32.partialorder %v425_v10, 0.0 }
 0x17c   :  { %v1066_v15 = vsel %vm810_vm10, %v601_v5, %v938_v12  ;;  %v940_v16 = vmul.f32 0.1, %v425_v10  ;;  %vm813_vm13 = vcmp.ge.f32.partialorder %v514_v13, 0.0  ;;  %v941_v17 = vmul.f32 0.1, %v514_v13 }
 0x17d   :  { %v1067_v18 = vsel %vm811_vm11, %v690_v9, %v939_v14 }
 0x17e   :  { %v1141_v19 = vpack.c.bf16 %v1067_v18, %v1066_v15  ;;  %v1068_v20 = vsel %vm812_vm12, %v425_v10, %v940_v16  ;;  %v1069_v21 = vsel %vm813_vm13, %v514_v13, %v941_v17 }
 0x17f   :  { %v1796_v22 = vpack.c.bf16 %v1068_v20, %v1064_v0  ;;  %v1142_v23 = vpack.c.bf16 %v1069_v21, %v1068_v20  ;;  %v602_v24 = vpop.f32.mrf.mxu2 }
 0x180   :  { %v1402_v25 = vrot.slane %v1141_v19, 4  ;;  %v603_v26 = vadd.f32 %v602_v24, %v2181_v50  ;;  %v691_v27 = vpop.f32.mrf.mxu3  ;;  %v427_v28 = vpop.f32.mrf.mxu0 }
 0x181   :  { %1900 = vst [vmem:[%s2624_s3 + $0x68] sm:$0xff] %v1796_v22   ;;  %v1243_v29 = vrot.slane %v1142_v23, 4  ;;  %v692_v30 = vadd.f32 %v691_v27, %v2183_v52  ;;  %v428_v31 = vadd.f32 %v427_v28, %v2172_v41  ;;  %v516_v32 = vpop.f32.mrf.mxu1 }
 0x182   :  { %1466 = vst [vmem:[%s2625_s6 + $0x68] sm:$0xf] %v1402_v25  ;;  %vm814_vm14 = vcmp.ge.f32.partialorder %v603_v26, 0.0  ;;  %v942_v33 = vmul.f32 0.1, %v603_v26  ;;  %v517_v34 = vadd.f32 %v516_v32, %v2174_v42 }
 0x183   :  { %1307 = vst [vmem:[%s2623_s4 + $0x6c] sm:$0xf] %v1243_v29  ;;  %vm815_vm15 = vcmp.ge.f32.partialorder %v692_v30, 0.0  ;;  %v943_v35 = vmul.f32 0.1, %v692_v30  ;;  %vm816_vm0 = vcmp.ge.f32.partialorder %v428_v31, 0.0 }
 0x184   :  { %v1070_v36 = vsel %vm814_vm14, %v603_v26, %v942_v33  ;;  %v944_v37 = vmul.f32 0.1, %v428_v31  ;;  %vm817_vm1 = vcmp.ge.f32.partialorder %v517_v34, 0.0  ;;  %v945_v38 = vmul.f32 0.1, %v517_v34 }
 0x185   :  { %v1876_v39 = vpack.c.bf16 %v1070_v36, %v1066_v15  ;;  %v1071_v40 = vsel %vm815_vm15, %v692_v30, %v943_v35 }
 0x186   :  { %v1143_v43 = vpack.c.bf16 %v1071_v40, %v1070_v36  ;;  %v1072_v44 = vsel %vm816_vm0, %v428_v31, %v944_v37  ;;  %v1073_v45 = vsel %vm817_vm1, %v517_v34, %v945_v38 }
 0x187   :  { %1915 = vst [vmem:[%s2626_s5 + $0x68] sm:$0xff] %v1876_v39   ;;  %v1144_v46 = vpack.c.bf16 %v1073_v45, %v1072_v44  ;;  %v605_v47 = vpop.f32.mrf.mxu2 }
 0x188   :  { %v1403_v48 = vrot.slane %v1143_v43, 4  ;;  %v606_v49 = vadd.f32 %v605_v47, %v2181_v50  ;;  %v694_v51 = vpop.f32.mrf.mxu3  ;;  %v429_v53 = vpop.f32.mrf.mxu0 }
 0x189   :  { %v1244_v54 = vrot.slane %v1144_v46, 4  ;;  %v695_v55 = vadd.f32 %v694_v51, %v2183_v52  ;;  %v430_v56 = vadd.f32 %v429_v53, %v2172_v41  ;;  %v518_v57 = vpop.f32.mrf.mxu1 }
 0x18a   :  { %1467 = vst [vmem:[%s2625_s6 + $0x6c] sm:$0xf] %v1403_v48  ;;  %vm818_vm2 = vcmp.ge.f32.partialorder %v606_v49, 0.0  ;;  %v946_v58 = vmul.f32 0.1, %v606_v49  ;;  %v519_v59 = vadd.f32 %v518_v57, %v2174_v42 }
 0x18b   :  { %1308 = vst [vmem:[%s2623_s4 + $0x70] sm:$0xf] %v1244_v54  ;;  %vm819_vm3 = vcmp.ge.f32.partialorder %v695_v55, 0.0  ;;  %v947_v60 = vmul.f32 0.1, %v695_v55  ;;  %vm820_vm4 = vcmp.ge.f32.partialorder %v430_v56, 0.0 }
 0x18c   :  { %v1074_v61 = vsel %vm818_vm2, %v606_v49, %v946_v58  ;;  %v948_v62 = vmul.f32 0.1, %v430_v56  ;;  %vm821_vm5 = vcmp.ge.f32.partialorder %v519_v59, 0.0  ;;  %v949_v63 = vmul.f32 0.1, %v519_v59 }
 0x18d   :  { %v1075_v0 = vsel %vm819_vm3, %v695_v55, %v947_v60 }
 0x18e   :  { %v1145_v1 = vpack.c.bf16 %v1075_v0, %v1074_v61  ;;  %v1076_v2 = vsel %vm820_vm4, %v430_v56, %v948_v62  ;;  %v1077_v3 = vsel %vm821_vm5, %v519_v59, %v949_v63 }
 0x18f   :  { %v1801_v4 = vpack.c.bf16 %v1076_v2, %v1072_v44  ;;  %v1146_v5 = vpack.c.bf16 %v1077_v3, %v1076_v2  ;;  %v607_v6 = vpop.f32.mrf.mxu2 }
 0x190   :  { %v1404_v7 = vrot.slane %v1145_v1, 4  ;;  %v608_v8 = vadd.f32 %v607_v6, %v2181_v50  ;;  %v696_v9 = vpop.f32.mrf.mxu3  ;;  %v432_v10 = vpop.f32.mrf.mxu0 }
 0x191   :  { %1901 = vst [vmem:[%s2624_s3 + $0x70] sm:$0xff] %v1801_v4   ;;  %v1245_v11 = vrot.slane %v1146_v5, 4  ;;  %v697_v12 = vadd.f32 %v696_v9, %v2183_v52  ;;  %v433_v13 = vadd.f32 %v432_v10, %v2172_v41  ;;  %v521_v14 = vpop.f32.mrf.mxu1 }
 0x192   :  { %1468 = vst [vmem:[%s2625_s6 + $0x70] sm:$0xf] %v1404_v7  ;;  %vm822_vm6 = vcmp.ge.f32.partialorder %v608_v8, 0.0  ;;  %v950_v15 = vmul.f32 0.1, %v608_v8  ;;  %v522_v16 = vadd.f32 %v521_v14, %v2174_v42 }
 0x193   :  { %1309 = vst [vmem:[%s2623_s4 + $0x74] sm:$0xf] %v1245_v11  ;;  %vm823_vm7 = vcmp.ge.f32.partialorder %v697_v12, 0.0  ;;  %v951_v17 = vmul.f32 0.1, %v697_v12  ;;  %vm824_vm8 = vcmp.ge.f32.partialorder %v433_v13, 0.0 }
 0x194   :  { %v1078_v18 = vsel %vm822_vm6, %v608_v8, %v950_v15  ;;  %v952_v19 = vmul.f32 0.1, %v433_v13  ;;  %vm825_vm9 = vcmp.ge.f32.partialorder %v522_v16, 0.0  ;;  %v953_v20 = vmul.f32 0.1, %v522_v16 }
 0x195   :  { %v1881_v21 = vpack.c.bf16 %v1078_v18, %v1074_v61  ;;  %v1079_v22 = vsel %vm823_vm7, %v697_v12, %v951_v17 }
 0x196   :  { %v1147_v23 = vpack.c.bf16 %v1079_v22, %v1078_v18  ;;  %v1080_v24 = vsel %vm824_vm8, %v433_v13, %v952_v19  ;;  %v1081_v25 = vsel %vm825_vm9, %v522_v16, %v953_v20 }
 0x197   :  { %1916 = vst [vmem:[%s2626_s5 + $0x70] sm:$0xff] %v1881_v21   ;;  %v1148_v26 = vpack.c.bf16 %v1081_v25, %v1080_v24  ;;  %v610_v27 = vpop.f32.mrf.mxu2 }
 0x198   :  { %v1405_v28 = vrot.slane %v1147_v23, 4  ;;  %v611_v29 = vadd.f32 %v610_v27, %v2181_v50  ;;  %v699_v30 = vpop.f32.mrf.mxu3  ;;  %v434_v31 = vpop.f32.mrf.mxu0 }
 0x199   :  { %v1246_v32 = vrot.slane %v1148_v26, 4  ;;  %v700_v33 = vadd.f32 %v699_v30, %v2183_v52  ;;  %v435_v34 = vadd.f32 %v434_v31, %v2172_v41  ;;  %v523_v35 = vpop.f32.mrf.mxu1 }
 0x19a   :  { %1469 = vst [vmem:[%s2625_s6 + $0x74] sm:$0xf] %v1405_v28  ;;  %vm826_vm10 = vcmp.ge.f32.partialorder %v611_v29, 0.0  ;;  %v954_v36 = vmul.f32 0.1, %v611_v29  ;;  %v524_v37 = vadd.f32 %v523_v35, %v2174_v42 }
 0x19b   :  { %1310 = vst [vmem:[%s2623_s4 + $0x78] sm:$0xf] %v1246_v32  ;;  %vm827_vm11 = vcmp.ge.f32.partialorder %v700_v33, 0.0  ;;  %v955_v38 = vmul.f32 0.1, %v700_v33  ;;  %vm828_vm12 = vcmp.ge.f32.partialorder %v435_v34, 0.0 }
 0x19c   :  { %v1082_v39 = vsel %vm826_vm10, %v611_v29, %v954_v36  ;;  %v956_v40 = vmul.f32 0.1, %v435_v34  ;;  %vm829_vm13 = vcmp.ge.f32.partialorder %v524_v37, 0.0  ;;  %v957_v41 = vmul.f32 0.1, %v524_v37 }
 0x19d   :  { %v1083_v43 = vsel %vm827_vm11, %v700_v33, %v955_v38 }
 0x19e   :  { %v1149_v44 = vpack.c.bf16 %v1083_v43, %v1082_v39  ;;  %v1084_v45 = vsel %vm828_vm12, %v435_v34, %v956_v40  ;;  %v1085_v46 = vsel %vm829_vm13, %v524_v37, %v957_v41 }
 0x19f   :  { %v1806_v47 = vpack.c.bf16 %v1084_v45, %v1080_v24  ;;  %v1150_v48 = vpack.c.bf16 %v1085_v46, %v1084_v45  ;;  %v612_v49 = vpop.f32.mrf.mxu2 }
 0x1a0   :  { %v1406_v51 = vrot.slane %v1149_v44, 4  ;;  %v613_v42 = vadd.f32 %v612_v49, %v2181_v50  ;;  %v701_v53 = vpop.f32.mrf.mxu3 }
 0x1a1   :  { %1902 = vst [vmem:[%s2624_s3 + $0x78] sm:$0xff] %v1806_v47   ;;  %v1247_v54 = vrot.slane %v1150_v48, 4  ;;  %v702_v55 = vadd.f32 %v701_v53, %v2183_v52 }
 0x1a2   :  { %1470 = vst [vmem:[%s2625_s6 + $0x78] sm:$0xf] %v1406_v51  ;;  %vm830_vm14 = vcmp.ge.f32.partialorder %v613_v42, 0.0  ;;  %v958_v56 = vmul.f32 0.1, %v613_v42 }
 0x1a3   :  { %1311 = vst [vmem:[%s2623_s4 + $0x7c] sm:$0xf] %v1247_v54  ;;  %vm831_vm15 = vcmp.ge.f32.partialorder %v702_v55, 0.0  ;;  %v959_v50 = vmul.f32 0.1, %v702_v55 }
 0x1a4   :  { %v1086_v57 = vsel %vm830_vm14, %v613_v42, %v958_v56 }
 0x1a5   :  { %v1886_v58 = vpack.c.bf16 %v1086_v57, %v1082_v39  ;;  %v1087_v59 = vsel %vm831_vm15, %v702_v55, %v959_v50 }
 0x1a6   :  { %v1151_v60 = vpack.c.bf16 %v1087_v59, %v1086_v57 }
 0x1a7   :  { %1917 = vst [vmem:[%s2626_s5 + $0x78] sm:$0xff] %v1886_v58  }
 0x1a8   :  { %v1407_v52 = vrot.slane %v1151_v60, 4 }
 0x1aa   :  { %1471 = vst [vmem:[%s2625_s6 + $0x7c] sm:$0xf] %v1407_v52 }

// kernel: semantic_dependency_forward.5
= control target key start
LH: loop header
LB: loop body
LE: loop exit
PB: predicated region body
PF: predicated region fallthrough
CT: control target
= control target key end

     0   :  { %s3798_s21 = smov 0   ;;  %s3800_s22 = smov 0   ;;  %s5681_s0 = inlined_call_operand.vmem [shape: bf16[2,128,128], index: 0, kind: input, shape index: {}]   ;;  %s5682_s1 = inlined_call_operand.vmem [shape: bf16[2,128,128], index: 1, kind: input, shape index: {}]   ;;  %s5683_s2 = inlined_call_operand.vmem [shape: bf16[128,1024], index: 2, kind: input, shape index: {}]   ;;  %s5684_s3 = inlined_call_operand.vmem [shape: bf16[8,128], index: 3, kind: input, shape index: {}]   ;;  %s5685_s4 = inlined_call_operand.vmem [shape: bf16[8,128], index: 4, kind: input, shape index: {}]   ;;  %s5686_s5 = inlined_call_operand.vmem [shape: f32[8,1], index: 5, kind: input, shape index: {}]   ;;  %s5687_s6 = inlined_call_operand.vmem [shape: f32[2,8,128,128], index: 6, kind: output, shape index: {}]  }
   0x1   :  { %s3802_s23 = smov 0  }
   0x2 LB: > { %s25_s24 = sadd.s32 1, %s3749_s22  ;;  %p3087_p0 = scmp.ge.s32.totalorder %s3753_s23, 1  ;;  %s3753_s23 = sphi %s3802_s23, %s16_s23   ;;  %s3749_s22 = sphi %s3800_s22, %s5869_s22   ;;  %s3745_s21 = sphi %s3798_s21, %s5868_s21  }
   0x3   : > { %p26_p1 = scmp.ge.s32.totalorder %s25_s24, 2  ;;  %p274_p2 = scmp.lt.s32.totalorder %s3753_s23, 3 }
   0x5   : > { %s5871_s24 = smov (%p26_p1, %s25_s24), 0  ;;  %p275_p3 = pnand %p3087_p0, %p274_p2 }
   0x7   : > { %278 = sbr.rel (%p275_p3) target bundleno = 734 (0x2de), region = 44 }
   0xc   : > { %v403_v0 = vld [vmem:[%s5684_s3] sm:$0xf]  ;;  %p331_p4 = scmp.lt.s32.totalorder %s3745_s21, 1  ;;  %v3603_v3 = vld [vmem:[%s5683_s2 + $0x1c4] sm:$0xf] }
   0xd   : > { %v3384_v1 = vld [vmem:[%s5683_s2 + $0x1c0] sm:$0xf]  ;;  %459 = vmatpush.bf16.xpose.msra.mxu0 %v403_v0  ;;  %3611 = vmatpush.bf16.xpose.msra.mxu2 %v403_v0  ;;  %v3386_v4 = vld [vmem:[%s5683_s2 + $0x1e0] sm:$0xf0]  ;;  %v3604_v7 = vld [vmem:[%s5683_s2 + $0x1cc] sm:$0xf] }
   0xe   : > { %v3607_v2 = vld [vmem:[%s5683_s2 + $0x1dc] sm:$0xf0]  ;;  %3612 = vmatpush.bf16.xpose.msra.mxu3 %v403_v0  ;;  %s5873_s21 = smov (!%p331_p4, %s3745_s21), 1  ;;  %v3389_v6 = vor.u32 %v3603_v3, %v3386_v4  ;;  %v3394_v8 = vld [vmem:[%s5683_s2 + $0x1e8] sm:$0xf0] }
   0xf   : > { %v3385_v5 = vor.u32 %v3607_v2, %v3384_v1  ;;  %v3397_v9 = vor.u32 %v3604_v7, %v3394_v8  ;;  %v3595_v10 = vld [vmem:[%s5683_s2 + $0x184] sm:$0xf]  ;;  %v3596_v12 = vld [vmem:[%s5683_s2 + $0x18c] sm:$0xf]  ;;  %s3528_s25 = sshll.u32 %s5873_s21, 6 }
  0x10   : > { %v3354_v11 = vld [vmem:[%s5683_s2 + $0x1a0] sm:$0xf0]  ;;  %v3362_v13 = vld [vmem:[%s5683_s2 + $0x1a8] sm:$0xf0]  ;;  %v3352_v14 = vld [vmem:[%s5683_s2 + $0x180] sm:$0xf]  ;;  %s3858_s8 = scalar_lea.vmem %s5681_s0, %s3528_s25  ;;  %s3875_s13 = scalar_lea.vmem %s5682_s1, %s3528_s25 }
  0x11   : > { %v3599_v15 = vld [vmem:[%s5683_s2 + $0x19c] sm:$0xf0]  ;;  %v3867_v17 = vld [vmem:[%s3858_s8 + $0x10] sm:$0xff]  ;;  %v3357_v19 = vor.u32 %v3595_v10, %v3354_v11  ;;  %v3365_v20 = vor.u32 %v3596_v12, %v3362_v13  ;;  %v3878_v21 = vld [vmem:[%s3875_s13 + $0x38] sm:$0xff] }
  0x12   : > { %v3864_v16 = vld [vmem:[%s3858_s8] sm:$0xff]  ;;  %v3870_v18 = vld [vmem:[%s3858_s8 + $0x30] sm:$0xff]  ;;  %v3353_v22 = vor.u32 %v3599_v15, %v3352_v14  ;;  %v3588_v25 = vld [vmem:[%s5683_s2 + $0x14c] sm:$0xf]  ;;  %556 = vmatpush.bf16.msra.mxu1 %v3878_v21 }
  0x13   : > { %v3587_v23 = vld [vmem:[%s5683_s2 + $0x144] sm:$0xf]  ;;  %v3330_v26 = vld [vmem:[%s5683_s2 + $0x168] sm:$0xf0]  ;;  %v3897_v27 = vld [vmem:[%s3875_s13 + $0x30] sm:$0xff] }
  0x14   : > { %v3322_v24 = vld [vmem:[%s5683_s2 + $0x160] sm:$0xf0]  ;;  %460 = vmatmul.bf16.vlgmr.msra.gmra.mxu0 %v3864_v16  ;;  %470 = vmatmul.bf16.vlgmr.msra.gmra.mxu2 %v3867_v17  ;;  %v3333_v29 = vor.u32 %v3588_v25, %v3330_v26  ;;  %v3580_v32 = vld [vmem:[%s5683_s2 + $0x10c] sm:$0xf]  ;;  %v3320_v34 = vld [vmem:[%s5683_s2 + $0x140] sm:$0xf] }
  0x15   : > { %953 = vmatpush.bf16.msrb.mxu2 %v3385_v5  ;;  %1100 = vmatpush.bf16.msrb.mxu0 %v3397_v9  ;;  %v3325_v28 = vor.u32 %v3587_v23, %v3322_v24  ;;  %v3579_v30 = vld [vmem:[%s5683_s2 + $0x104] sm:$0xf]  ;;  %v3298_v33 = vld [vmem:[%s5683_s2 + $0x128] sm:$0xf0]  ;;  %v3591_v35 = vld [vmem:[%s5683_s2 + $0x15c] sm:$0xf0] }
  0x16   : > { %1002 = vmatpush.bf16.msrb.mxu3 %v3389_v6  ;;  %v3290_v31 = vld [vmem:[%s5683_s2 + $0x120] sm:$0xf0]  ;;  %557 = vmatpush.bf16.msra.mxu1 %v3897_v27  ;;  %v3919_v36 = vld [vmem:[%s3875_s13 + $0x28] sm:$0xff]  ;;  %v3321_v37 = vor.u32 %v3591_v35, %v3320_v34  ;;  %v3301_v39 = vor.u32 %v3580_v32, %v3298_v33  ;;  %v3288_v44 = vld [vmem:[%s5683_s2 + $0x100] sm:$0xf] }
  0x17   : > { %490 = vmatmul.bf16.vlgmr.msra.gmra.mxu3 %v3870_v18  ;;  %v3293_v38 = vor.u32 %v3579_v30, %v3290_v31  ;;  %v3571_v40 = vld [vmem:[%s5683_s2 + $0xc4] sm:$0xf]  ;;  %v3572_v42 = vld [vmem:[%s5683_s2 + $0xcc] sm:$0xf]  ;;  %v3583_v45 = vld [vmem:[%s5683_s2 + $0x11c] sm:$0xf0] }
  0x18   : > { %v3258_v41 = vld [vmem:[%s5683_s2 + $0xe0] sm:$0xf0]  ;;  %v3266_v43 = vld [vmem:[%s5683_s2 + $0xe8] sm:$0xf0]  ;;  %v3289_v47 = vor.u32 %v3583_v45, %v3288_v44  ;;  %v3959_v55 = vld [vmem:[%s3858_s8 + $0x18] sm:$0xff] }
  0x19   : > { %1101 = vmatpush.bf16.msrb.mxu0 %v3365_v20  ;;  %954 = vmatpush.bf16.msrb.mxu2 %v3353_v22  ;;  %v3941_v46 = vld [vmem:[%s3875_s13 + $0x20] sm:$0xff]  ;;  %v3944_v48 = vld [vmem:[%s3858_s8 + $0x8] sm:$0xff]  ;;  %v3261_v49 = vor.u32 %v3571_v40, %v3258_v41  ;;  %v3269_v50 = vor.u32 %v3572_v42, %v3266_v43  ;;  %v3969_v58 = vld [vmem:[%s3858_s8 + $0x38] sm:$0xff] }
  0x1a   : > { %1003 = vmatpush.bf16.msrb.mxu3 %v3357_v19  ;;  %558 = vmatpush.bf16.msra.mxu1 %v3919_v36  ;;  %v3563_v51 = vld [vmem:[%s5683_s2 + $0x84] sm:$0xf]  ;;  %v3564_v53 = vld [vmem:[%s5683_s2 + $0x8c] sm:$0xf]  ;;  %v3256_v56 = vld [vmem:[%s5683_s2 + $0xc0] sm:$0xf] }
  0x1b   : > { %v3226_v52 = vld [vmem:[%s5683_s2 + $0xa0] sm:$0xf0]  ;;  %v3234_v54 = vld [vmem:[%s5683_s2 + $0xa8] sm:$0xf0]  ;;  %v3575_v57 = vld [vmem:[%s5683_s2 + $0xdc] sm:$0xf0] }
  0x1c   : > { %v3972_v59 = vld [vmem:[%s3875_s13 + $0x18] sm:$0xff]  ;;  %v3257_v60 = vor.u32 %v3575_v57, %v3256_v56  ;;  %v3229_v61 = vor.u32 %v3563_v51, %v3226_v52  ;;  %v3237_v62 = vor.u32 %v3564_v53, %v3234_v54  ;;  %v3555_v63 = vld [vmem:[%s5683_s2 + $0x44] sm:$0xf]  ;;  %v3224_v0 = vld [vmem:[%s5683_s2 + $0x80] sm:$0xf] }
  0x1d   : > { %1102 = vmatpush.bf16.msrb.mxu0 %v3333_v29  ;;  %955 = vmatpush.bf16.msrb.mxu2 %v3321_v37  ;;  %v3567_v1 = vld [vmem:[%s5683_s2 + $0x9c] sm:$0xf0]  ;;  %v3194_v2 = vld [vmem:[%s5683_s2 + $0x60] sm:$0xf0]  ;;  %v3556_v3 = vld [vmem:[%s5683_s2 + $0x4c] sm:$0xf] }
  0x1e   : > { %1004 = vmatpush.bf16.msrb.mxu3 %v3325_v28  ;;  %559 = vmatpush.bf16.msra.mxu1 %v3941_v46  ;;  %v3202_v4 = vld [vmem:[%s5683_s2 + $0x68] sm:$0xf0]  ;;  %v3225_v5 = vor.u32 %v3567_v1, %v3224_v0  ;;  %v3997_v6 = vld [vmem:[%s3875_s13 + $0x10] sm:$0xff]  ;;  %v3192_v7 = vld [vmem:[%s5683_s2 + $0x40] sm:$0xf]  ;;  %v3197_v9 = vor.u32 %v3555_v63, %v3194_v2  ;;  %v5694_v37 = vmov 0  }
  0x1f   : > { %v3559_v8 = vld [vmem:[%s5683_s2 + $0x5c] sm:$0xf0]  ;;  %v3205_v10 = vor.u32 %v3556_v3, %v3202_v4  ;;  %v3547_v11 = vld [vmem:[%s5683_s2 + $0x4] sm:$0xf]  ;;  %v3548_v13 = vld [vmem:[%s5683_s2 + $0xc] sm:$0xf]  ;;  %3645 = vset.pattern.permute.xlu0 %v5694_v37 }
  0x20   : > { %v3162_v12 = vld [vmem:[%s5683_s2 + $0x20] sm:$0xf0]  ;;  %v3170_v14 = vld [vmem:[%s5683_s2 + $0x28] sm:$0xf0]  ;;  %v3193_v15 = vor.u32 %v3559_v8, %v3192_v7  ;;  %v3160_v23 = vld [vmem:[%s5683_s2] sm:$0xf] }
  0x21   : > { %1103 = vmatpush.bf16.msrb.mxu0 %v3301_v39  ;;  %956 = vmatpush.bf16.msrb.mxu2 %v3289_v47  ;;  %v4019_v19 = vld [vmem:[%s3875_s13 + $0x8] sm:$0xff]  ;;  %v3165_v20 = vor.u32 %v3547_v11, %v3162_v12  ;;  %v3173_v22 = vor.u32 %v3548_v13, %v3170_v14  ;;  %v3551_v24 = vld [vmem:[%s5683_s2 + $0x1c] sm:$0xf0]  ;;  %v3400_v40 = vld [vmem:[%s5683_s2 + $0x1d0] sm:$0xf] }
  0x22   : > { %1005 = vmatpush.bf16.msrb.mxu3 %v3293_v38  ;;  %560 = vmatpush.bf16.msra.mxu1 %v3972_v59  ;;  %v3392_v25 = vld [vmem:[%s5683_s2 + $0x1c8] sm:$0xf]  ;;  %v3161_v28 = vor.u32 %v3551_v24, %v3160_v23  ;;  %v4035_v29 = vld [vmem:[%s3875_s13] sm:$0xff]  ;;  %v3609_v41 = vld [vmem:[%s5683_s2 + $0x1ec] sm:$0xf0] }
  0x23   : > { %v3608_v26 = vld [vmem:[%s5683_s2 + $0x1e4] sm:$0xf0]  ;;  %v4044_v33 = vld [vmem:[%s3858_s8 + $0x20] sm:$0xff]  ;;  %v3605_v42 = vld [vmem:[%s5683_s2 + $0x1d4] sm:$0xf]  ;;  %v3401_v45 = vor.u32 %v3609_v41, %v3400_v40 }
  0x24   : > { %465 = vmatmul.bf16.gmra.mxu0 %v3944_v48  ;;  %475 = vmatmul.bf16.gmra.mxu2 %v3959_v55  ;;  %v3393_v30 = vor.u32 %v3608_v26, %v3392_v25  ;;  %v3360_v31 = vld [vmem:[%s5683_s2 + $0x188] sm:$0xf]  ;;  %v501_v35 = vld [vmem:[%s5685_s4] sm:$0xf]  ;;  %v3402_v47 = vld [vmem:[%s5683_s2 + $0x1f0] sm:$0xf0] }
  0x25   : > { %1104 = vmatpush.bf16.msrb.mxu0 %v3269_v50  ;;  %957 = vmatpush.bf16.msrb.mxu2 %v3257_v60  ;;  %v3600_v32 = vld [vmem:[%s5683_s2 + $0x1a4] sm:$0xf0]  ;;  %v3405_v51 = vor.u32 %v3605_v42, %v3402_v47  ;;  %v3606_v52 = vld [vmem:[%s5683_s2 + $0x1dc] sm:$0xf]  ;;  %v3368_v4 = vld [vmem:[%s5683_s2 + $0x190] sm:$0xf] }
  0x26   : > { %1006 = vmatpush.bf16.msrb.mxu3 %v3261_v49  ;;  %561 = vmatpush.bf16.msra.mxu1 %v3997_v6  ;;  %v3361_v34 = vor.u32 %v3600_v32, %v3360_v31  ;;  %v3328_v38 = vld [vmem:[%s5683_s2 + $0x148] sm:$0xf]  ;;  %v502_v49 = vld [vmem:[%s5686_s5] sm:$0xff]  ;;  %v3410_v53 = vld [vmem:[%s5683_s2 + $0x1f8] sm:$0xf0] }
  0x27   : > { %495 = vmatmul.bf16.gmra.mxu3 %v3969_v58  ;;  %v3592_v39 = vld [vmem:[%s5683_s2 + $0x164] sm:$0xf0]  ;;  %505 = vperm.xlu0 %3645, %v502_v49   ;;  %v3413_v54 = vor.u32 %v3606_v52, %v3410_v53  ;;  %v3597_v7 = vld [vmem:[%s5683_s2 + $0x194] sm:$0xf]  ;;  %v3598_v14 = vld [vmem:[%s5683_s2 + $0x19c] sm:$0xf] }
  0x28   : > { %v3329_v43 = vor.u32 %v3592_v39, %v3328_v38  ;;  %v3296_v44 = vld [vmem:[%s5683_s2 + $0x108] sm:$0xf]  ;;  %v3370_v11 = vld [vmem:[%s5683_s2 + $0x1b0] sm:$0xf0]  ;;  %v3376_v26 = vld [vmem:[%s5683_s2 + $0x198] sm:$0xf] }
  0x29   : > { %1105 = vmatpush.bf16.msrb.mxu0 %v3237_v62  ;;  %958 = vmatpush.bf16.msrb.mxu2 %v3225_v5  ;;  %v3584_v50 = vld [vmem:[%s5683_s2 + $0x124] sm:$0xf0]  ;;  %v3601_v5 = vld [vmem:[%s5683_s2 + $0x1ac] sm:$0xf0]  ;;  %v3373_v13 = vor.u32 %v3597_v7, %v3370_v11  ;;  %v3338_v38 = vld [vmem:[%s5683_s2 + $0x170] sm:$0xf0] }
  0x2a   : > { %1007 = vmatpush.bf16.msrb.mxu3 %v3229_v61  ;;  %562 = vmatpush.bf16.msra.mxu1 %v4019_v19  ;;  %v3297_v56 = vor.u32 %v3584_v50, %v3296_v44  ;;  %v3264_v57 = vld [vmem:[%s5683_s2 + $0xc8] sm:$0xf]  ;;  %v3336_v31 = vld [vmem:[%s5683_s2 + $0x150] sm:$0xf]  ;;  %v3344_v39 = vld [vmem:[%s5683_s2 + $0x158] sm:$0xf] }
  0x2b   : > { %v3576_v60 = vld [vmem:[%s5683_s2 + $0xe4] sm:$0xf0]  ;;  %v3593_v32 = vld [vmem:[%s5683_s2 + $0x16c] sm:$0xf0]  ;;  %v3594_v40 = vld [vmem:[%s5683_s2 + $0x174] sm:$0xf0] }
  0x2c   : > { %v3265_v61 = vor.u32 %v3576_v60, %v3264_v57  ;;  %v3232_v62 = vld [vmem:[%s5683_s2 + $0x88] sm:$0xf]  ;;  %v3345_v42 = vor.u32 %v3594_v40, %v3344_v39  ;;  %v3346_v44 = vld [vmem:[%s5683_s2 + $0x178] sm:$0xf0]  ;;  %v3304_v47 = vld [vmem:[%s5683_s2 + $0x110] sm:$0xf] }
  0x2d   : > { %1106 = vmatpush.bf16.msrb.mxu0 %v3205_v10  ;;  %959 = vmatpush.bf16.msrb.mxu2 %v3193_v15  ;;  %v3568_v63 = vld [vmem:[%s5683_s2 + $0xa4] sm:$0xf0]  ;;  %v3369_v10 = vor.u32 %v3601_v5, %v3368_v4  ;;  %v3378_v15 = vld [vmem:[%s5683_s2 + $0x1b8] sm:$0xf0]  ;;  %v3585_v49 = vld [vmem:[%s5683_s2 + $0x12c] sm:$0xf0] }
  0x2e   : > { %1008 = vmatpush.bf16.msrb.mxu3 %v3197_v9  ;;  %563 = vmatpush.bf16.msra.mxu1 %v4035_v29  ;;  %v4100_v0 = vld [vmem:[%s3858_s8 + $0x28] sm:$0xff]  ;;  %v3233_v1 = vor.u32 %v3568_v63, %v3232_v62  ;;  %v3381_v23 = vor.u32 %v3598_v14, %v3378_v15  ;;  %v3581_v50 = vld [vmem:[%s5683_s2 + $0x114] sm:$0xf]  ;;  %v3312_v53 = vld [vmem:[%s5683_s2 + $0x118] sm:$0xf]  ;;  %v5690_v63 = vmov 2  }
  0x2f   : > { %v3200_v2 = vld [vmem:[%s5683_s2 + $0x48] sm:$0xf]  ;;  %v3306_v52 = vld [vmem:[%s5683_s2 + $0x130] sm:$0xf0]  ;;  %v3582_v60 = vld [vmem:[%s5683_s2 + $0x11c] sm:$0xf]  ;;  %3647 = vset.pattern.permute.xlu1 %v5690_v63 }
  0x30   : > { %v3560_v3 = vld [vmem:[%s5683_s2 + $0x64] sm:$0xf0]  ;;  %v3573_v4 = vld [vmem:[%s5683_s2 + $0xd4] sm:$0xf]  ;;  %v3574_v11 = vld [vmem:[%s5683_s2 + $0xdc] sm:$0xf] }
  0x31   : > { %1107 = vmatpush.bf16.msrb.mxu0 %v3173_v22  ;;  %960 = vmatpush.bf16.msrb.mxu2 %v3161_v28  ;;  %v3201_v8 = vor.u32 %v3560_v3, %v3200_v2  ;;  %v3168_v9 = vld [vmem:[%s5683_s2 + $0x8] sm:$0xf]  ;;  %v3610_v22 = vld [vmem:[%s5683_s2 + $0x1f4] sm:$0xf0]  ;;  %v3272_v2 = vld [vmem:[%s5683_s2 + $0xd0] sm:$0xf] }
  0x32   : > { %1009 = vmatpush.bf16.msrb.mxu3 %v3165_v20  ;;  %1051 = vmatpush.bf16.msrb.mxu1 %v3393_v30  ;;  %v3552_v12 = vld [vmem:[%s5683_s2 + $0x24] sm:$0xf0]  ;;  %v3408_v20 = vld [vmem:[%s5683_s2 + $0x1d8] sm:$0xf]  ;;  %v3577_v3 = vld [vmem:[%s5683_s2 + $0xec] sm:$0xf0] }
  0x33   : > { %564 = vmatmul.bf16.vlgmr.msra.gmra.mxu1 %v501_v35  ;;  %v3169_v24 = vor.u32 %v3552_v12, %v3168_v9  ;;  %v3409_v25 = vor.u32 %v3610_v22, %v3408_v20  ;;  %v3602_v28 = vld [vmem:[%s5683_s2 + $0x1b4] sm:$0xf0]  ;;  %v3337_v35 = vor.u32 %v3593_v32, %v3336_v31  ;;  %v3273_v5 = vor.u32 %v3577_v3, %v3272_v2  ;;  %v3274_v7 = vld [vmem:[%s5683_s2 + $0xf0] sm:$0xf0]  ;;  %v3240_v15 = vld [vmem:[%s5683_s2 + $0x90] sm:$0xf] }
  0x34   : > { %480 = vmatmul.bf16.gmra.mxu2 %v4044_v33  ;;  %1108 = vmatmul.bf16.vlgmr.msrb.gmra.mxu0 %v3864_v16  ;;  %v3377_v30 = vor.u32 %v3602_v28, %v3376_v26  ;;  %v3280_v9 = vld [vmem:[%s5683_s2 + $0xd8] sm:$0xf]  ;;  %v3569_v20 = vld [vmem:[%s5683_s2 + $0xac] sm:$0xf0]  ;;  %v3565_v22 = vld [vmem:[%s5683_s2 + $0x94] sm:$0xf] }
  0x35   : > { %1149 = vmatpush.bf16.msra.mxu2 %v3401_v45  ;;  %1296 = vmatpush.bf16.msra.mxu0 %v3413_v54  ;;  %v3586_v54 = vld [vmem:[%s5683_s2 + $0x134] sm:$0xf0]  ;;  %v3566_v26 = vld [vmem:[%s5683_s2 + $0x9c] sm:$0xf]  ;;  %v5688_v2 = vmov 4  }
  0x36   : > { %1052 = vmatpush.bf16.msrb.mxu1 %v3361_v34  ;;  %1198 = vmatpush.bf16.msra.mxu3 %v3405_v51  ;;  %v3589_v34 = vld [vmem:[%s5683_s2 + $0x154] sm:$0xf]  ;;  %v3305_v51 = vor.u32 %v3585_v49, %v3304_v47  ;;  %v3313_v57 = vor.u32 %v3586_v54, %v3312_v53  ;;  %v3250_v28 = vld [vmem:[%s5683_s2 + $0xb8] sm:$0xf0]  ;;  %v3570_v32 = vld [vmem:[%s5683_s2 + $0xb4] sm:$0xf0] }
  0x37   : > { %1010 = vmatmul.bf16.vlgmr.msrb.gmra.mxu3 %v3864_v16  ;;  %v3341_v41 = vor.u32 %v3589_v34, %v3338_v38  ;;  %v3253_v31 = vor.u32 %v3566_v26, %v3250_v28  ;;  %v3210_v38 = vld [vmem:[%s5683_s2 + $0x70] sm:$0xf0]  ;;  %v3558_v39 = vld [vmem:[%s5683_s2 + $0x5c] sm:$0xf]  ;;  %v3561_v53 = vld [vmem:[%s5683_s2 + $0x6c] sm:$0xf0] }
  0x38   : > { %v3550_v47 = vld [vmem:[%s5683_s2 + $0x1c] sm:$0xf] }
  0x39   : > { %1150 = vmatpush.bf16.msra.mxu2 %v3369_v10  ;;  %1297 = vmatpush.bf16.msra.mxu0 %v3381_v23  ;;  %v3578_v10 = vld [vmem:[%s5683_s2 + $0xf4] sm:$0xf0]  ;;  %v3241_v23 = vor.u32 %v3569_v20, %v3240_v15 }
  0x3a   : > { %1053 = vmatpush.bf16.msrb.mxu1 %v3329_v43  ;;  %1199 = vmatpush.bf16.msra.mxu3 %v3373_v13  ;;  %v3590_v43 = vld [vmem:[%s5683_s2 + $0x15c] sm:$0xf]  ;;  %v3281_v12 = vor.u32 %v3578_v10, %v3280_v9  ;;  %v3176_v9 = vld [vmem:[%s5683_s2 + $0x10] sm:$0xf]  ;;  %v3184_v15 = vld [vmem:[%s5683_s2 + $0x18] sm:$0xf] }
  0x3b   : > { %v3349_v45 = vor.u32 %v3590_v43, %v3346_v44  ;;  %v3282_v13 = vld [vmem:[%s5683_s2 + $0xf8] sm:$0xf0]  ;;  %v3549_v44 = vld [vmem:[%s5683_s2 + $0x14] sm:$0xf]  ;;  %v3553_v10 = vld [vmem:[%s5683_s2 + $0x2c] sm:$0xf0] }
  0x3c   : > { %v3285_v14 = vor.u32 %v3574_v11, %v3282_v13  ;;  %v3177_v11 = vor.u32 %v3553_v10, %v3176_v9  ;;  %v3554_v20 = vld [vmem:[%s5683_s2 + $0x34] sm:$0xf0] }
  0x3d   : > { %1151 = vmatpush.bf16.msra.mxu2 %v3337_v35  ;;  %1298 = vmatpush.bf16.msra.mxu0 %v3349_v45  ;;  %v3557_v35 = vld [vmem:[%s5683_s2 + $0x54] sm:$0xf] }
  0x3e   : > { %1054 = vmatpush.bf16.msrb.mxu1 %v3297_v56  ;;  %1200 = vmatpush.bf16.msra.mxu3 %v3341_v41  ;;  %v3309_v56 = vor.u32 %v3581_v50, %v3306_v52  ;;  %v3213_v40 = vor.u32 %v3557_v35, %v3210_v38  ;;  %v3218_v41 = vld [vmem:[%s5683_s2 + $0x78] sm:$0xf0]  ;;  %v3178_v45 = vld [vmem:[%s5683_s2 + $0x30] sm:$0xf0]  ;;  %v3208_v52 = vld [vmem:[%s5683_s2 + $0x50] sm:$0xf] }
  0x3f   : > { %v3181_v49 = vor.u32 %v3549_v44, %v3178_v45  ;;  %v3186_v50 = vld [vmem:[%s5683_s2 + $0x38] sm:$0xf0]  ;;  %v3209_v54 = vor.u32 %v3561_v53, %v3208_v52 }
  0x41   : > { %1152 = vmatpush.bf16.msra.mxu2 %v3305_v51  ;;  %v3189_v51 = vor.u32 %v3550_v47, %v3186_v50 }
  0x42   : > { %1055 = vmatpush.bf16.msrb.mxu1 %v3265_v61  ;;  %v3314_v61 = vld [vmem:[%s5683_s2 + $0x138] sm:$0xf0]  ;;  %1201 = vmatpush.bf16.msra.mxu3 %v3309_v56 }
  0x43   : > { %v3317_v62 = vor.u32 %v3582_v60, %v3314_v61  ;;  %v3216_v61 = vld [vmem:[%s5683_s2 + $0x58] sm:$0xf] }
  0x44   : > { %485 = vmatmul.bf16.gmra.mxu2 %v4100_v0  ;;  %1113 = vmatmul.bf16.gmra.mxu0 %v3944_v48 }
  0x45   : > { %1299 = vmatpush.bf16.msra.mxu0 %v3317_v62  ;;  %1153 = vmatpush.bf16.msra.mxu2 %v3273_v5  ;;  %v3562_v62 = vld [vmem:[%s5683_s2 + $0x74] sm:$0xf0] }
  0x46   : > { %1056 = vmatpush.bf16.msrb.mxu1 %v3233_v1  ;;  %v5692_v1 = vmov 1   ;;  %v3217_v3 = vor.u32 %v3562_v62, %v3216_v61 }
  0x47   : > { %1015 = vmatmul.bf16.gmra.mxu3 %v3944_v48  ;;  %3646 = vset.pattern.permute.xlu2 %v5692_v1 }
  0x49   : > { %1300 = vmatpush.bf16.msra.mxu0 %v3285_v14  ;;  %1154 = vmatpush.bf16.msra.mxu2 %v3241_v23 }
  0x4a   : > { %1057 = vmatpush.bf16.msrb.mxu1 %v3201_v8  ;;  %v3277_v8 = vor.u32 %v3573_v4, %v3274_v7  ;;  %v5696_v4 = vmov 3  }
  0x4c   : > { %1202 = vmatpush.bf16.msra.mxu3 %v3277_v8 }
  0x4d   : > { %1301 = vmatpush.bf16.msra.mxu0 %v3253_v31  ;;  %1155 = vmatpush.bf16.msra.mxu2 %v3209_v54 }
  0x4e   : > { %1058 = vmatpush.bf16.msrb.mxu1 %v3169_v24  ;;  %v3242_v24 = vld [vmem:[%s5683_s2 + $0xb0] sm:$0xf0] }
  0x51   : > { %1059 = vmatmul.bf16.vlgmr.msrb.gmra.mxu1 %v3864_v16  ;;  %1156 = vmatpush.bf16.msra.mxu2 %v3177_v11 }
  0x52   : > { %1247 = vmatpush.bf16.msra.mxu1 %v3409_v25  ;;  %v3245_v25 = vor.u32 %v3565_v22, %v3242_v24  ;;  %v3185_v22 = vor.u32 %v3554_v20, %v3184_v15 }
  0x54   : > { %961 = vmatmul.bf16.vlgmr.msrb.gmra.mxu2 %v3864_v16  ;;  %1118 = vmatmul.bf16.gmra.mxu0 %v3867_v17 }
  0x55   : > { %1203 = vmatpush.bf16.msra.mxu3 %v3245_v25  ;;  %1537 = vmatpush.bf16.msrb.mxu2 %v3878_v21 }
  0x56   : > { %1248 = vmatpush.bf16.msra.mxu1 %v3377_v30  ;;  %v3248_v30 = vld [vmem:[%s5683_s2 + $0x98] sm:$0xf] }
  0x57   : > { %1020 = vmatmul.bf16.gmra.mxu3 %v3867_v17  ;;  %v3249_v34 = vor.u32 %v3570_v32, %v3248_v30 }
  0x59   : > { %1204 = vmatpush.bf16.msra.mxu3 %v3213_v40  ;;  %1538 = vmatpush.bf16.msrb.mxu2 %v3897_v27 }
  0x5a   : > { %1249 = vmatpush.bf16.msra.mxu1 %v3345_v42  ;;  %v3221_v42 = vor.u32 %v3558_v39, %v3218_v41 }
  0x5c   : > { %1302 = vmatpush.bf16.msra.mxu0 %v3221_v42 }
  0x5d   : > { %1205 = vmatpush.bf16.msra.mxu3 %v3181_v49  ;;  %1539 = vmatpush.bf16.msrb.mxu2 %v3919_v36 }
  0x5e   : > { %1250 = vmatpush.bf16.msra.mxu1 %v3313_v57 }
  0x60   : > { %1303 = vmatpush.bf16.msra.mxu0 %v3189_v51 }
  0x61   : > { %1064 = vmatmul.bf16.gmra.mxu1 %v3944_v48  ;;  %1715 = vmatpush.bf16.msrb.mxu3 %v3878_v21 }
  0x62   : > { %1251 = vmatpush.bf16.msra.mxu1 %v3281_v12  ;;  %1540 = vmatpush.bf16.msrb.mxu2 %v3941_v46 }
  0x64   : > { %966 = vmatmul.bf16.gmra.mxu2 %v3944_v48  ;;  %1123 = vmatmul.bf16.gmra.mxu0 %v3959_v55 }
  0x65   : > { %2089 = vmatpush.bf16.msrb.mxu0 %v3878_v21  ;;  %1716 = vmatpush.bf16.msrb.mxu3 %v3897_v27 }
  0x66   : > { %1252 = vmatpush.bf16.msra.mxu1 %v3249_v34  ;;  %1541 = vmatpush.bf16.msrb.mxu2 %v3972_v59 }
  0x67   : > { %1025 = vmatmul.bf16.gmra.mxu3 %v3959_v55 }
  0x69   : > { %2090 = vmatpush.bf16.msrb.mxu0 %v3897_v27  ;;  %1717 = vmatpush.bf16.msrb.mxu3 %v3919_v36 }
  0x6a   : > { %1253 = vmatpush.bf16.msra.mxu1 %v3217_v3  ;;  %1542 = vmatpush.bf16.msrb.mxu2 %v3997_v6 }
  0x6d   : > { %2091 = vmatpush.bf16.msrb.mxu0 %v3919_v36  ;;  %1718 = vmatpush.bf16.msrb.mxu3 %v3941_v46 }
  0x6e   : > { %1254 = vmatpush.bf16.msra.mxu1 %v3185_v22  ;;  %1543 = vmatpush.bf16.msrb.mxu2 %v4019_v19 }
  0x71   : > { %1069 = vmatmul.bf16.gmra.mxu1 %v3867_v17  ;;  %2092 = vmatpush.bf16.msrb.mxu0 %v3941_v46 }
  0x72   : > { %1719 = vmatpush.bf16.msrb.mxu3 %v3972_v59  ;;  %1910 = vmatpush.bf16.msrb.mxu1 %v3878_v21 }
  0x73   : > { %1544 = vmatpush.bf16.msrb.mxu2 %v4035_v29 }
  0x74   : > { %971 = vmatmul.bf16.gmra.mxu2 %v3867_v17  ;;  %1128 = vmatmul.bf16.gmra.mxu0 %v4044_v33 }
  0x75   : > { %2093 = vmatpush.bf16.msrb.mxu0 %v3972_v59 }
  0x76   : > { %1720 = vmatpush.bf16.msrb.mxu3 %v3997_v6  ;;  %1911 = vmatpush.bf16.msrb.mxu1 %v3897_v27 }
  0x77   : > { %1030 = vmatmul.bf16.gmra.mxu3 %v4044_v33 }
  0x79   : > { %2094 = vmatpush.bf16.msrb.mxu0 %v3997_v6 }
  0x7a   : > { %1721 = vmatpush.bf16.msrb.mxu3 %v4019_v19  ;;  %1912 = vmatpush.bf16.msrb.mxu1 %v3919_v36 }
  0x7d   : > { %2095 = vmatpush.bf16.msrb.mxu0 %v4019_v19 }
  0x7e   : > { %1722 = vmatpush.bf16.msrb.mxu3 %v4035_v29  ;;  %1913 = vmatpush.bf16.msrb.mxu1 %v3941_v46 }
  0x81   : > { %1074 = vmatmul.bf16.gmra.mxu1 %v3959_v55  ;;  %2096 = vmatpush.bf16.msrb.mxu0 %v4035_v29 }
  0x82   : > { %1914 = vmatpush.bf16.msrb.mxu1 %v3972_v59 }
  0x84   : > { %976 = vmatmul.bf16.gmra.mxu2 %v3959_v55  ;;  %1133 = vmatmul.bf16.gmra.mxu0 %v4100_v0 }
  0x86   : > { %1915 = vmatpush.bf16.msrb.mxu1 %v3997_v6 }
  0x87   : > { %1035 = vmatmul.bf16.gmra.mxu3 %v4100_v0 }
  0x8a   : > { %1916 = vmatpush.bf16.msrb.mxu1 %v4019_v19 }
  0x8e   : > { %1917 = vmatpush.bf16.msrb.mxu1 %v4035_v29 }
  0x91   : > { %1079 = vmatmul.bf16.gmra.mxu1 %v4044_v33  ;;  %v4274_v43 = vpop.f32.mrf.mxu0 }
  0x92   : > { %1799 = vperm.xlu1 %3647, %v4274_v43   ;;  %1620 = vperm.xlu2 %3646, %v4274_v43  }
  0x93   : > { %1411 = vperm.xlu0 %3645, %v4274_v43  }
  0x94   : > { %981 = vmatmul.bf16.gmra.mxu2 %v4044_v33  ;;  %1138 = vmatmul.bf16.gmra.mxu0 %v3870_v18 }
  0x97   : > { %1040 = vmatmul.bf16.gmra.mxu3 %v3870_v18  ;;  %v4301_v56 = vpop.f32.mrf.mxu2 }
  0x98   : > { %5710 = vst [vmem:[#allocation2_spill] sm:$0xff] %v4301_v56 }
  0x99   : > { %v4306_v60 = vpop.f32.mrf.mxu0 }
  0x9a   : > { %v4304_v57 = vpop.f32.mrf.mxu3  ;;  %3651 = vset.pattern.permute.xlu1 %v5694_v37  ;;  %3649 = vset.pattern.permute.xlu2 %v5688_v2 }
  0x9b   : > { %3648 = vset.pattern.permute.xlu0 %v5696_v4  ;;  %1471 = vperm.xlu1 %3651, %v4304_v57  }
  0x9c   : > { %2173 = vperm.xlu2 %3649, %v4274_v43   ;;  %1994 = vperm.xlu0 %3648, %v4274_v43  }
  0x9f   : > { %v4322_v5 = vpop.f32.mrf.mxu2 }
  0xa0   : > { %5711 = vst [vmem:[#allocation3_spill] sm:$0xff] %v4322_v5 }
  0xa1   : > { %1084 = vmatmul.bf16.gmra.mxu1 %v4100_v0  ;;  %v4327_v8 = vpop.f32.mrf.mxu0 }
  0xa2   : > { %v4324_v7 = vpop.f32.mrf.mxu3 }
  0xa3   : > { %3652 = vset.pattern.permute.xlu1 %v5692_v1 }
  0xa4   : > { %3650 = vset.pattern.permute.xlu2 %v5694_v37  ;;  %3653 = vset.pattern.permute.xlu0 %v5692_v1 }
  0xa5   : > { %986 = vmatmul.bf16.gmra.mxu2 %v4100_v0  ;;  %1143 = vmatmul.bf16.gmra.mxu0 %v3969_v58 }
  0xa6   : > { %1636 = vperm.xlu1 %3652, %v4301_v56   ;;  %1431 = vperm.xlu2 %3650, %v4301_v56  }
  0xa7   : > { %1045 = vmatmul.bf16.gmra.mxu3 %v3969_v58  ;;  %1668 = vperm.xlu0 %3653, %v4304_v57   ;;  %v4346_v12 = vpop.f32.mrf.mxu2 }
  0xa9   : > { %v4351_v14 = vpop.f32.mrf.mxu0 }
  0xaa   : > { %v4348_v13 = vpop.f32.mrf.mxu3  ;;  %5713 = vst [vmem:[#allocation5_spill] sm:$0xff] %v4351_v14 }
  0xab   : > { %5712 = vst [vmem:[#allocation4_spill] sm:$0xff] %v4348_v13 }
  0xae   : > { %3656 = vset.pattern.permute.xlu1 %v5696_v4  ;;  %3654 = vset.pattern.permute.xlu2 %v5690_v63 }
  0xaf   : > { %1624 = vperm.xlu0 %3653, %v4306_v60   ;;  %v4367_v23 = vpop.f32.mrf.mxu2  ;;  %2042 = vperm.xlu1 %3656, %v4304_v57  }
  0xb0   : > { %1815 = vperm.xlu2 %3654, %v4301_v56   ;;  %v4375_v26 = vpop.f32.mrf.mxu1 }
  0xb1   : > { %1089 = vmatmul.bf16.gmra.mxu1 %v3870_v18  ;;  %v1109_v25 = vpop.f32.mrf.mxu0  ;;  %5714 = vst [vmem:[#allocation6_spill] sm:$0xff] %v4375_v26 }
  0xb2   : > { %v4371_v24 = vpop.f32.mrf.mxu3 }
  0xb5   : > { %991 = vmatmul.bf16.gmra.mxu2 %v3870_v18  ;;  %1304 = vmatmul.bf16.vlgmr.msra.gmra.mxu0 %v3864_v16 }
  0xb6   : > { %2837 = vmatpush.bf16.msra.mxu0 %v3878_v21 }
  0xb7   : > { %1206 = vmatmul.bf16.vlgmr.msra.gmra.mxu3 %v3864_v16  ;;  %3661 = vset.pattern.permute.xlu0 %v5688_v2  ;;  %v4385_v28 = vpop.f32.mrf.mxu2 }
  0xb8   : > { %3657 = vset.pattern.permute.xlu1 %v5688_v2  ;;  %1847 = vperm.xlu2 %3654, %v4304_v57   ;;  %v567_v31 = vpop.f32.mrf.mxu1 }
  0xb9   : > { %2177 = vperm.xlu0 %3661, %v4306_v60   ;;  %2189 = vperm.xlu1 %3657, %v4301_v56   ;;  %v4394_v18 = vpop.f32.mrf.mxu0 }
  0xba   : > { %v4390_v30 = vpop.f32.mrf.mxu3  ;;  %2463 = vmatpush.bf16.msra.mxu3 %v3878_v21  ;;  %2838 = vmatpush.bf16.msra.mxu0 %v3897_v27 }
  0xbe   : > { %2464 = vmatpush.bf16.msra.mxu3 %v3897_v27  ;;  %2839 = vmatpush.bf16.msra.mxu0 %v3919_v36 }
  0xbf   : > { %v4402_v32 = vpop.f32.mrf.mxu2 }
  0xc0   : > { %3655 = vset.pattern.permute.xlu2 %v5696_v4 }
  0xc1   : > { %3662 = vset.pattern.permute.xlu0 %v5694_v37  ;;  %3658 = vset.pattern.permute.xlu1 %v5694_v37  ;;  %v4412_v35 = vpop.f32.mrf.mxu0 }
  0xc2   : > { %v4407_v34 = vpop.f32.mrf.mxu3  ;;  %2010 = vperm.xlu2 %3655, %v4301_v56   ;;  %1436 = vperm.xlu0 %3662, %v4322_v5  }
  0xc3   : > { %1416 = vperm.xlu1 %3658, %v4306_v60   ;;  %1094 = vmatmul.bf16.gmra.mxu1 %v3969_v58 }
  0xc4   : > { %2465 = vmatpush.bf16.msra.mxu3 %v3919_v36  ;;  %2840 = vmatpush.bf16.msra.mxu0 %v3941_v46 }
  0xc5   : > { %996 = vmatmul.bf16.gmra.mxu2 %v3969_v58  ;;  %1309 = vmatmul.bf16.gmra.mxu0 %v3944_v48 }
  0xc7   : > { %1211 = vmatmul.bf16.gmra.mxu3 %v3944_v48  ;;  %v4424_v38 = vpop.f32.mrf.mxu2 }
  0xc8   : > { %2466 = vmatpush.bf16.msra.mxu3 %v3941_v46  ;;  %2841 = vmatpush.bf16.msra.mxu0 %v3972_v59 }
  0xc9   : > { %v4431_v40 = vpop.f32.mrf.mxu0 }
  0xca   : > { %v4427_v39 = vpop.f32.mrf.mxu3  ;;  %3659 = vset.pattern.permute.xlu2 %v5690_v63  ;;  %3667 = vset.pattern.permute.xlu0 %v5690_v63 }
  0xcb   : > { %1803 = vperm.xlu2 %3659, %v4306_v60   ;;  %1851 = vperm.xlu0 %3667, %v4324_v7  }
  0xcc   : > { %3660 = vset.pattern.permute.xlu1 %v5696_v4  ;;  %2467 = vmatpush.bf16.msra.mxu3 %v3972_v59 }
  0xcd   : > { %1998 = vperm.xlu1 %3660, %v4306_v60   ;;  %2842 = vmatpush.bf16.msra.mxu0 %v3997_v6 }
  0xce   : > { %v1060_v58 = vpop.f32.mrf.mxu1 }
  0xcf   : > { %v1346_v41 = vpack.c.bf16 %v1109_v25, %v1060_v58  ;;  %v4442_v42 = vpop.f32.mrf.mxu2 }
  0xd0   : > { %2468 = vmatpush.bf16.msra.mxu3 %v3997_v6 }
  0xd1   : > { %v4447_v45 = vpop.f32.mrf.mxu0  ;;  %v1878_v49 = vunpack.c.l.b16 %v1346_v41  ;;  %v2057_v50 = vunpack.c.h.b16 %v1346_v41  ;;  %2843 = vmatpush.bf16.msra.mxu0 %v4019_v19 }
  0xd2   : > { %v4444_v44 = vpop.f32.mrf.mxu3 }
  0xd3   : > { %3663 = vset.pattern.permute.xlu2 %v5694_v37  ;;  %3668 = vset.pattern.permute.xlu0 %v5696_v4 }
  0xd4   : > { %1255 = vmatmul.bf16.vlgmr.msra.gmra.mxu1 %v3864_v16  ;;  %1476 = vperm.xlu2 %3663, %v4324_v7  }
  0xd5   : > { %2014 = vperm.xlu0 %3668, %v4322_v5   ;;  %3665 = vset.pattern.permute.xlu1 %v5692_v1 }
  0xd6   : > { %1672 = vperm.xlu1 %3665, %v4324_v7   ;;  %1157 = vmatmul.bf16.vlgmr.msra.gmra.mxu2 %v3864_v16  ;;  %v1062_v47 = vpop.f32.mrf.mxu1 }
  0xd7   : > { %1216 = vmatmul.bf16.gmra.mxu3 %v3867_v17  ;;  %1314 = vmatmul.bf16.gmra.mxu0 %v3867_v17  ;;  %v1350_v51 = vpack.c.bf16 %v4394_v18, %v1062_v47  ;;  %v962_v52 = vpop.f32.mrf.mxu2 }
  0xd8   : > { %v1345_v53 = vpack.c.bf16 %v4390_v30, %v962_v52  ;;  %2284 = vmatpush.bf16.msra.mxu2 %v3878_v21  ;;  %2658 = vmatpush.bf16.msra.mxu1 %v3878_v21 }
  0xd9   : > { %v1879_v61 = vunpack.c.l.b16 %v1350_v51  ;;  %v2058_v16 = vunpack.c.h.b16 %v1350_v51  ;;  %v4467_v62 = vpop.f32.mrf.mxu0  ;;  %2469 = vmatpush.bf16.msra.mxu3 %v4019_v19  ;;  %2844 = vmatpush.bf16.msra.mxu0 %v4035_v29 }
  0xda   : > { %v4463_v54 = vpop.f32.mrf.mxu3  ;;  %v1505_v22 = vunpack.c.l.b16 %v1345_v53  ;;  %v1683_v25 = vunpack.c.h.b16 %v1345_v53 }
  0xdb   : > { %v4471_v17 = vpack.c.b16 %v1879_v61, %v1878_v49  ;;  %v4473_v3 = vpack.c.b16 %v2058_v16, %v2057_v50 }
  0xdc   : > { %3664 = vset.pattern.permute.xlu2 %v5692_v1  ;;  %2285 = vmatpush.bf16.msra.mxu2 %v3897_v27 }
  0xdd   : > { %3673 = vset.pattern.permute.xlu0 %v5690_v63  ;;  %1640 = vperm.xlu2 %3664, %v4322_v5  }
  0xde   : > { %3666 = vset.pattern.permute.xlu1 %v5690_v63  ;;  %1807 = vperm.xlu0 %3673, %v4327_v8   ;;  %v1065_v21 = vpop.f32.mrf.mxu1 }
  0xdf   : > { %1819 = vperm.xlu1 %3666, %v4322_v5   ;;  %v1354_v9 = vpack.c.bf16 %v4412_v35, %v1065_v21  ;;  %v964_v10 = vpop.f32.mrf.mxu2  ;;  %2659 = vmatpush.bf16.msra.mxu1 %v3897_v27 }
  0xe0   : > { %v1349_v11 = vpack.c.bf16 %v4407_v34, %v964_v10  ;;  %2286 = vmatpush.bf16.msra.mxu2 %v3919_v36  ;;  %2470 = vmatpush.bf16.msra.mxu3 %v4035_v29 }
  0xe1   : > { %v4489_v20 = vpop.f32.mrf.mxu0  ;;  %v1880_v35 = vunpack.c.l.b16 %v1354_v9  ;;  %v2059_v58 = vunpack.c.h.b16 %v1354_v9 }
  0xe2   : > { %v4485_v15 = vpop.f32.mrf.mxu3  ;;  %v1506_v30 = vunpack.c.l.b16 %v1349_v11  ;;  %v1684_v18 = vunpack.c.h.b16 %v1349_v11  ;;  %v3725_v11 = vld [vmem:[%s3858_s8 + $0x10] sm:$0xff] }
  0xe3   : > { %2660 = vmatpush.bf16.msra.mxu1 %v3919_v36 }
  0xe4   : > { %v4493_v31 = vpack.c.b16 %v1506_v30, %v1505_v22  ;;  %v4495_v27 = vpack.c.b16 %v1684_v18, %v1683_v25  ;;  %1260 = vmatmul.bf16.gmra.mxu1 %v3944_v48  ;;  %2287 = vmatpush.bf16.msra.mxu2 %v3941_v46 }
  0xe5   : > { %3669 = vset.pattern.permute.xlu2 %v5696_v4 }
  0xe6   : > { %3677 = vset.pattern.permute.xlu0 %v5694_v37  ;;  %2046 = vperm.xlu2 %3669, %v4324_v7   ;;  %v1067_v34 = vpop.f32.mrf.mxu1 }
  0xe7   : > { %3671 = vset.pattern.permute.xlu1 %v5694_v37  ;;  %1481 = vperm.xlu0 %3677, %v4348_v13   ;;  %v1358_v36 = vpack.c.bf16 %v4431_v40, %v1067_v34  ;;  %v967_v41 = vpop.f32.mrf.mxu2 }
  0xe8   : > { %1421 = vperm.xlu1 %3671, %v4327_v8   ;;  %1162 = vmatmul.bf16.gmra.mxu2 %v3944_v48  ;;  %v1353_v47 = vpack.c.bf16 %v4427_v39, %v967_v41 }
  0xe9   : > { %1221 = vmatmul.bf16.gmra.mxu3 %v3959_v55  ;;  %1319 = vmatmul.bf16.gmra.mxu0 %v3959_v55  ;;  %v1881_v50 = vunpack.c.l.b16 %v1358_v36  ;;  %v2060_v51 = vunpack.c.h.b16 %v1358_v36  ;;  %v4513_v52 = vpop.f32.mrf.mxu0 }
  0xea   : > { %v4509_v49 = vpop.f32.mrf.mxu3  ;;  %2661 = vmatpush.bf16.msra.mxu1 %v3941_v46  ;;  %2288 = vmatpush.bf16.msra.mxu2 %v3972_v59  ;;  %v1685_v9 = vunpack.c.h.b16 %v1353_v47 }
  0xeb   : > { %v4517_v40 = vpack.c.b16 %v2060_v51, %v2059_v58  ;;  %v4519_v53 = vpack.c.b16 %v1881_v50, %v1880_v35  ;;  %v4571_v50 = vpop.permute.xlu0 %505 }
  0xec   : > { %v4523_v48 = vpop.permute.xlu2 %1620  ;;  %5717 = vst [vmem:[#allocation9_spill] sm:$0xff] %v4571_v50 }
  0xed   : > { %5715 = vst [vmem:[#allocation7_spill] sm:$0xff] %v4523_v48 }
  0xee   : > { %3670 = vset.pattern.permute.xlu2 %v5688_v2  ;;  %v1070_v55 = vpop.f32.mrf.mxu1  ;;  %2662 = vmatpush.bf16.msra.mxu1 %v3972_v59  ;;  %v1507_v59 = vunpack.c.l.b16 %v1353_v47 }
  0xef   : > { %3678 = vset.pattern.permute.xlu0 %v5692_v1  ;;  %2193 = vperm.xlu2 %3670, %v4322_v5   ;;  %v1362_v46 = vpack.c.bf16 %v4447_v45, %v1070_v55  ;;  %v969_v39 = vpop.f32.mrf.mxu2 }
  0xf0   : > { %1644 = vperm.xlu0 %3678, %v4346_v12   ;;  %3672 = vset.pattern.permute.xlu1 %v5692_v1  ;;  %v1357_v61 = vpack.c.bf16 %v4444_v44, %v969_v39 }
  0xf1   : > { %1628 = vperm.xlu1 %3672, %v4327_v8   ;;  %v4536_v21 = vpop.f32.mrf.mxu0  ;;  %2289 = vmatpush.bf16.msra.mxu2 %v3997_v6  ;;  %v1882_v30 = vunpack.c.l.b16 %v1362_v46  ;;  %v2061_v18 = vunpack.c.h.b16 %v1362_v46 }
  0xf2   : > { %v4533_v16 = vpop.f32.mrf.mxu3  ;;  %v1508_v10 = vunpack.c.l.b16 %v1357_v61  ;;  %v1686_v45 = vunpack.c.h.b16 %v1357_v61  ;;  %2663 = vmatpush.bf16.msra.mxu1 %v3997_v6 }
  0xf4   : > { %1265 = vmatmul.bf16.gmra.mxu1 %v3725_v11  ;;  %v4543_v44 = vpack.c.b16 %v1686_v45, %v1685_v9  ;;  %v4545_v22 = vpack.c.b16 %v1508_v10, %v1507_v59 }
  0xf5   : > { %2290 = vmatpush.bf16.msra.mxu2 %v4019_v19 }
  0xf6   : > { %v1072_v25 = vpop.f32.mrf.mxu1  ;;  %2664 = vmatpush.bf16.msra.mxu1 %v4019_v19  ;;  %v4551_v34 = vpop.permute.xlu2 %2173 }
  0xf7   : > { %3674 = vset.pattern.permute.xlu2 %v5696_v4  ;;  %v1366_v6 = vpack.c.bf16 %v4467_v62, %v1072_v25  ;;  %5716 = vst [vmem:[#allocation8_spill] sm:$0xff] %v4551_v34  ;;  %v972_v35 = vpop.f32.mrf.mxu2 }
  0xf8   : > { %3683 = vset.pattern.permute.xlu0 %v5696_v4  ;;  %1167 = vmatmul.bf16.gmra.mxu2 %v3725_v11  ;;  %v1361_v58 = vpack.c.bf16 %v4463_v54, %v972_v35 }
  0xf9   : > { %1226 = vmatmul.bf16.gmra.mxu3 %v4044_v33  ;;  %2002 = vperm.xlu2 %3674, %v4327_v8   ;;  %v1883_v19 = vunpack.c.l.b16 %v1366_v6  ;;  %v2062_v41 = vunpack.c.h.b16 %v1366_v6  ;;  %v4559_v47 = vpop.f32.mrf.mxu0 }
  0xfa   : > { %v4555_v36 = vpop.f32.mrf.mxu3  ;;  %2050 = vperm.xlu0 %3683, %v4348_v13   ;;  %3675 = vset.pattern.permute.xlu1 %v5688_v2  ;;  %v1509_v10 = vunpack.c.l.b16 %v1361_v58  ;;  %v1687_v45 = vunpack.c.h.b16 %v1361_v58 }
  0xfb   : > { %1324 = vmatmul.bf16.gmra.mxu0 %v4044_v33  ;;  %2181 = vperm.xlu1 %3675, %v4327_v8   ;;  %v4565_v62 = vpack.c.b16 %v2062_v41, %v2061_v18  ;;  %v4567_v54 = vpack.c.b16 %v1883_v19, %v1882_v30 }
  0xfc   : > { %2291 = vmatpush.bf16.msra.mxu2 %v4035_v29  ;;  %2665 = vmatpush.bf16.msra.mxu1 %v4035_v29 }
  0xfe   : > { %v1075_v51 = vpop.f32.mrf.mxu1 }
  0xff   : > { %v1370_v55 = vpack.c.bf16 %v4489_v20, %v1075_v51  ;;  %v974_v46 = vpop.f32.mrf.mxu2 }
 0x100   : > { %v1365_v39 = vpack.c.bf16 %v4485_v15, %v974_v46  ;;  %v4578_v59 = vpop.permute.xlu2 %1431  ;;  %v3726_v15 = vld [vmem:[%s3858_s8 + $0x18] sm:$0xff] }
 0x101   : > { %3679 = vset.pattern.permute.xlu2 %v5692_v1  ;;  %5718 = vst [vmem:[#allocation10_spill] sm:$0xff] %v4578_v59  ;;  %v4580_v9 = vpop.f32.mrf.mxu0  ;;  %v1884_v35 = vunpack.c.l.b16 %v1370_v55  ;;  %v2063_v58 = vunpack.c.h.b16 %v1370_v55 }
 0x102   : > { %v4575_v61 = vpop.f32.mrf.mxu3  ;;  %3692 = vset.pattern.permute.xlu0 %v5692_v1  ;;  %1676 = vperm.xlu2 %3679, %v4348_v13   ;;  %v1510_v29 = vunpack.c.l.b16 %v1365_v39  ;;  %v1688_v20 = vunpack.c.h.b16 %v1365_v39 }
 0x103   : > { %1680 = vperm.xlu0 %3692, %v4371_v24   ;;  %3676 = vset.pattern.permute.xlu1 %v5694_v37 }
 0x104   : > { %1441 = vperm.xlu1 %3676, %v4346_v12   ;;  %1270 = vmatmul.bf16.gmra.mxu1 %v3726_v15  ;;  %v4588_v11 = vpack.c.b16 %v1688_v20, %v1687_v45  ;;  %v4590_v25 = vpack.c.b16 %v1510_v29, %v1509_v10  ;;  %v4594_v6 = vpop.permute.xlu1 %1799 }
 0x105   : > { %v4592_v30 = vpop.permute.xlu0 %1411  ;;  %5720 = vst [vmem:[#allocation12_spill] sm:$0xff] %v4594_v6 }
 0x106   : > { %5719 = vst [vmem:[#allocation11_spill] sm:$0xff] %v4592_v30  ;;  %v1077_v18 = vpop.f32.mrf.mxu1 }
 0x107   : > { %v1374_v19 = vpack.c.bf16 %v4513_v52, %v1077_v18  ;;  %v977_v41 = vpop.f32.mrf.mxu2 }
 0x108   : > { %1172 = vmatmul.bf16.gmra.mxu2 %v3726_v15  ;;  %v1369_v51 = vpack.c.bf16 %v4509_v49, %v977_v41 }
 0x109   : > { %1231 = vmatmul.bf16.gmra.mxu3 %v4100_v0  ;;  %v1885_v39 = vunpack.c.l.b16 %v1374_v19  ;;  %v2064_v10 = vunpack.c.h.b16 %v1374_v19  ;;  %v4601_v45 = vpop.f32.mrf.mxu0 }
 0x10a   : > { %v4598_v46 = vpop.f32.mrf.mxu3  ;;  %3680 = vset.pattern.permute.xlu2 %v5690_v63  ;;  %v4604_v29 = vpop.permute.xlu2 %1815 }
 0x10b   : > { %5721 = vst [vmem:[#allocation13_spill] sm:$0xff] %v4604_v29  ;;  %1329 = vmatmul.bf16.gmra.mxu0 %v4100_v0  ;;  %3693 = vset.pattern.permute.xlu0 %v5690_v63  ;;  %v4608_v52 = vpack.c.b16 %v2064_v10, %v2063_v58  ;;  %v4610_v55 = vpack.c.b16 %v1885_v39, %v1884_v35  ;;  %v1511_v39 = vunpack.c.l.b16 %v1369_v51  ;;  %v1689_v10 = vunpack.c.h.b16 %v1369_v51 }
 0x10c   : > { %1823 = vperm.xlu2 %3680, %v4346_v12   ;;  %1827 = vperm.xlu0 %3693, %v4367_v23  }
 0x10d   : > { %3681 = vset.pattern.permute.xlu1 %v5690_v63  ;;  %v4619_v19 = vpop.permute.xlu1 %1471 }
 0x10e   : > { %1855 = vperm.xlu1 %3681, %v4348_v13   ;;  %v1080_v49 = vpop.f32.mrf.mxu1  ;;  %v4617_v18 = vpop.permute.xlu0 %1994  ;;  %5723 = vst [vmem:[#allocation15_spill] sm:$0xff] %v4619_v19 }
 0x10f   : > { %v1378_v20 = vpack.c.bf16 %v4536_v21, %v1080_v49  ;;  %v979_v15 = vpop.f32.mrf.mxu2  ;;  %5722 = vst [vmem:[#allocation14_spill] sm:$0xff] %v4617_v18 }
 0x110   : > { %v1373_v58 = vpack.c.bf16 %v4533_v16, %v979_v15 }
 0x111   : > { %v4624_v41 = vpop.f32.mrf.mxu0  ;;  %v1886_v51 = vunpack.c.l.b16 %v1378_v20  ;;  %v2065_v15 = vunpack.c.h.b16 %v1378_v20 }
 0x112   : > { %v4622_v35 = vpop.f32.mrf.mxu3  ;;  %v1512_v2 = vunpack.c.l.b16 %v1373_v58  ;;  %v1690_v63 = vunpack.c.h.b16 %v1373_v58  ;;  %v4626_v1 = vpop.permute.xlu2 %1847 }
 0x113   : > { %5724 = vst [vmem:[#allocation16_spill] sm:$0xff] %v4626_v1  ;;  %v5730_v1 = vmov 2  }
 0x114   : > { %3684 = vset.pattern.permute.xlu2 %v5694_v37  ;;  %3697 = vset.pattern.permute.xlu0 %v5694_v37  ;;  %v4630_v21 = vpack.c.b16 %v1690_v63, %v1689_v10  ;;  %v4632_v49 = vpack.c.b16 %v1512_v2, %v1511_v39  ;;  %v3727_v10 = vld [vmem:[%s3858_s8 + $0x20] sm:$0xff]  ;;  %v4645_v37 = vld [vmem:[%s3858_s8 + $0x30] sm:$0xff] }
 0x115   : > { %1451 = vperm.xlu0 %3697, %v4385_v28   ;;  %1426 = vperm.xlu2 %3684, %v4351_v14  }
 0x116   : > { %3682 = vset.pattern.permute.xlu1 %v5696_v4  ;;  %1275 = vmatmul.bf16.gmra.mxu1 %v4044_v33  ;;  %v1082_v16 = vpop.f32.mrf.mxu1 }
 0x117   : > { %2018 = vperm.xlu1 %3682, %v4346_v12   ;;  %v1382_v58 = vpack.c.bf16 %v4559_v47, %v1082_v16  ;;  %v982_v63 = vpop.f32.mrf.mxu2 }
 0x118   : > { %1177 = vmatmul.bf16.gmra.mxu2 %v3727_v10  ;;  %v1377_v2 = vpack.c.bf16 %v4555_v36, %v982_v63  ;;  %v4652_v19 = vpop.permute.xlu1 %1636  ;;  %v5728_v63 = vmov 3   ;;  %v5729_v10 = vmov 1  }
 0x119   : > { %1236 = vmatmul.bf16.gmra.mxu3 %v4645_v37  ;;  %v1887_v4 = vunpack.c.l.b16 %v1382_v58  ;;  %v2066_v33 = vunpack.c.h.b16 %v1382_v58  ;;  %v4648_v34 = vpop.permute.xlu0 %1668  ;;  %v4650_v20 = vpop.f32.mrf.mxu0  ;;  %5726 = vst [vmem:[#allocation18_spill] sm:$0xff] %v4652_v19 }
 0x11a   : > { %v4642_v39 = vpop.f32.mrf.mxu3  ;;  %5725 = vst [vmem:[#allocation17_spill] sm:$0xff] %v4648_v34  ;;  %v1691_v29 = vunpack.c.h.b16 %v1377_v2 }
 0x11b   : > { %1334 = vmatmul.bf16.gmra.mxu0 %v4645_v37  ;;  %v4655_v47 = vpack.c.b16 %v2066_v33, %v2065_v15  ;;  %v4657_v16 = vpack.c.b16 %v1887_v4, %v1886_v51  ;;  %v1513_v33 = vunpack.c.l.b16 %v1377_v2 }
 0x11c   : > { %v4659_v36 = vpop.permute.xlu2 %2010 }
 0x11d   : > { %5727 = vst [vmem:[#allocation19_spill] sm:$0xff] %v4659_v36  ;;  %3700 = vset.pattern.permute.xlu0 %v5728_v63  ;;  %3685 = vset.pattern.permute.xlu2 %v5729_v10 }
 0x11e   : > { %2026 = vperm.xlu0 %3700, %v4385_v28   ;;  %1632 = vperm.xlu2 %3685, %v4351_v14   ;;  %v1085_v58 = vpop.f32.mrf.mxu1 }
 0x11f   : > { %3686 = vset.pattern.permute.xlu1 %v5730_v1  ;;  %v1386_v34 = vpack.c.bf16 %v4580_v9, %v1085_v58  ;;  %v984_v59 = vpop.f32.mrf.mxu2 }
 0x120   : > { %1811 = vperm.xlu1 %3686, %v4351_v14   ;;  %v1381_v4 = vpack.c.bf16 %v4575_v61, %v984_v59 }
 0x121   : > { %v4671_v15 = vpop.permute.xlu0 %1624  ;;  %v4673_v36 = vpop.permute.xlu1 %2042  ;;  %v1888_v59 = vunpack.c.l.b16 %v1386_v34  ;;  %v2067_v2 = vunpack.c.h.b16 %v1386_v34 }
 0x122   : > { %v4669_v51 = vpop.f32.mrf.mxu3  ;;  %5731 = vst [vmem:[#allocation20_spill] sm:$0xff] %v4671_v15  ;;  %v1514_v19 = vunpack.c.l.b16 %v1381_v4  ;;  %v1692_v30 = vunpack.c.h.b16 %v1381_v4  ;;  %v4675_v6 = vpop.f32.mrf.mxu0  ;;  %v5735_v4 = vmov 4  }
 0x123   : > { %5732 = vst [vmem:[#allocation21_spill] sm:$0xff] %v4673_v36 }
 0x124   : > { %v4677_v48 = vpack.c.b16 %v1692_v30, %v1691_v29  ;;  %v4679_v9 = vpack.c.b16 %v1514_v19, %v1513_v33 }
 0x125   : > { %v4681_v58 = vpop.permute.xlu2 %1803 }
 0x126   : > { %5733 = vst [vmem:[#allocation22_spill] sm:$0xff] %v4679_v9  ;;  %1280 = vmatmul.bf16.gmra.mxu1 %v4100_v0  ;;  %3702 = vset.pattern.permute.xlu0 %v5729_v10  ;;  %v1087_v61 = vpop.f32.mrf.mxu1  ;;  %v3729_v0 = vld [vmem:[%s3858_s8 + $0x28] sm:$0xff] }
 0x127   : > { %5734 = vst [vmem:[#allocation23_spill] sm:$0xff] %v4681_v58  ;;  %3688 = vset.pattern.permute.xlu2 %v5735_v4  ;;  %1656 = vperm.xlu0 %3702, %v4402_v32   ;;  %v1390_v30 = vpack.c.bf16 %v4601_v45, %v1087_v61  ;;  %v4696_v58 = vld [vmem:[%s3858_s8 + $0x38] sm:$0xff]  ;;  %s3530_s8 = sshll.u32 %s5873_s21, 10 }
 0x128   : > { %3687 = vset.pattern.permute.xlu1 %v5728_v63  ;;  %2185 = vperm.xlu2 %3688, %v4351_v14   ;;  %v987_v29 = vpop.f32.mrf.mxu2  ;;  %s5091_s21 = scalar_lea.vmem %s5687_s6, %s3530_s8 }
 0x129   : > { %2006 = vperm.xlu1 %3687, %v4351_v14   ;;  %1182 = vmatmul.bf16.gmra.mxu2 %v3729_v0  ;;  %v1889_v33 = vunpack.c.l.b16 %v1390_v30  ;;  %v2068_v36 = vunpack.c.h.b16 %v1390_v30  ;;  %v1385_v34 = vpack.c.bf16 %v4598_v46, %v987_v29  ;;  %v5740_v29 = vmov 0  }
 0x12a   : > { %v4690_v19 = vpop.f32.mrf.mxu3  ;;  %1241 = vmatmul.bf16.gmra.mxu3 %v4696_v58  ;;  %v4708_v26 = vpop.f32.mrf.mxu0 }
 0x12b   : > { %1339 = vmatmul.bf16.gmra.mxu0 %v4696_v58  ;;  %v4700_v45 = vpop.permute.xlu1 %2189  ;;  %v4702_v61 = vpop.permute.xlu0 %2177  ;;  %v4704_v15 = vpack.c.b16 %v2068_v36, %v2067_v2  ;;  %v4706_v18 = vpack.c.b16 %v1889_v33, %v1888_v59  ;;  %v1515_v59 = vunpack.c.l.b16 %v1385_v34  ;;  %v1693_v2 = vunpack.c.h.b16 %v1385_v34 }
 0x12c   : > { %5736 = vst [vmem:[#allocation24_spill] sm:$0xff] %v4700_v45 }
 0x12d   : > { %5737 = vst [vmem:[#allocation25_spill] sm:$0xff] %v4702_v61 }
 0x12e   : > { %5738 = vst [vmem:[#allocation26_spill] sm:$0xff] %v4706_v18  ;;  %v4710_v0 = vpop.permute.xlu2 %1476  ;;  %v1090_v30 = vpop.f32.mrf.mxu1 }
 0x12f   : > { %5739 = vst [vmem:[#allocation27_spill] sm:$0xff] %v4710_v0  ;;  %3707 = vset.pattern.permute.xlu0 %v5730_v1  ;;  %v1394_v46 = vpack.c.bf16 %v4624_v41, %v1090_v30 }
 0x130   : > { %3689 = vset.pattern.permute.xlu2 %v5740_v29  ;;  %1839 = vperm.xlu0 %3707, %v4424_v38   ;;  %v989_v45 = vpop.f32.mrf.mxu2 }
 0x131   : > { %3690 = vset.pattern.permute.xlu1 %v5740_v29  ;;  %1446 = vperm.xlu2 %3689, %v4367_v23   ;;  %v1389_v36 = vpack.c.bf16 %v4622_v35, %v989_v45  ;;  %v1890_v35 = vunpack.c.l.b16 %v1394_v46  ;;  %v2069_v45 = vunpack.c.h.b16 %v1394_v46 }
 0x132   : > { %v4716_v50 = vpop.f32.mrf.mxu3  ;;  %1486 = vperm.xlu1 %3690, %v4371_v24   ;;  %v4724_v30 = vpop.f32.mrf.mxu0 }
 0x133   : > { %v1516_v33 = vunpack.c.l.b16 %v1389_v36  ;;  %v1694_v61 = vunpack.c.h.b16 %v1389_v36 }
 0x134   : > { %v4722_v41 = vpop.permute.xlu0 %1436 }
 0x135   : > { %5741 = vst [vmem:[#allocation28_spill] sm:$0xff] %v4722_v41  ;;  %v4726_v0 = vpop.permute.xlu1 %1416  ;;  %v4728_v18 = vpack.c.b16 %v1694_v61, %v1693_v2  ;;  %v4730_v14 = vpack.c.b16 %v1516_v33, %v1515_v59 }
 0x136   : > { %5742 = vst [vmem:[#allocation29_spill] sm:$0xff] %v4726_v0  ;;  %1285 = vmatmul.bf16.gmra.mxu1 %v4645_v37  ;;  %v1092_v9 = vpop.f32.mrf.mxu1 }
 0x137   : > { %5743 = vst [vmem:[#allocation30_spill] sm:$0xff] %v4730_v14  ;;  %v4733_v56 = vpop.permute.xlu2 %1640  ;;  %v1398_v34 = vpack.c.bf16 %v4650_v20, %v1092_v9 }
 0x138   : > { %5744 = vst [vmem:[#allocation31_spill] sm:$0xff] %v4733_v56  ;;  %3709 = vset.pattern.permute.xlu0 %v5740_v29  ;;  %v992_v36 = vpop.f32.mrf.mxu2 }
 0x139   : > { %3694 = vset.pattern.permute.xlu2 %v5730_v1  ;;  %1466 = vperm.xlu0 %3709, %v4442_v42   ;;  %v1891_v61 = vunpack.c.l.b16 %v1398_v34  ;;  %v2070_v59 = vunpack.c.h.b16 %v1398_v34  ;;  %v1393_v2 = vpack.c.bf16 %v4642_v39, %v992_v36 }
 0x13a   : > { %v4737_v41 = vpop.f32.mrf.mxu3  ;;  %3691 = vset.pattern.permute.xlu1 %v5729_v10  ;;  %1859 = vperm.xlu2 %3694, %v4371_v24   ;;  %v4752_v46 = vpop.f32.mrf.mxu0 }
 0x13b   : > { %1187 = vmatmul.bf16.gmra.mxu2 %v4645_v37  ;;  %1723 = vmatmul.bf16.vlgmr.msrb.gmra.mxu3 %v4495_v27  ;;  %v4746_v20 = vpack.c.b16 %v2070_v59, %v2069_v45  ;;  %v4748_v9 = vpack.c.b16 %v1891_v61, %v1890_v35  ;;  %v1517_v45 = vunpack.c.l.b16 %v1393_v2  ;;  %v1695_v61 = vunpack.c.h.b16 %v1393_v2 }
 0x13c   : > { %1648 = vperm.xlu1 %3691, %v4367_v23   ;;  %2097 = vmatmul.bf16.vlgmr.msrb.gmra.mxu0 %v4473_v3 }
 0x13d   : > { %5745 = vst [vmem:[#allocation32_spill] sm:$0xff] %v4748_v9  ;;  %v4754_v33 = vpop.permute.xlu0 %1851 }
 0x13e   : > { %5746 = vst [vmem:[#allocation33_spill] sm:$0xff] %v4754_v33 }
 0x13f   : > { %v4756_v39 = vpop.permute.xlu1 %1998 }
 0x140   : > { %5747 = vst [vmem:[#allocation34_spill] sm:$0xff] %v4756_v39  ;;  %v4758_v34 = vpop.permute.xlu2 %2046  ;;  %v1095_v36 = vpop.f32.mrf.mxu1 }
 0x141   : > { %5748 = vst [vmem:[#allocation35_spill] sm:$0xff] %v4758_v34  ;;  %3712 = vset.pattern.permute.xlu0 %v5728_v63  ;;  %v1402_v37 = vpack.c.bf16 %v4675_v6, %v1095_v36  ;;  %v994_v27 = vpop.f32.mrf.mxu2 }
 0x142   : > { %v4762_v35 = vpop.f32.mrf.mxu3  ;;  %3695 = vset.pattern.permute.xlu2 %v5728_v63  ;;  %2038 = vperm.xlu0 %3712, %v4442_v42   ;;  %v1397_v3 = vpack.c.bf16 %v4669_v51, %v994_v27  ;;  %v4769_v34 = vpop.f32.mrf.mxu0 }
 0x143   : > { %2022 = vperm.xlu2 %3695, %v4367_v23   ;;  %v1892_v2 = vunpack.c.l.b16 %v1402_v37  ;;  %v2071_v0 = vunpack.c.h.b16 %v1402_v37 }
 0x144   : > { %3696 = vset.pattern.permute.xlu1 %v5728_v63  ;;  %v1518_v59 = vunpack.c.l.b16 %v1397_v3  ;;  %v1696_v33 = vunpack.c.h.b16 %v1397_v3 }
 0x145   : > { %2054 = vperm.xlu1 %3696, %v4371_v24  }
 0x146   : > { %1290 = vmatmul.bf16.gmra.mxu1 %v4696_v58  ;;  %v4773_v6 = vpack.c.b16 %v1696_v33, %v1695_v61  ;;  %v4775_v36 = vpack.c.b16 %v1518_v59, %v1517_v45 }
 0x147   : > { %v4777_v56 = vpop.permute.xlu0 %2014 }
 0x148   : > { %5749 = vst [vmem:[#allocation36_spill] sm:$0xff] %v4777_v56  ;;  %v4779_v51 = vpop.permute.xlu1 %1672  ;;  %v1097_v27 = vpop.f32.mrf.mxu1 }
 0x149   : > { %5750 = vst [vmem:[#allocation37_spill] sm:$0xff] %v4779_v51  ;;  %v1406_v39 = vpack.c.bf16 %v4708_v26, %v1097_v27  ;;  %v4782_v3 = vpop.permute.xlu2 %2193  ;;  %v997_v9 = vpop.f32.mrf.mxu2 }
 0x14a   : > { %5751 = vst [vmem:[#allocation38_spill] sm:$0xff] %v4782_v3  ;;  %3713 = vset.pattern.permute.xlu0 %v5735_v4  ;;  %v1401_v14 = vpack.c.bf16 %v4690_v19, %v997_v9  ;;  %v4786_v33 = vpop.f32.mrf.mxu3  ;;  %v4792_v26 = vpop.f32.mrf.mxu0 }
 0x14b   : > { %1192 = vmatmul.bf16.gmra.mxu2 %v4696_v58  ;;  %1728 = vmatmul.bf16.gmra.mxu3 %v4543_v44  ;;  %v1893_v45 = vunpack.c.l.b16 %v1406_v39  ;;  %v2072_v61 = vunpack.c.h.b16 %v1406_v39 }
 0x14c   : > { %3698 = vset.pattern.permute.xlu2 %v5729_v10  ;;  %2102 = vmatmul.bf16.gmra.mxu0 %v4517_v40 }
 0x14d   : > { %2197 = vperm.xlu0 %3713, %v4346_v12   ;;  %3699 = vset.pattern.permute.xlu1 %v5730_v1  ;;  %v4796_v37 = vpack.c.b16 %v2072_v61, %v2071_v0  ;;  %v4798_v19 = vpack.c.b16 %v1893_v45, %v1892_v2  ;;  %v1519_v45 = vunpack.c.l.b16 %v1401_v14  ;;  %v1697_v61 = vunpack.c.h.b16 %v1401_v14 }
 0x14e   : > { %1652 = vperm.xlu2 %3698, %v4385_v28   ;;  %1831 = vperm.xlu1 %3699, %v4385_v28  }
 0x150   : > { %v4802_v44 = vpop.permute.xlu0 %1807 }
 0x151   : > { %5752 = vst [vmem:[#allocation39_spill] sm:$0xff] %v4802_v44  ;;  %v4804_v58 = vpop.permute.xlu1 %1819  ;;  %v1256_v9 = vpop.f32.mrf.mxu1 }
 0x152   : > { %5753 = vst [vmem:[#allocation40_spill] sm:$0xff] %v4804_v58  ;;  %v1348_v40 = vpack.c.bf16 %v4724_v30, %v1256_v9  ;;  %v999_v39 = vpop.f32.mrf.mxu2  ;;  %v4807_v59 = vpop.f32.mrf.mxu3 }
 0x153   : > { %v4809_v27 = vpop.permute.xlu2 %2002  ;;  %v1405_v0 = vpack.c.bf16 %v4716_v50, %v999_v39 }
 0x154   : > { %v4812_v2 = vpop.f32.mrf.mxu0  ;;  %v2626_v39 = vunpack.c.l.b16 %v1348_v40  ;;  %v2805_v58 = vunpack.c.h.b16 %v1348_v40 }
 0x155   : > { %2209 = vperm.xlu0 %3713, %v4402_v32   ;;  %v1520_v3 = vunpack.c.l.b16 %v1405_v0  ;;  %v1698_v51 = vunpack.c.h.b16 %v1405_v0 }
 0x156   : > { %3703 = vset.pattern.permute.xlu2 %v5730_v1  ;;  %3701 = vset.pattern.permute.xlu1 %v5740_v29 }
 0x157   : > { %1835 = vperm.xlu2 %3703, %v4402_v32   ;;  %1456 = vperm.xlu1 %3701, %v4402_v32   ;;  %v4819_v30 = vpack.c.b16 %v1698_v51, %v1697_v61  ;;  %v4821_v9 = vpack.c.b16 %v1520_v3, %v1519_v45 }
 0x158   : > { %1918 = vmatmul.bf16.vlgmr.msrb.gmra.mxu1 %v4471_v17 }
 0x159   : > { %v4824_v50 = vpop.permute.xlu0 %1481  ;;  %v1258_v14 = vpop.f32.mrf.mxu1 }
 0x15a   : > { %5754 = vst [vmem:[#allocation41_spill] sm:$0xff] %v4824_v50  ;;  %v1352_v0 = vpack.c.bf16 %v4752_v46, %v1258_v14  ;;  %v4827_v44 = vpop.permute.xlu1 %1421  ;;  %v1158_v56 = vpop.f32.mrf.mxu2 }
 0x15b   : > { %1545 = vmatmul.bf16.vlgmr.msrb.gmra.mxu2 %v4493_v31  ;;  %1733 = vmatmul.bf16.gmra.mxu3 %v4588_v11  ;;  %v1347_v51 = vpack.c.bf16 %v4737_v41, %v1158_v56  ;;  %v4832_v3 = vpop.f32.mrf.mxu3 }
 0x15c   : > { %2107 = vmatmul.bf16.gmra.mxu0 %v4565_v62  ;;  %v2627_v17 = vunpack.c.l.b16 %v1352_v0  ;;  %v2806_v45 = vunpack.c.h.b16 %v1352_v0  ;;  %v4835_v61 = vpop.permute.xlu2 %1676  ;;  %v4837_v40 = vpop.f32.mrf.mxu0 }
 0x15d   : > { %5755 = vst [vmem:[#allocation42_spill] sm:$0xff] %v4835_v61  ;;  %2221 = vperm.xlu0 %3713, %v4304_v57   ;;  %v2252_v0 = vunpack.c.l.b16 %v1347_v51 }
 0x15e   : > { %v4840_v46 = vpack.c.b16 %v2627_v17, %v2626_v39  ;;  %v4842_v14 = vpack.c.b16 %v2806_v45, %v2805_v58 }
 0x15f   : > { %3705 = vset.pattern.permute.xlu2 %v5740_v29  ;;  %3704 = vset.pattern.permute.xlu1 %v5728_v63  ;;  %v2431_v29 = vunpack.c.h.b16 %v1347_v51 }
 0x160   : > { %1461 = vperm.xlu2 %3705, %v4424_v38   ;;  %2030 = vperm.xlu1 %3704, %v4402_v32  }
 0x161   : > { %v1261_v56 = vpop.f32.mrf.mxu1 }
 0x162   : > { %v1356_v31 = vpack.c.bf16 %v4769_v34, %v1261_v56  ;;  %v4849_v62 = vpop.permute.xlu0 %1644  ;;  %v1160_v11 = vpop.f32.mrf.mxu2 }
 0x163   : > { %v4851_v41 = vpop.permute.xlu1 %1628  ;;  %v1351_v39 = vpack.c.bf16 %v4762_v35, %v1160_v11  ;;  %v4854_v58 = vpop.f32.mrf.mxu3 }
 0x164   : > { %v2628_v51 = vunpack.c.l.b16 %v1356_v31  ;;  %v2807_v11 = vunpack.c.h.b16 %v1356_v31  ;;  %v5702_v31 = vmov 5  }
 0x165   : > { %2233 = vperm.xlu0 %3713, %v4371_v24   ;;  %v2253_v17 = vunpack.c.l.b16 %v1351_v39  ;;  %v2432_v45 = vunpack.c.h.b16 %v1351_v39 }
 0x166   : > { %v4857_v50 = vpop.permute.xlu2 %1823  ;;  %v4859_v61 = vpop.f32.mrf.mxu0 }
 0x167   : > { %5756 = vst [vmem:[#allocation43_spill] sm:$0xff] %v4857_v50  ;;  %v4861_v34 = vpack.c.b16 %v2253_v17, %v2252_v0  ;;  %v4863_v56 = vpack.c.b16 %v2432_v45, %v2431_v29 }
 0x168   : > { %3708 = vset.pattern.permute.xlu2 %v5728_v63  ;;  %3706 = vset.pattern.permute.xlu1 %v5729_v10 }
 0x169   : > { %2034 = vperm.xlu2 %3708, %v4424_v38   ;;  %1923 = vmatmul.bf16.gmra.mxu1 %v4519_v53  ;;  %v1263_v35 = vpop.f32.mrf.mxu1 }
 0x16a   : > { %1660 = vperm.xlu1 %3706, %v4424_v38   ;;  %v1360_v39 = vpack.c.bf16 %v4792_v26, %v1263_v35 }
 0x16b   : > { %1550 = vmatmul.bf16.gmra.mxu2 %v4545_v22  ;;  %1738 = vmatmul.bf16.gmra.mxu3 %v4630_v21  ;;  %v1163_v0 = vpop.f32.mrf.mxu2 }
 0x16c   : > { %2112 = vmatmul.bf16.gmra.mxu0 %v4608_v52  ;;  %v2629_v63 = vunpack.c.l.b16 %v1360_v39  ;;  %v2808_v29 = vunpack.c.h.b16 %v1360_v39  ;;  %v4874_v17 = vpop.permute.xlu0 %2050  ;;  %v1355_v53 = vpack.c.bf16 %v4786_v33, %v1163_v0  ;;  %v4877_v45 = vpop.f32.mrf.mxu3 }
 0x16d   : > { %5757 = vst [vmem:[#allocation44_spill] sm:$0xff] %v4874_v17  ;;  %3718 = vset.pattern.permute.xlu0 %v5702_v31  ;;  %v4880_v50 = vpop.permute.xlu1 %2181 }
 0x16e   : > { %5758 = vst [vmem:[#allocation45_spill] sm:$0xff] %v4880_v50  ;;  %2376 = vperm.xlu0 %3718, %v4327_v8   ;;  %v4883_v22 = vpop.f32.mrf.mxu0  ;;  %v4885_v21 = vpack.c.b16 %v2808_v29, %v2807_v11  ;;  %v4887_v52 = vpack.c.b16 %v2629_v63, %v2628_v51  ;;  %v2254_v63 = vunpack.c.l.b16 %v1355_v53  ;;  %v2433_v29 = vunpack.c.h.b16 %v1355_v53 }
 0x16f   : > { %v4889_v26 = vpop.permute.xlu2 %1426 }
 0x170   : > { %5759 = vst [vmem:[#allocation46_spill] sm:$0xff] %v4889_v26 }
 0x171   : > { %3710 = vset.pattern.permute.xlu2 %v5729_v10  ;;  %v1266_v33 = vpop.f32.mrf.mxu1 }
 0x172   : > { %3711 = vset.pattern.permute.xlu1 %v5730_v1  ;;  %1664 = vperm.xlu2 %3710, %v4442_v42   ;;  %v1364_v35 = vpack.c.bf16 %v4812_v2, %v1266_v33 }
 0x173   : > { %1843 = vperm.xlu1 %3711, %v4442_v42   ;;  %v1165_v39 = vpop.f32.mrf.mxu2 }
 0x174   : > { %v1359_v0 = vpack.c.bf16 %v4807_v59, %v1165_v39  ;;  %v4897_v11 = vpop.f32.mrf.mxu3  ;;  %v2630_v39 = vunpack.c.l.b16 %v1364_v35 }
 0x175   : > { %v4899_v51 = vpop.permute.xlu0 %1680 }
 0x176   : > { %5760 = vst [vmem:[#allocation47_spill] sm:$0xff] %v4899_v51  ;;  %2396 = vperm.xlu0 %3718, %v4367_v23   ;;  %v2255_v10 = vunpack.c.l.b16 %v1359_v0  ;;  %v2434_v31 = vunpack.c.h.b16 %v1359_v0  ;;  %v4902_v1 = vpop.permute.xlu1 %1441  ;;  %v2809_v51 = vunpack.c.h.b16 %v1364_v35 }
 0x177   : > { %5761 = vst [vmem:[#allocation48_spill] sm:$0xff] %v4902_v1 }
 0x178   : > { %v4904_v50 = vpop.f32.mrf.mxu0  ;;  %v4906_v2 = vpop.permute.xlu2 %1632  ;;  %v4908_v33 = vpack.c.b16 %v2434_v31, %v2433_v29  ;;  %v4910_v17 = vpack.c.b16 %v2255_v10, %v2254_v63 }
 0x179   : > { %1928 = vmatmul.bf16.gmra.mxu1 %v4567_v54  ;;  %v1268_v59 = vpop.f32.mrf.mxu1 }
 0x17a   : > { %3715 = vset.pattern.permute.xlu2 %v5735_v4  ;;  %v1368_v53 = vpack.c.bf16 %v4837_v40, %v1268_v59 }
 0x17b   : > { %3714 = vset.pattern.permute.xlu1 %v5735_v4  ;;  %2205 = vperm.xlu2 %3715, %v4385_v28   ;;  %v1168_v0 = vpop.f32.mrf.mxu2 }
 0x17c   : > { %2201 = vperm.xlu1 %3714, %v4367_v23   ;;  %1555 = vmatmul.bf16.gmra.mxu2 %v4590_v25  ;;  %v2631_v31 = vunpack.c.l.b16 %v1368_v53  ;;  %v2810_v63 = vunpack.c.h.b16 %v1368_v53  ;;  %v1363_v54 = vpack.c.bf16 %v4832_v3, %v1168_v0  ;;  %v4920_v29 = vpop.f32.mrf.mxu3 }
 0x17d   : > { %1743 = vmatmul.bf16.gmra.mxu3 %v4677_v48  ;;  %2117 = vmatmul.bf16.gmra.mxu0 %v4655_v47 }
 0x17e   : > { %2408 = vperm.xlu0 %3718, %v4424_v38   ;;  %v4925_v4 = vpop.permute.xlu0 %1827  ;;  %v4927_v40 = vpack.c.b16 %v2810_v63, %v2809_v51  ;;  %v4929_v35 = vpack.c.b16 %v2631_v31, %v2630_v39  ;;  %v2256_v39 = vunpack.c.l.b16 %v1363_v54  ;;  %v2435_v0 = vunpack.c.h.b16 %v1363_v54 }
 0x17f   : > { %5762 = vst [vmem:[#allocation49_spill] sm:$0xff] %v4925_v4 }
 0x180   : > { %5763 = vst [vmem:[#allocation50_spill] sm:$0xff] %v4929_v35  ;;  %v4931_v10 = vpop.permute.xlu1 %1855  ;;  %v4933_v25 = vpop.f32.mrf.mxu0 }
 0x181   : > { %5764 = vst [vmem:[#allocation51_spill] sm:$0xff] %v4931_v10  ;;  %v1271_v59 = vpop.f32.mrf.mxu1 }
 0x182   : > { %v4935_v3 = vpop.permute.xlu2 %2185  ;;  %v1372_v53 = vpack.c.bf16 %v4859_v61, %v1271_v59 }
 0x183   : > { %5765 = vst [vmem:[#allocation52_spill] sm:$0xff] %v4935_v3  ;;  %2217 = vperm.xlu2 %3715, %v4442_v42   ;;  %v1170_v48 = vpop.f32.mrf.mxu2 }
 0x184   : > { %2213 = vperm.xlu1 %3714, %v4424_v38   ;;  %v1367_v47 = vpack.c.bf16 %v4854_v58, %v1170_v48  ;;  %v4941_v51 = vpop.f32.mrf.mxu3  ;;  %v2632_v48 = vunpack.c.l.b16 %v1372_v53  ;;  %v2811_v4 = vunpack.c.h.b16 %v1372_v53 }
 0x186   : > { %2420 = vperm.xlu0 %3718, %v4324_v7   ;;  %v2257_v31 = vunpack.c.l.b16 %v1367_v47  ;;  %v2436_v63 = vunpack.c.h.b16 %v1367_v47 }
 0x187   : > { %v4944_v10 = vpop.permute.xlu0 %1451 }
 0x188   : > { %5766 = vst [vmem:[#allocation53_spill] sm:$0xff] %v4944_v10  ;;  %v4946_v3 = vpop.f32.mrf.mxu0  ;;  %v4948_v61 = vpack.c.b16 %v2436_v63, %v2435_v0  ;;  %v4950_v59 = vpack.c.b16 %v2257_v31, %v2256_v39 }
 0x189   : > { %1933 = vmatmul.bf16.gmra.mxu1 %v4610_v55  ;;  %v4953_v1 = vpop.permute.xlu1 %2018  ;;  %v1273_v58 = vpop.f32.mrf.mxu1 }
 0x18a   : > { %5767 = vst [vmem:[#allocation54_spill] sm:$0xff] %v4950_v59  ;;  %v1376_v54 = vpack.c.bf16 %v4883_v22, %v1273_v58  ;;  %v5704_v22 = vmov 6  }
 0x18b   : > { %2229 = vperm.xlu2 %3715, %v4348_v13   ;;  %v4957_v47 = vpop.permute.xlu2 %1446  ;;  %v1173_v10 = vpop.f32.mrf.mxu2 }
 0x18c   : > { %5768 = vst [vmem:[#allocation55_spill] sm:$0xff] %v4957_v47  ;;  %2225 = vperm.xlu1 %3714, %v4324_v7   ;;  %1560 = vmatmul.bf16.gmra.mxu2 %v4632_v49  ;;  %v2633_v39 = vunpack.c.l.b16 %v1376_v54  ;;  %v2812_v0 = vunpack.c.h.b16 %v1376_v54  ;;  %v1371_v55 = vpack.c.bf16 %v4877_v45, %v1173_v10  ;;  %v4962_v31 = vpop.f32.mrf.mxu3  ;;  %v5771_v10 = vmov 5  }
 0x18d   : > { %1748 = vmatmul.bf16.gmra.mxu3 %v4728_v18  ;;  %2122 = vmatmul.bf16.gmra.mxu0 %v4704_v15 }
 0x18e   : > { %3719 = vset.pattern.permute.xlu0 %v5704_v22  ;;  %v4967_v53 = vpack.c.b16 %v2812_v0, %v2811_v4  ;;  %v4969_v63 = vpack.c.b16 %v2633_v39, %v2632_v48  ;;  %v2258_v0 = vunpack.c.l.b16 %v1371_v55  ;;  %v2437_v22 = vunpack.c.h.b16 %v1371_v55  ;;  %v5775_v55 = vld [vmem:[#allocation2_spill] sm:$0xff] }
 0x18f   : > { %2547 = vperm.xlu0 %3719, %v4274_v43  }
 0x190   : > { %5769 = vst [vmem:[#allocation56_spill] sm:$0xff] %v4969_v63  ;;  %v4972_v49 = vpop.f32.mrf.mxu0  ;;  %v4974_v58 = vpop.permute.xlu0 %2026 }
 0x191   : > { %5770 = vst [vmem:[#allocation57_spill] sm:$0xff] %v4974_v58 }
 0x192   : > { %v4976_v45 = vpop.permute.xlu1 %1811 }
 0x193   : > { %3717 = vset.pattern.permute.xlu2 %v5771_v10  ;;  %v1276_v18 = vpop.f32.mrf.mxu1  ;;  %v1175_v54 = vpop.f32.mrf.mxu2 }
 0x194   : > { %3716 = vset.pattern.permute.xlu1 %v5771_v10  ;;  %2372 = vperm.xlu2 %3717, %v4306_v60   ;;  %v1380_v15 = vpack.c.bf16 %v4904_v50, %v1276_v18  ;;  %v4982_v4 = vpop.permute.xlu2 %1859  ;;  %v1375_v48 = vpack.c.bf16 %v4897_v11, %v1175_v54  ;;  %v4985_v39 = vpop.f32.mrf.mxu3 }
 0x195   : > { %5772 = vst [vmem:[#allocation58_spill] sm:$0xff] %v4982_v4  ;;  %2368 = vperm.xlu1 %3716, %v4274_v43  }
 0x196   : > { %v2259_v47 = vunpack.c.l.b16 %v1375_v48  ;;  %v2438_v63 = vunpack.c.h.b16 %v1375_v48  ;;  %v2634_v54 = vunpack.c.l.b16 %v1380_v15  ;;  %v2813_v4 = vunpack.c.h.b16 %v1380_v15  ;;  %v5776_v48 = vld [vmem:[#allocation22_spill] sm:$0xff] }
 0x197   : > { %2567 = vperm.xlu0 %3719, %v4322_v5  }
 0x198   : > { %v4989_v59 = vpop.f32.mrf.mxu0  ;;  %v4991_v10 = vpack.c.b16 %v2438_v63, %v2437_v22  ;;  %v4993_v58 = vpack.c.b16 %v2259_v47, %v2258_v0  ;;  %v5777_v47 = vld [vmem:[#allocation5_spill] sm:$0xff] }
 0x199   : > { %1938 = vmatmul.bf16.gmra.mxu1 %v4657_v16  ;;  %v4996_v50 = vpop.permute.xlu0 %1656 }
 0x19a   : > { %5773 = vst [vmem:[#allocation59_spill] sm:$0xff] %v4993_v58 }
 0x19b   : > { %5774 = vst [vmem:[#allocation60_spill] sm:$0xff] %v4996_v50  ;;  %v4998_v11 = vpop.permute.xlu1 %2006  ;;  %v1278_v18 = vpop.f32.mrf.mxu1 }
 0x19c   : > { %2384 = vperm.xlu2 %3717, %v5775_v55   ;;  %1565 = vmatmul.bf16.gmra.mxu2 %v5776_v48  ;;  %v1384_v35 = vpack.c.bf16 %v4933_v25, %v1278_v18  ;;  %v1178_v26 = vpop.f32.mrf.mxu2  ;;  %v5003_v22 = vpop.f32.mrf.mxu3 }
 0x19d   : > { %1753 = vmatmul.bf16.gmra.mxu3 %v4773_v6  ;;  %2380 = vperm.xlu1 %3716, %v5777_v47   ;;  %v1379_v16 = vpack.c.bf16 %v4920_v29, %v1178_v26  ;;  %v5009_v15 = vpop.permute.xlu2 %2022 }
 0x19e   : > { %2127 = vmatmul.bf16.gmra.mxu0 %v4746_v20  ;;  %v2635_v63 = vunpack.c.l.b16 %v1384_v35  ;;  %v2814_v0 = vunpack.c.h.b16 %v1384_v35 }
 0x19f   : > { %2579 = vperm.xlu0 %3719, %v4385_v28  }
 0x1a0   : > { %v5012_v48 = vpop.f32.mrf.mxu0  ;;  %v5014_v25 = vpack.c.b16 %v2814_v0, %v2813_v4  ;;  %v5016_v18 = vpack.c.b16 %v2635_v63, %v2634_v54  ;;  %v2260_v4 = vunpack.c.l.b16 %v1379_v16  ;;  %v2439_v0 = vunpack.c.h.b16 %v1379_v16  ;;  %v5786_v16 = vld [vmem:[#allocation30_spill] sm:$0xff] }
 0x1a2   : > { %5778 = vst [vmem:[#allocation2_spill] sm:$0xff] %v5014_v25  ;;  %v5018_v58 = vpop.permute.xlu0 %1839 }
 0x1a3   : > { %5779 = vst [vmem:[#allocation22_spill] sm:$0xff] %v5016_v18  ;;  %v1281_v6 = vpop.f32.mrf.mxu1 }
 0x1a4   : > { %5780 = vst [vmem:[#allocation5_spill] sm:$0xff] %v5018_v58  ;;  %2392 = vperm.xlu2 %3717, %v4346_v12   ;;  %v1388_v26 = vpack.c.bf16 %v4946_v3, %v1281_v6  ;;  %v5022_v20 = vpop.permute.xlu1 %1486  ;;  %v1180_v29 = vpop.f32.mrf.mxu2  ;;  %v5783_v3 = vld [vmem:[#allocation26_spill] sm:$0xff] }
 0x1a5   : > { %5781 = vst [vmem:[#allocation61_spill] sm:$0xff] %v5022_v20  ;;  %2388 = vperm.xlu1 %3716, %v4322_v5   ;;  %v1383_v35 = vpack.c.bf16 %v4941_v51, %v1180_v29  ;;  %v5026_v50 = vpop.f32.mrf.mxu3 }
 0x1a6   : > { %v2636_v29 = vunpack.c.l.b16 %v1388_v26  ;;  %v2815_v25 = vunpack.c.h.b16 %v1388_v26 }
 0x1a7   : > { %v2261_v54 = vunpack.c.l.b16 %v1383_v35  ;;  %v2440_v63 = vunpack.c.h.b16 %v1383_v35  ;;  %2591 = vperm.xlu0 %3719, %v4442_v42  }
 0x1a8   : > { %v5029_v58 = vpop.permute.xlu2 %1652  ;;  %v5031_v18 = vpop.f32.mrf.mxu0 }
 0x1a9   : > { %5782 = vst [vmem:[#allocation62_spill] sm:$0xff] %v5029_v58  ;;  %1943 = vmatmul.bf16.gmra.mxu1 %v5783_v3  ;;  %v5034_v6 = vpack.c.b16 %v2440_v63, %v2439_v0  ;;  %v5036_v20 = vpack.c.b16 %v2261_v54, %v2260_v4 }
 0x1ab   : > { %5784 = vst [vmem:[#allocation26_spill] sm:$0xff] %v5036_v20  ;;  %v1283_v5 = vpop.f32.mrf.mxu1  ;;  %v5038_v51 = vpop.permute.xlu0 %1466 }
 0x1ac   : > { %5785 = vst [vmem:[#allocation63_spill] sm:$0xff] %v5038_v51  ;;  %2404 = vperm.xlu2 %3717, %v4402_v32   ;;  %1570 = vmatmul.bf16.gmra.mxu2 %v5786_v16  ;;  %v1392_v35 = vpack.c.bf16 %v4972_v49, %v1283_v5  ;;  %v1183_v58 = vpop.f32.mrf.mxu2 }
 0x1ad   : > { %1758 = vmatmul.bf16.gmra.mxu3 %v4819_v30  ;;  %2400 = vperm.xlu1 %3716, %v4385_v28   ;;  %v1387_v0 = vpack.c.bf16 %v4962_v31, %v1183_v58  ;;  %v5046_v4 = vpop.f32.mrf.mxu3 }
 0x1ae   : > { %2132 = vmatmul.bf16.gmra.mxu0 %v4796_v37  ;;  %v2637_v54 = vunpack.c.l.b16 %v1392_v35  ;;  %v2816_v63 = vunpack.c.h.b16 %v1392_v35  ;;  %v5049_v26 = vpop.permute.xlu1 %1648 }
 0x1af   : > { %2603 = vperm.xlu0 %3719, %v4348_v13  }
 0x1b0   : > { %v5052_v3 = vpop.f32.mrf.mxu0  ;;  %v5054_v5 = vpack.c.b16 %v2816_v63, %v2815_v25  ;;  %v5056_v49 = vpack.c.b16 %v2637_v54, %v2636_v29  ;;  %v5791_v25 = vld [vmem:[#allocation9_spill] sm:$0xff]  ;;  %v5792_v29 = vld [vmem:[#allocation6_spill] sm:$0xff]  ;;  %v2262_v63 = vunpack.c.l.b16 %v1387_v0 }
 0x1b1   : > { %v5058_v30 = vpop.permute.xlu2 %1835  ;;  %v5070_v54 = vadd.f32 %v5792_v29, %v5791_v25 }
 0x1b2   : > { %5787 = vst [vmem:[#allocation30_spill] sm:$0xff] %v5054_v5  ;;  %v5707_v5 = vmov 7  }
 0x1b3   : > { %5788 = vst [vmem:[#allocation64_spill] sm:$0xff] %v5056_v49  ;;  %v1286_v16 = vpop.f32.mrf.mxu1  ;;  %v2441_v49 = vunpack.c.h.b16 %v1387_v0  ;;  %v5083_v25 = vperm.slane %v5070_v54, 3 }
 0x1b4   : > { %5789 = vst [vmem:[#allocation65_spill] sm:$0xff] %v5058_v30  ;;  %2416 = vperm.xlu2 %3717, %v4304_v57   ;;  %v1396_v37 = vpack.c.bf16 %v4989_v59, %v1286_v16  ;;  %v1185_v31 = vpop.f32.mrf.mxu2  ;;  %v5063_v58 = vpop.permute.xlu0 %2038  ;;  %v5794_v16 = vld [vmem:[#allocation32_spill] sm:$0xff] }
 0x1b5   : > { %2412 = vperm.xlu1 %3716, %v4442_v42   ;;  %5790 = vst [vmem:[#allocation66_spill] sm:$0xff] %v5063_v58  ;;  %v1391_v35 = vpack.c.bf16 %v4985_v39, %v1185_v31  ;;  %v5066_v51 = vpop.f32.mrf.mxu3 }
 0x1b7   : > { %v2263_v30 = vunpack.c.l.b16 %v1391_v35  ;;  %v2442_v20 = vunpack.c.h.b16 %v1391_v35  ;;  %3723 = vset.pattern.permute.xlu0 %v5707_v5  ;;  %v5073_v59 = vpop.permute.xlu1 %2054  ;;  %v5797_v35 = vld [vmem:[#allocation14_spill] sm:$0xff] }
 0x1b8   : > { %5793 = vst [vmem:[#allocation9_spill] sm:$0xff] %v5073_v59  ;;  %2746 = vperm.xlu0 %3723, %v4306_v60   ;;  %v2817_v59 = vunpack.c.h.b16 %v1396_v37 }
 0x1b9   : > { %1948 = vmatmul.bf16.gmra.mxu1 %v5794_v16  ;;  %v2098_v39 = vpop.f32.mrf.mxu0  ;;  %v5078_v31 = vpack.c.b16 %v2442_v20, %v2441_v49  ;;  %v5080_v58 = vpack.c.b16 %v2263_v30, %v2262_v63  ;;  %v2638_v16 = vunpack.c.l.b16 %v1396_v37 }
 0x1ba   : > { %v5085_v0 = vpop.permute.xlu2 %1461  ;;  %v2099_v29 = vadd.f32 %v2098_v39, %v5797_v35  ;;  %v5102_v35 = vperm.slane %v5070_v54, 1 }
 0x1bb   : > { %5795 = vst [vmem:[#allocation6_spill] sm:$0xff] %v5080_v58  ;;  %v1288_v5 = vpop.f32.mrf.mxu1  ;;  %v5800_v58 = vld [vmem:[#allocation34_spill] sm:$0xff] }
 0x1bc   : > { %5796 = vst [vmem:[#allocation32_spill] sm:$0xff] %v5085_v0  ;;  %v2139_v20 = vadd.f32 %v5083_v25, %v2099_v29  ;;  %2428 = vperm.xlu2 %3717, %v4371_v24   ;;  %1575 = vmatmul.bf16.gmra.mxu2 %v4775_v36  ;;  %v1400_v49 = vpack.c.bf16 %v5012_v48, %v1288_v5  ;;  %v5798_v36 = vld [vmem:[#allocation7_spill] sm:$0xff] }
 0x1bd   : > { %2471 = vmatmul.bf16.vlgmr.msra.gmra.mxu3 %v4863_v56  ;;  %2424 = vperm.xlu1 %3716, %v4348_v13  }
 0x1be   : > { %3446 = vst [vmem:[%s5091_s21 + $0x180] sm:$0xff] %v2139_v20  ;;  %2845 = vmatmul.bf16.vlgmr.msra.gmra.mxu0 %v4842_v14  ;;  %v2639_v30 = vunpack.c.l.b16 %v1400_v49  ;;  %v2818_v63 = vunpack.c.h.b16 %v1400_v49  ;;  %v1188_v39 = vpop.f32.mrf.mxu2  ;;  %v1724_v37 = vpop.f32.mrf.mxu3 }
 0x1bf   : > { %v1395_v29 = vpack.c.bf16 %v5003_v22, %v1188_v39  ;;  %v1725_v0 = vadd.f32 %v1724_v37, %v5798_v36  ;;  %v5106_v48 = vpop.permute.xlu0 %2197  ;;  %v5801_v36 = vmov 6  }
 0x1c0   : > { %5799 = vst [vmem:[#allocation14_spill] sm:$0xff] %v5106_v48  ;;  %2766 = vperm.xlu0 %3723, %v4346_v12   ;;  %v5109_v56 = vpop.permute.xlu1 %1831  ;;  %v5111_v14 = vpack.c.b16 %v2818_v63, %v2817_v59  ;;  %v5113_v5 = vpack.c.b16 %v2639_v30, %v2638_v16  ;;  %v5802_v16 = vld [vmem:[#allocation20_spill] sm:$0xff] }
 0x1c1   : > { %v1765_v20 = vadd.f32 %v5102_v35, %v1725_v0  ;;  %v2100_v49 = vpop.f32.mrf.mxu0 }
 0x1c2   : > { %v2101_v13 = vadd.f32 %v2100_v49, %v5800_v58 }
 0x1c3   : > { %3414 = vst [vmem:[%s5091_s21 + $0x80] sm:$0xff] %v1765_v20  ;;  %v5118_v22 = vpop.permute.xlu2 %2034  ;;  %v1291_v39 = vpop.f32.mrf.mxu1 }
 0x1c4   : > { %v2140_v37 = vadd.f32 %v5083_v25, %v2101_v13  ;;  %3721 = vset.pattern.permute.xlu2 %v5801_v36  ;;  %v1404_v48 = vpack.c.bf16 %v5031_v18, %v1291_v39  ;;  %v2264_v13 = vunpack.c.l.b16 %v1395_v29  ;;  %v2443_v18 = vunpack.c.h.b16 %v1395_v29 }
 0x1c5   : > { %3720 = vset.pattern.permute.xlu1 %v5801_v36  ;;  %2555 = vperm.xlu2 %3721, %v4327_v8  }
 0x1c6   : > { %3447 = vst [vmem:[%s5091_s21 + $0x188] sm:$0xff] %v2140_v37  ;;  %2551 = vperm.xlu1 %3720, %v4306_v60   ;;  %v1190_v59 = vpop.f32.mrf.mxu2  ;;  %v1726_v58 = vpop.f32.mrf.mxu3  ;;  %v2819_v29 = vunpack.c.h.b16 %v1404_v48 }
 0x1c7   : > { %v1399_v0 = vpack.c.bf16 %v5026_v50, %v1190_v59  ;;  %v1727_v30 = vadd.f32 %v1726_v58, %v5802_v16  ;;  %v5129_v63 = vpop.permute.xlu0 %2209  ;;  %v2640_v16 = vunpack.c.l.b16 %v1404_v48 }
 0x1c8   : > { %5803 = vst [vmem:[#allocation7_spill] sm:$0xff] %v5129_v63  ;;  %2778 = vperm.xlu0 %3723, %v4402_v32  }
 0x1c9   : > { %v2265_v20 = vunpack.c.l.b16 %v1399_v0  ;;  %v2444_v49 = vunpack.c.h.b16 %v1399_v0  ;;  %v1766_v39 = vadd.f32 %v5102_v35, %v1727_v30  ;;  %1953 = vmatmul.bf16.gmra.mxu1 %v4798_v19  ;;  %v5134_v60 = vpop.permute.xlu1 %1456  ;;  %v2103_v37 = vpop.f32.mrf.mxu0 }
 0x1ca   : > { %v2104_v50 = vadd.f32 %v2103_v37, %v4809_v27 }
 0x1cb   : > { %3415 = vst [vmem:[%s5091_s21 + $0x88] sm:$0xff] %v1766_v39  ;;  %v1293_v36 = vpop.f32.mrf.mxu1  ;;  %v5138_v59 = vpack.c.b16 %v2444_v49, %v2443_v18  ;;  %v5140_v58 = vpack.c.b16 %v2265_v20, %v2264_v13 }
 0x1cc   : > { %v2141_v0 = vadd.f32 %v5083_v25, %v2104_v50  ;;  %v5143_v63 = vpop.permute.xlu2 %1664  ;;  %1580 = vmatmul.bf16.gmra.mxu2 %v4821_v9  ;;  %v1408_v19 = vpack.c.bf16 %v5052_v3, %v1293_v36  ;;  %v5171_v36 = vperm.slane %v5070_v54, 2 }
 0x1cd   : > { %2476 = vmatmul.bf16.gmra.mxu3 %v4908_v33  ;;  %2563 = vperm.xlu2 %3721, %v5775_v55  }
 0x1ce   : > { %3448 = vst [vmem:[%s5091_s21 + $0x190] sm:$0xff] %v2141_v0  ;;  %2850 = vmatmul.bf16.gmra.mxu0 %v4885_v21  ;;  %v2641_v27 = vunpack.c.l.b16 %v1408_v19  ;;  %v2820_v30 = vunpack.c.h.b16 %v1408_v19  ;;  %2559 = vperm.xlu1 %3720, %v5777_v47   ;;  %v1193_v48 = vpop.f32.mrf.mxu2  ;;  %v1729_v13 = vpop.f32.mrf.mxu3 }
 0x1cf   : > { %v1403_v18 = vpack.c.bf16 %v5046_v4, %v1193_v48  ;;  %v1730_v9 = vadd.f32 %v1729_v13, %v4851_v41  ;;  %v5154_v3 = vpop.permute.xlu0 %2221 }
 0x1d0   : > { %2790 = vperm.xlu0 %3723, %v4304_v57   ;;  %v5157_v33 = vpack.c.b16 %v2820_v30, %v2819_v29  ;;  %v5159_v20 = vpack.c.b16 %v2641_v27, %v2640_v16  ;;  %v5804_v16 = vld [vmem:[#allocation12_spill] sm:$0xff] }
 0x1d1   : > { %v1767_v21 = vadd.f32 %v5102_v35, %v1730_v9  ;;  %v2105_v49 = vpop.f32.mrf.mxu0  ;;  %v2266_v30 = vunpack.c.l.b16 %v1403_v18  ;;  %v2445_v13 = vunpack.c.h.b16 %v1403_v18 }
 0x1d2   : > { %v2106_v39 = vadd.f32 %v2105_v49, %v4998_v11  ;;  %v5163_v37 = vpop.permute.xlu1 %2030 }
 0x1d3   : > { %3416 = vst [vmem:[%s5091_s21 + $0x90] sm:$0xff] %v1767_v21 }
 0x1d4   : > { %v2142_v4 = vadd.f32 %v5083_v25, %v2106_v39 }
 0x1d5   : > { %2575 = vperm.xlu2 %3721, %v4367_v23   ;;  %v5168_v41 = vpop.permute.xlu2 %2205  ;;  %v1919_v50 = vpop.f32.mrf.mxu1 }
 0x1d6   : > { %3449 = vst [vmem:[%s5091_s21 + $0x198] sm:$0xff] %v2142_v4  ;;  %2571 = vperm.xlu1 %3720, %v4346_v12   ;;  %v1920_v29 = vadd.f32 %v1919_v50, %v5804_v16  ;;  %v1195_v11 = vpop.f32.mrf.mxu2  ;;  %v1731_v0 = vpop.f32.mrf.mxu3 }
 0x1d7   : > { %v1407_v19 = vpack.c.bf16 %v5066_v51, %v1195_v11  ;;  %v1732_v27 = vadd.f32 %v1731_v0, %v4906_v2  ;;  %v5183_v39 = vpop.permute.xlu0 %2233  ;;  %v5805_v51 = vld [vmem:[#allocation19_spill] sm:$0xff] }
 0x1d8   : > { %v1960_v48 = vadd.f32 %v5171_v36, %v1920_v29  ;;  %2802 = vperm.xlu0 %3723, %v4371_v24   ;;  %v5806_v11 = vld [vmem:[#allocation23_spill] sm:$0xff] }
 0x1d9   : > { %v2267_v9 = vunpack.c.l.b16 %v1407_v19  ;;  %v2446_v21 = vunpack.c.h.b16 %v1407_v19  ;;  %v1768_v49 = vadd.f32 %v5102_v35, %v1732_v27  ;;  %2666 = vmatmul.bf16.vlgmr.msra.gmra.mxu1 %v4840_v46  ;;  %v2108_v12 = vpop.f32.mrf.mxu0 }
 0x1da   : > { %3430 = vst [vmem:[%s5091_s21 + $0x100] sm:$0xff] %v1960_v48  ;;  %v2109_v4 = vadd.f32 %v2108_v12, %v5805_v51  ;;  %v5808_v48 = vld [vmem:[#allocation18_spill] sm:$0xff] }
 0x1db   : > { %3417 = vst [vmem:[%s5091_s21 + $0x98] sm:$0xff] %v1768_v49  ;;  %v5187_v2 = vpack.c.b16 %v2446_v21, %v2445_v13  ;;  %v5189_v50 = vpack.c.b16 %v2267_v9, %v2266_v30 }
 0x1dc   : > { %v2143_v18 = vadd.f32 %v5083_v25, %v2109_v4  ;;  %v5192_v16 = vpop.permute.xlu1 %1660  ;;  %2292 = vmatmul.bf16.vlgmr.msra.gmra.mxu2 %v4861_v34  ;;  %v5204_v34 = vperm.slane %v5070_v54, 0 }
 0x1dd   : > { %2481 = vmatmul.bf16.gmra.mxu3 %v4948_v61  ;;  %2587 = vperm.xlu2 %3721, %v4424_v38   ;;  %v5197_v46 = vpop.permute.xlu2 %2217  ;;  %v1921_v29 = vpop.f32.mrf.mxu1  ;;  %v5807_v61 = vld [vmem:[#allocation11_spill] sm:$0xff] }
 0x1de   : > { %3450 = vst [vmem:[%s5091_s21 + $0x1a0] sm:$0xff] %v2143_v18  ;;  %2855 = vmatmul.bf16.gmra.mxu0 %v4927_v40  ;;  %2583 = vperm.xlu1 %3720, %v4402_v32   ;;  %v1922_v0 = vadd.f32 %v1921_v29, %v5806_v11  ;;  %v1546_v19 = vpop.f32.mrf.mxu2  ;;  %v1734_v27 = vpop.f32.mrf.mxu3  ;;  %v5809_v32 = vld [vmem:[#allocation36_spill] sm:$0xff] }
 0x1df   : > { %v1547_v30 = vadd.f32 %v1546_v19, %v5807_v61  ;;  %v1735_v13 = vadd.f32 %v1734_v27, %v5808_v48  ;;  %v5810_v19 = vld [vmem:[#allocation39_spill] sm:$0xff]  ;;  %v5811_v61 = vld [vmem:[#allocation29_spill] sm:$0xff] }
 0x1e0   : > { %v1961_v9 = vadd.f32 %v5171_v36, %v1922_v0  ;;  %v5215_v51 = vpop.permute.xlu0 %2376 }
 0x1e1   : > { %v1587_v21 = vadd.f32 %v5204_v34, %v1547_v30  ;;  %v1769_v40 = vadd.f32 %v5102_v35, %v1735_v13  ;;  %v2110_v49 = vpop.f32.mrf.mxu0  ;;  %v5812_v13 = vld [vmem:[#allocation31_spill] sm:$0xff] }
 0x1e2   : > { %3431 = vst [vmem:[%s5091_s21 + $0x108] sm:$0xff] %v1961_v9  ;;  %v2111_v12 = vadd.f32 %v2110_v49, %v5809_v32 }
 0x1e3   : > { %1603 = vst [vmem:[%s5091_s21] sm:$0xff] %v1587_v21 }
 0x1e4   : > { %3418 = vst [vmem:[%s5091_s21 + $0xa0] sm:$0xff] %v1769_v40  ;;  %v2144_v4 = vadd.f32 %v5083_v25, %v2111_v12 }
 0x1e5   : > { %v5218_v18 = vpop.permute.xlu1 %1843  ;;  %2599 = vperm.xlu2 %3721, %v4324_v7   ;;  %v5221_v29 = vpop.permute.xlu2 %2229 }
 0x1e6   : > { %3451 = vst [vmem:[%s5091_s21 + $0x1a8] sm:$0xff] %v2144_v4  ;;  %2595 = vperm.xlu1 %3720, %v4304_v57   ;;  %v1924_v11 = vpop.f32.mrf.mxu1  ;;  %v1548_v0 = vpop.f32.mrf.mxu2  ;;  %v5813_v4 = vmov 7  }
 0x1e7   : > { %v1925_v27 = vadd.f32 %v1924_v11, %v5810_v19  ;;  %v1549_v30 = vadd.f32 %v1548_v0, %v5811_v61  ;;  %v1736_v48 = vpop.f32.mrf.mxu3 }
 0x1e8   : > { %v1737_v9 = vadd.f32 %v1736_v48, %v5812_v13  ;;  %v5248_v0 = vpop.permute.xlu0 %2396 }
 0x1e9   : > { %v1962_v21 = vadd.f32 %v5171_v36, %v1925_v27  ;;  %v1588_v40 = vadd.f32 %v5204_v34, %v1549_v30  ;;  %2671 = vmatmul.bf16.gmra.mxu1 %v4887_v52  ;;  %v2113_v49 = vpop.f32.mrf.mxu0 }
 0x1ea   : > { %v1770_v57 = vadd.f32 %v5102_v35, %v1737_v9  ;;  %v2114_v32 = vadd.f32 %v2113_v49, %v4953_v1  ;;  %v5814_v9 = vld [vmem:[#allocation13_spill] sm:$0xff] }
 0x1eb   : > { %3432 = vst [vmem:[%s5091_s21 + $0x110] sm:$0xff] %v1962_v21 }
 0x1ec   : > { %1604 = vst [vmem:[%s5091_s21 + $0x8] sm:$0xff] %v1588_v40  ;;  %v2145_v12 = vadd.f32 %v5083_v25, %v2114_v32  ;;  %2297 = vmatmul.bf16.gmra.mxu2 %v4910_v17  ;;  %v5815_v40 = vld [vmem:[#allocation46_spill] sm:$0xff] }
 0x1ed   : > { %3419 = vst [vmem:[%s5091_s21 + $0xa8] sm:$0xff] %v1770_v57  ;;  %2486 = vmatmul.bf16.gmra.mxu3 %v4991_v10  ;;  %3722 = vset.pattern.permute.xlu2 %v5813_v4 }
 0x1ee   : > { %3452 = vst [vmem:[%s5091_s21 + $0x1b0] sm:$0xff] %v2145_v12  ;;  %2860 = vmatmul.bf16.gmra.mxu0 %v4967_v53  ;;  %2607 = vperm.xlu1 %3720, %v4371_v24   ;;  %v5243_v52 = vpop.permute.xlu1 %2201  ;;  %v5245_v1 = vpop.permute.xlu2 %2372  ;;  %v5816_v12 = vld [vmem:[#allocation50_spill] sm:$0xff] }
 0x1ef   : > { %2742 = vperm.xlu2 %3722, %v4274_v43   ;;  %v1926_v17 = vpop.f32.mrf.mxu1  ;;  %v1551_v11 = vpop.f32.mrf.mxu2 }
 0x1f0   : > { %v1927_v10 = vadd.f32 %v1926_v17, %v4976_v45  ;;  %v1552_v53 = vadd.f32 %v1551_v11, %v4827_v44  ;;  %v1739_v19 = vpop.f32.mrf.mxu3 }
 0x1f1   : > { %v1740_v24 = vadd.f32 %v1739_v19, %v4849_v62  ;;  %v2115_v27 = vpop.f32.mrf.mxu0  ;;  %v5818_v19 = vld [vmem:[#allocation54_spill] sm:$0xff] }
 0x1f2   : > { %v1963_v61 = vadd.f32 %v5171_v36, %v1927_v10  ;;  %v1589_v30 = vadd.f32 %v5204_v34, %v1552_v53  ;;  %v2116_v43 = vadd.f32 %v2115_v27, %v5009_v15  ;;  %v5817_v10 = vld [vmem:[#allocation57_spill] sm:$0xff] }
 0x1f3   : > { %v1771_v48 = vadd.f32 %v5102_v35, %v1740_v24  ;;  %v5819_v24 = vld [vmem:[#allocation2_spill] sm:$0xff] }
 0x1f4   : > { %3433 = vst [vmem:[%s5091_s21 + $0x118] sm:$0xff] %v1963_v61  ;;  %v2146_v13 = vadd.f32 %v5083_v25, %v2116_v43 }
 0x1f5   : > { %1605 = vst [vmem:[%s5091_s21 + $0x10] sm:$0xff] %v1589_v30  ;;  %v5820_v30 = vld [vmem:[#allocation3_spill] sm:$0xff] }
 0x1f6   : > { %3420 = vst [vmem:[%s5091_s21 + $0xb0] sm:$0xff] %v1771_v48  ;;  %3724 = vset.pattern.permute.xlu1 %v5813_v4  ;;  %v5262_v44 = vpop.permute.xlu1 %2213  ;;  %v5264_v45 = vpop.permute.xlu2 %2384 }
 0x1f7   : > { %3453 = vst [vmem:[%s5091_s21 + $0x1b8] sm:$0xff] %v2146_v13  ;;  %2754 = vperm.xlu2 %3722, %v5777_v47   ;;  %v1929_v62 = vpop.f32.mrf.mxu1  ;;  %2750 = vperm.xlu1 %3724, %v4327_v8   ;;  %v1553_v15 = vpop.f32.mrf.mxu2  ;;  %v5821_v13 = vld [vmem:[#allocation40_spill] sm:$0xff] }
 0x1f8   : > { %v1930_v21 = vadd.f32 %v1929_v62, %v5814_v9  ;;  %v1554_v49 = vadd.f32 %v1553_v15, %v5815_v40  ;;  %v1741_v57 = vpop.f32.mrf.mxu3  ;;  %v5273_v4 = vpop.permute.xlu0 %2408  ;;  %v5822_v62 = vld [vmem:[#allocation10_spill] sm:$0xff] }
 0x1f9   : > { %v1742_v32 = vadd.f32 %v1741_v57, %v5049_v26  ;;  %2676 = vmatmul.bf16.gmra.mxu1 %v5816_v12 }
 0x1fa   : > { %v1964_v47 = vadd.f32 %v5171_v36, %v1930_v21  ;;  %v1590_v17 = vadd.f32 %v5204_v34, %v1554_v49  ;;  %v2118_v11 = vpop.f32.mrf.mxu0  ;;  %v5823_v21 = vld [vmem:[#allocation62_spill] sm:$0xff] }
 0x1fb   : > { %v1772_v8 = vadd.f32 %v5102_v35, %v1742_v32  ;;  %v2119_v53 = vadd.f32 %v2118_v11, %v5817_v10 }
 0x1fc   : > { %3434 = vst [vmem:[%s5091_s21 + $0x120] sm:$0xff] %v1964_v47  ;;  %2302 = vmatmul.bf16.gmra.mxu2 %v5818_v19 }
 0x1fd   : > { %1606 = vst [vmem:[%s5091_s21 + $0x18] sm:$0xff] %v1590_v17  ;;  %v2147_v26 = vadd.f32 %v5083_v25, %v2119_v53  ;;  %2491 = vmatmul.bf16.gmra.mxu3 %v5034_v6 }
 0x1fe   : > { %3421 = vst [vmem:[%s5091_s21 + $0xb8] sm:$0xff] %v1772_v8  ;;  %2865 = vmatmul.bf16.gmra.mxu0 %v5819_v24  ;;  %v5286_v27 = vpop.permute.xlu1 %2225  ;;  %v5288_v61 = vpop.permute.xlu2 %2392  ;;  %v5825_v24 = vld [vmem:[#allocation28_spill] sm:$0xff] }
 0x1ff   : > { %3454 = vst [vmem:[%s5091_s21 + $0x1c0] sm:$0xff] %v2147_v26  ;;  %2762 = vperm.xlu2 %3722, %v5820_v30   ;;  %v1931_v43 = vpop.f32.mrf.mxu1  ;;  %2758 = vperm.xlu1 %3724, %v5775_v55   ;;  %v1556_v48 = vpop.f32.mrf.mxu2 }
 0x200   : > { %v1932_v6 = vadd.f32 %v1931_v43, %v5821_v13  ;;  %v1557_v15 = vadd.f32 %v1556_v48, %v5822_v62  ;;  %v1744_v9 = vpop.f32.mrf.mxu3  ;;  %v5300_v17 = vpop.permute.xlu0 %2420  ;;  %v5826_v43 = vld [vmem:[#allocation60_spill] sm:$0xff] }
 0x201   : > { %v1745_v40 = vadd.f32 %v1744_v9, %v5823_v21  ;;  %v5827_v13 = vld [vmem:[#allocation56_spill] sm:$0xff]  ;;  %v5828_v9 = vld [vmem:[#allocation59_spill] sm:$0xff] }
 0x202   : > { %v1965_v49 = vadd.f32 %v5171_v36, %v1932_v6  ;;  %v1591_v57 = vadd.f32 %v5204_v34, %v1557_v15  ;;  %v2120_v32 = vpop.f32.mrf.mxu0 }
 0x203   : > { %v1773_v12 = vadd.f32 %v5102_v35, %v1745_v40  ;;  %v2121_v47 = vadd.f32 %v2120_v32, %v5163_v37  ;;  %v5824_v37 = vld [vmem:[#allocation43_spill] sm:$0xff] }
 0x204   : > { %3435 = vst [vmem:[%s5091_s21 + $0x128] sm:$0xff] %v1965_v49  ;;  %v5829_v49 = vld [vmem:[#allocation30_spill] sm:$0xff] }
 0x205   : > { %1607 = vst [vmem:[%s5091_s21 + $0x20] sm:$0xff] %v1591_v57  ;;  %v2148_v55 = vadd.f32 %v5083_v25, %v2121_v47 }
 0x206   : > { %3422 = vst [vmem:[%s5091_s21 + $0xc0] sm:$0xff] %v1773_v12  ;;  %v5306_v11 = vpop.permute.xlu2 %2404  ;;  %v5830_v12 = vld [vmem:[#allocation49_spill] sm:$0xff] }
 0x207   : > { %3455 = vst [vmem:[%s5091_s21 + $0x1c8] sm:$0xff] %v2148_v55  ;;  %2774 = vperm.xlu2 %3722, %v4385_v28   ;;  %v1934_v8 = vpop.f32.mrf.mxu1  ;;  %2770 = vperm.xlu1 %3724, %v4367_v23   ;;  %v5311_v10 = vpop.permute.xlu1 %2368 }
 0x208   : > { %v1935_v53 = vadd.f32 %v1934_v8, %v5824_v37  ;;  %v1558_v19 = vpop.f32.mrf.mxu2  ;;  %v1746_v26 = vpop.f32.mrf.mxu3  ;;  %v5831_v8 = vld [vmem:[#allocation48_spill] sm:$0xff] }
 0x209   : > { %v1559_v30 = vadd.f32 %v1558_v19, %v5825_v24  ;;  %v1747_v48 = vadd.f32 %v1746_v26, %v5826_v43  ;;  %2681 = vmatmul.bf16.gmra.mxu1 %v5827_v13  ;;  %v5326_v40 = vpop.permute.xlu0 %2547  ;;  %v5833_v13 = vld [vmem:[#allocation4_spill] sm:$0xff] }
 0x20a   : > { %v1966_v28 = vadd.f32 %v5171_v36, %v1935_v53  ;;  %v2123_v6 = vpop.f32.mrf.mxu0 }
 0x20b   : > { %v1592_v62 = vadd.f32 %v5204_v34, %v1559_v30  ;;  %v1774_v23 = vadd.f32 %v5102_v35, %v1747_v48  ;;  %v2124_v15 = vadd.f32 %v2123_v6, %v5118_v22  ;;  %v5832_v30 = vld [vmem:[#allocation66_spill] sm:$0xff] }
 0x20c   : > { %3436 = vst [vmem:[%s5091_s21 + $0x130] sm:$0xff] %v1966_v28  ;;  %2307 = vmatmul.bf16.gmra.mxu2 %v5828_v9  ;;  %v5834_v9 = vld [vmem:[#allocation55_spill] sm:$0xff] }
 0x20d   : > { %1608 = vst [vmem:[%s5091_s21 + $0x28] sm:$0xff] %v1592_v62  ;;  %v2149_v21 = vadd.f32 %v5083_v25, %v2124_v15  ;;  %2496 = vmatmul.bf16.gmra.mxu3 %v5078_v31 }
 0x20e   : > { %3423 = vst [vmem:[%s5091_s21 + $0xc8] sm:$0xff] %v1774_v23  ;;  %2870 = vmatmul.bf16.gmra.mxu0 %v5829_v49  ;;  %v5330_v57 = vpop.permute.xlu2 %2416 }
 0x20f   : > { %3456 = vst [vmem:[%s5091_s21 + $0x1d0] sm:$0xff] %v2149_v21  ;;  %2786 = vperm.xlu2 %3722, %v4442_v42   ;;  %v1936_v22 = vpop.f32.mrf.mxu1  ;;  %2782 = vperm.xlu1 %3724, %v4424_v38   ;;  %v5335_v32 = vpop.permute.xlu1 %2380 }
 0x210   : > { %v1937_v31 = vadd.f32 %v1936_v22, %v5830_v12  ;;  %v1561_v47 = vpop.f32.mrf.mxu2  ;;  %v1749_v55 = vpop.f32.mrf.mxu3  ;;  %v5835_v22 = vld [vmem:[#allocation22_spill] sm:$0xff] }
 0x211   : > { %v1562_v37 = vadd.f32 %v1561_v47, %v5831_v8  ;;  %v1750_v53 = vadd.f32 %v1749_v55, %v5192_v16  ;;  %v5356_v15 = vpop.permute.xlu0 %2567  ;;  %v5837_v8 = vld [vmem:[#allocation26_spill] sm:$0xff] }
 0x212   : > { %v1967_v19 = vadd.f32 %v5171_v36, %v1937_v31  ;;  %v2125_v26 = vpop.f32.mrf.mxu0 }
 0x213   : > { %v1593_v42 = vadd.f32 %v5204_v34, %v1562_v37  ;;  %v1775_v24 = vadd.f32 %v5102_v35, %v1750_v53  ;;  %v2126_v38 = vadd.f32 %v2125_v26, %v5832_v30  ;;  %v5839_v30 = vld [vmem:[#allocation53_spill] sm:$0xff] }
 0x214   : > { %3437 = vst [vmem:[%s5091_s21 + $0x138] sm:$0xff] %v1967_v19  ;;  %v5838_v19 = vld [vmem:[#allocation65_spill] sm:$0xff] }
 0x215   : > { %1609 = vst [vmem:[%s5091_s21 + $0x30] sm:$0xff] %v1593_v42  ;;  %v2150_v43 = vadd.f32 %v5083_v25, %v2126_v38 }
 0x216   : > { %3424 = vst [vmem:[%s5091_s21 + $0xd0] sm:$0xff] %v1775_v24  ;;  %v5348_v48 = vpop.permute.xlu2 %2428 }
 0x217   : > { %3457 = vst [vmem:[%s5091_s21 + $0x1d8] sm:$0xff] %v2150_v43  ;;  %2798 = vperm.xlu2 %3722, %v5833_v13   ;;  %v1939_v16 = vpop.f32.mrf.mxu1  ;;  %2794 = vperm.xlu1 %3724, %v4324_v7   ;;  %v5353_v28 = vpop.permute.xlu1 %2388  ;;  %v5840_v13 = vld [vmem:[#allocation17_spill] sm:$0xff] }
 0x218   : > { %v1940_v6 = vadd.f32 %v1939_v16, %v5109_v56  ;;  %v1563_v62 = vpop.f32.mrf.mxu2  ;;  %v1751_v23 = vpop.f32.mrf.mxu3  ;;  %v5836_v56 = vld [vmem:[#allocation21_spill] sm:$0xff] }
 0x219   : > { %v1564_v21 = vadd.f32 %v1563_v62, %v5834_v9  ;;  %v1752_v49 = vadd.f32 %v1751_v23, %v5143_v63  ;;  %2686 = vmatmul.bf16.gmra.mxu1 %v5835_v22  ;;  %v5841_v9 = vld [vmem:[#allocation35_spill] sm:$0xff] }
 0x21a   : > { %v1968_v12 = vadd.f32 %v5171_v36, %v1940_v6 }
 0x21b   : > { %v1594_v7 = vadd.f32 %v5204_v34, %v1564_v21  ;;  %v1776_v31 = vadd.f32 %v5102_v35, %v1752_v49  ;;  %v2128_v47 = vpop.f32.mrf.mxu0 }
 0x21c   : > { %3438 = vst [vmem:[%s5091_s21 + $0x140] sm:$0xff] %v1968_v12  ;;  %v2129_v55 = vadd.f32 %v2128_v47, %v5836_v56  ;;  %2312 = vmatmul.bf16.gmra.mxu2 %v5837_v8 }
 0x21d   : > { %1610 = vst [vmem:[%s5091_s21 + $0x38] sm:$0xff] %v1594_v7  ;;  %2501 = vmatmul.bf16.gmra.mxu3 %v5138_v59  ;;  %v5842_v7 = vld [vmem:[#allocation5_spill] sm:$0xff] }
 0x21e   : > { %3425 = vst [vmem:[%s5091_s21 + $0xd8] sm:$0xff] %v1776_v31  ;;  %v2151_v63 = vadd.f32 %v5083_v25, %v2129_v55  ;;  %2875 = vmatmul.bf16.gmra.mxu0 %v5111_v14  ;;  %v5381_v14 = vpop.permute.xlu0 %2579 }
 0x21f   : > { %v1941_v37 = vpop.f32.mrf.mxu1  ;;  %v5372_v53 = vpop.permute.xlu1 %2400 }
 0x220   : > { %3458 = vst [vmem:[%s5091_s21 + $0x1e0] sm:$0xff] %v2151_v63  ;;  %v1942_v26 = vadd.f32 %v1941_v37, %v5838_v19  ;;  %v5376_v42 = vpop.permute.xlu2 %2555  ;;  %v1566_v24 = vpop.f32.mrf.mxu2  ;;  %v5843_v63 = vld [vmem:[#allocation64_spill] sm:$0xff]  ;;  %v5844_v19 = vld [vmem:[#allocation37_spill] sm:$0xff] }
 0x221   : > { %v1567_v59 = vadd.f32 %v1566_v24, %v5839_v30  ;;  %v1754_v38 = vpop.f32.mrf.mxu3 }
 0x222   : > { %v1969_v43 = vadd.f32 %v5171_v36, %v1942_v26  ;;  %v1755_v16 = vadd.f32 %v1754_v38, %v5840_v13  ;;  %v5845_v38 = vld [vmem:[#allocation44_spill] sm:$0xff]  ;;  %v5846_v13 = vld [vmem:[#allocation6_spill] sm:$0xff] }
 0x223   : > { %v1595_v6 = vadd.f32 %v5204_v34, %v1567_v59  ;;  %v2130_v62 = vpop.f32.mrf.mxu0 }
 0x224   : > { %3439 = vst [vmem:[%s5091_s21 + $0x148] sm:$0xff] %v1969_v43  ;;  %v1777_v23 = vadd.f32 %v5102_v35, %v1755_v16  ;;  %v2131_v21 = vadd.f32 %v2130_v62, %v5841_v9 }
 0x225   : > { %1611 = vst [vmem:[%s5091_s21 + $0x40] sm:$0xff] %v1595_v6 }
 0x226   : > { %3426 = vst [vmem:[%s5091_s21 + $0xe0] sm:$0xff] %v1777_v23  ;;  %v2152_v49 = vadd.f32 %v5083_v25, %v2131_v21  ;;  %v5405_v16 = vpop.permute.xlu0 %2591 }
 0x227   : > { %v1944_v22 = vpop.f32.mrf.mxu1  ;;  %v5390_v12 = vpop.permute.xlu1 %2412 }
 0x228   : > { %3459 = vst [vmem:[%s5091_s21 + $0x1e8] sm:$0xff] %v2152_v49  ;;  %v1945_v31 = vadd.f32 %v1944_v22, %v5842_v7  ;;  %v5394_v47 = vpop.permute.xlu2 %2563  ;;  %v1568_v56 = vpop.f32.mrf.mxu2  ;;  %v5847_v49 = vld [vmem:[#allocation32_spill] sm:$0xff] }
 0x229   : > { %v1569_v55 = vadd.f32 %v1568_v56, %v5134_v60  ;;  %v1756_v8 = vpop.f32.mrf.mxu3  ;;  %2691 = vmatmul.bf16.gmra.mxu1 %v5843_v63  ;;  %v5849_v63 = vld [vmem:[#allocation9_spill] sm:$0xff] }
 0x22a   : > { %v1970_v37 = vadd.f32 %v5171_v36, %v1945_v31  ;;  %v1757_v26 = vadd.f32 %v1756_v8, %v5844_v19  ;;  %v5848_v31 = vld [vmem:[#allocation42_spill] sm:$0xff] }
 0x22b   : > { %v1596_v24 = vadd.f32 %v5204_v34, %v1569_v55  ;;  %v2133_v30 = vpop.f32.mrf.mxu0 }
 0x22c   : > { %3440 = vst [vmem:[%s5091_s21 + $0x150] sm:$0xff] %v1970_v37  ;;  %v1778_v59 = vadd.f32 %v5102_v35, %v1757_v26  ;;  %v2134_v43 = vadd.f32 %v2133_v30, %v5845_v38  ;;  %2317 = vmatmul.bf16.gmra.mxu2 %v5846_v13 }
 0x22d   : > { %1612 = vst [vmem:[%s5091_s21 + $0x48] sm:$0xff] %v1596_v24  ;;  %2506 = vmatmul.bf16.gmra.mxu3 %v5187_v2  ;;  %v5850_v24 = vld [vmem:[#allocation16_spill] sm:$0xff] }
 0x22e   : > { %3427 = vst [vmem:[%s5091_s21 + $0xe8] sm:$0xff] %v1778_v59  ;;  %v2153_v60 = vadd.f32 %v5083_v25, %v2134_v43  ;;  %2880 = vmatmul.bf16.gmra.mxu0 %v5157_v33  ;;  %v5428_v19 = vpop.permute.xlu0 %2603  ;;  %v5851_v43 = vld [vmem:[#allocation63_spill] sm:$0xff] }
 0x22f   : > { %v1946_v6 = vpop.f32.mrf.mxu1  ;;  %v5412_v62 = vpop.permute.xlu1 %2424 }
 0x230   : > { %3460 = vst [vmem:[%s5091_s21 + $0x1f0] sm:$0xff] %v2153_v60  ;;  %v1947_v23 = vadd.f32 %v1946_v6, %v5218_v18  ;;  %v5416_v9 = vpop.permute.xlu2 %2575  ;;  %v1571_v21 = vpop.f32.mrf.mxu2 }
 0x231   : > { %v1572_v2 = vadd.f32 %v1571_v21, %v5847_v49  ;;  %v1759_v22 = vpop.f32.mrf.mxu3 }
 0x232   : > { %v1971_v7 = vadd.f32 %v5171_v36, %v1947_v23  ;;  %v1760_v56 = vadd.f32 %v1759_v22, %v5848_v31  ;;  %v5852_v23 = vld [vmem:[#allocation47_spill] sm:$0xff]  ;;  %v5853_v31 = vld [vmem:[#allocation33_spill] sm:$0xff] }
 0x233   : > { %v1597_v33 = vadd.f32 %v5204_v34, %v1572_v2  ;;  %v2135_v55 = vpop.f32.mrf.mxu0 }
 0x234   : > { %3441 = vst [vmem:[%s5091_s21 + $0x158] sm:$0xff] %v1971_v7  ;;  %v1779_v8 = vadd.f32 %v5102_v35, %v1760_v56  ;;  %v2136_v37 = vadd.f32 %v2135_v55, %v5849_v63  ;;  %v5854_v55 = vld [vmem:[#allocation15_spill] sm:$0xff] }
 0x235   : > { %1613 = vst [vmem:[%s5091_s21 + $0x50] sm:$0xff] %v1597_v33 }
 0x236   : > { %3428 = vst [vmem:[%s5091_s21 + $0xf0] sm:$0xff] %v1779_v8  ;;  %v2154_v18 = vadd.f32 %v5083_v25, %v2136_v37 }
 0x237   : > { %v1949_v26 = vpop.f32.mrf.mxu1 }
 0x238   : > { %3461 = vst [vmem:[%s5091_s21 + $0x1f8] sm:$0xff] %v2154_v18  ;;  %v1950_v30 = vadd.f32 %v1949_v26, %v5850_v24  ;;  %v5432_v59 = vpop.permute.xlu2 %2587  ;;  %v1573_v38 = vpop.f32.mrf.mxu2 }
 0x239   : > { %v1574_v13 = vadd.f32 %v1573_v38, %v5851_v43  ;;  %v1761_v60 = vpop.f32.mrf.mxu3  ;;  %v5435_v6 = vpop.permute.xlu1 %2551  ;;  %2696 = vmatmul.bf16.gmra.mxu1 %v5113_v5  ;;  %v5459_v38 = vperm.slane %v5070_v54, 7 }
 0x23a   : > { %v1972_v25 = vadd.f32 %v5171_v36, %v1950_v30  ;;  %v1762_v21 = vadd.f32 %v1761_v60, %v5852_v23  ;;  %v2747_v26 = vpop.permute.xlu0 %2746  ;;  %v5855_v23 = vld [vmem:[#allocation51_spill] sm:$0xff] }
 0x23b   : > { %v1598_v49 = vadd.f32 %v5204_v34, %v1574_v13  ;;  %v2846_v2 = vpop.f32.mrf.mxu0 }
 0x23c   : > { %3442 = vst [vmem:[%s5091_s21 + $0x160] sm:$0xff] %v1972_v25  ;;  %v1780_v22 = vadd.f32 %v5102_v35, %v1762_v21  ;;  %2322 = vmatmul.bf16.gmra.mxu2 %v5140_v58  ;;  %v5453_v35 = vperm.slane %v5070_v54, 5 }
 0x23d   : > { %1614 = vst [vmem:[%s5091_s21 + $0x58] sm:$0xff] %v1598_v49  ;;  %v5856_v49 = vld [vmem:[#allocation27_spill] sm:$0xff] }
 0x23e   : > { %3429 = vst [vmem:[%s5091_s21 + $0xf8] sm:$0xff] %v1780_v22 }
 0x23f   : > { %v1951_v7 = vpop.f32.mrf.mxu1 }
 0x240   : > { %v1952_v56 = vadd.f32 %v1951_v7, %v5853_v31  ;;  %v5447_v5 = vpop.permute.xlu2 %2599  ;;  %v1576_v33 = vpop.f32.mrf.mxu2 }
 0x241   : > { %v1577_v8 = vadd.f32 %v1576_v33, %v5854_v55  ;;  %v2472_v63 = vpop.f32.mrf.mxu3  ;;  %v5450_v37 = vpop.permute.xlu1 %2559 }
 0x242   : > { %v1973_v58 = vadd.f32 %v5171_v36, %v1952_v56  ;;  %v2473_v18 = vadd.f32 %v2472_v63, %v5311_v10 }
 0x243   : > { %v1599_v24 = vadd.f32 %v5204_v34, %v1577_v8  ;;  %v2848_v30 = vpop.f32.mrf.mxu0 }
 0x244   : > { %3443 = vst [vmem:[%s5091_s21 + $0x168] sm:$0xff] %v1973_v58  ;;  %v2513_v43 = vadd.f32 %v5453_v35, %v2473_v18  ;;  %v2849_v13 = vadd.f32 %v2848_v30, %v2747_v26 }
 0x245   : > { %1615 = vst [vmem:[%s5091_s21 + $0x60] sm:$0xff] %v1599_v24 }
 0x246   : > { %3478 = vst [vmem:[%s5091_s21 + $0x280] sm:$0xff] %v2513_v43  ;;  %v2888_v60 = vadd.f32 %v5459_v38, %v2849_v13 }
 0x247   : > { %v1954_v25 = vpop.f32.mrf.mxu1 }
 0x248   : > { %3511 = vst [vmem:[%s5091_s21 + $0x388] sm:$0xff] %v2888_v60  ;;  %v1955_v10 = vadd.f32 %v1954_v25, %v5855_v23  ;;  %v1578_v21 = vpop.f32.mrf.mxu2 }
 0x249   : > { %v1579_v22 = vadd.f32 %v1578_v21, %v5856_v49  ;;  %v2474_v7 = vpop.f32.mrf.mxu3  ;;  %v5469_v31 = vpop.permute.xlu1 %2571  ;;  %2701 = vmatmul.bf16.gmra.mxu1 %v5159_v20 }
 0x24a   : > { %v1974_v56 = vadd.f32 %v5171_v36, %v1955_v10  ;;  %v2475_v33 = vadd.f32 %v2474_v7, %v5245_v1  ;;  %v2743_v55 = vpop.permute.xlu2 %2742  ;;  %v5857_v1 = vld [vmem:[#allocation58_spill] sm:$0xff] }
 0x24b   : > { %v1600_v8 = vadd.f32 %v5204_v34, %v1579_v22  ;;  %v2847_v63 = vadd.f32 %v2846_v2, %v2743_v55  ;;  %v5475_v58 = vpop.f32.mrf.mxu0  ;;  %v5858_v2 = vld [vmem:[#allocation41_spill] sm:$0xff] }
 0x24c   : > { %3444 = vst [vmem:[%s5091_s21 + $0x170] sm:$0xff] %v1974_v56  ;;  %v2514_v18 = vadd.f32 %v5453_v35, %v2475_v33  ;;  %2327 = vmatmul.bf16.gmra.mxu2 %v5189_v50  ;;  %v5859_v55 = vld [vmem:[#allocation61_spill] sm:$0xff] }
 0x24d   : > { %1616 = vst [vmem:[%s5091_s21 + $0x68] sm:$0xff] %v1600_v8  ;;  %v2887_v26 = vadd.f32 %v5459_v38, %v2847_v63 }
 0x24e   : > { %3479 = vst [vmem:[%s5091_s21 + $0x288] sm:$0xff] %v2514_v18 }
 0x24f   : > { %3510 = vst [vmem:[%s5091_s21 + $0x380] sm:$0xff] %v2887_v26  ;;  %v1956_v20 = vpop.f32.mrf.mxu1 }
 0x250   : > { %v1957_v24 = vadd.f32 %v1956_v20, %v5857_v1  ;;  %v1581_v30 = vpop.f32.mrf.mxu2 }
 0x251   : > { %v1582_v43 = vadd.f32 %v1581_v30, %v5858_v2  ;;  %v2477_v13 = vpop.f32.mrf.mxu3  ;;  %v5486_v60 = vpop.permute.xlu1 %2583 }
 0x252   : > { %v1975_v50 = vadd.f32 %v5171_v36, %v1957_v24  ;;  %v2478_v25 = vadd.f32 %v2477_v13, %v5215_v51  ;;  %v2755_v10 = vpop.permute.xlu2 %2754  ;;  %v5497_v36 = vperm.slane %v5070_v54, 6  ;;  %v5513_v13 = vperm.slane %v5070_v54, 4 }
 0x253   : > { %v1601_v23 = vadd.f32 %v5204_v34, %v1582_v43  ;;  %v2853_v21 = vpop.f32.mrf.mxu0 }
 0x254   : > { %3445 = vst [vmem:[%s5091_s21 + $0x178] sm:$0xff] %v1975_v50  ;;  %v2515_v49 = vadd.f32 %v5453_v35, %v2478_v25  ;;  %v2854_v22 = vadd.f32 %v2853_v21, %v2755_v10  ;;  %v5860_v50 = vld [vmem:[#allocation8_spill] sm:$0xff] }
 0x255   : > { %1617 = vst [vmem:[%s5091_s21 + $0x70] sm:$0xff] %v1601_v23 }
 0x256   : > { %3480 = vst [vmem:[%s5091_s21 + $0x290] sm:$0xff] %v2515_v49  ;;  %v2890_v7 = vadd.f32 %v5459_v38, %v2854_v22 }
 0x257   : > { %v2667_v56 = vpop.f32.mrf.mxu1 }
 0x258   : > { %3513 = vst [vmem:[%s5091_s21 + $0x398] sm:$0xff] %v2890_v7  ;;  %v2668_v51 = vadd.f32 %v2667_v56, %v5326_v40  ;;  %v1583_v33 = vpop.f32.mrf.mxu2 }
 0x259   : > { %v1584_v8 = vadd.f32 %v1583_v33, %v5859_v55  ;;  %v2479_v63 = vpop.f32.mrf.mxu3  ;;  %v5502_v18 = vpop.permute.xlu1 %2595  ;;  %v5861_v33 = vld [vmem:[#allocation25_spill] sm:$0xff] }
 0x25a   : > { %v2708_v26 = vadd.f32 %v5497_v36, %v2668_v51  ;;  %v2480_v20 = vadd.f32 %v2479_v63, %v5335_v32  ;;  %v2763_v21 = vpop.permute.xlu2 %2762 }
 0x25b   : > { %v1602_v1 = vadd.f32 %v5204_v34, %v1584_v8  ;;  %v2856_v24 = vpop.f32.mrf.mxu0 }
 0x25c   : > { %3494 = vst [vmem:[%s5091_s21 + $0x300] sm:$0xff] %v2708_v26  ;;  %v2516_v30 = vadd.f32 %v5453_v35, %v2480_v20 }
 0x25d   : > { %1618 = vst [vmem:[%s5091_s21 + $0x78] sm:$0xff] %v1602_v1 }
 0x25e   : > { %3481 = vst [vmem:[%s5091_s21 + $0x298] sm:$0xff] %v2516_v30  ;;  %v2767_v30 = vpop.permute.xlu0 %2766 }
 0x25f   : > { %v2669_v40 = vpop.f32.mrf.mxu1 }
 0x260   : > { %v2670_v2 = vadd.f32 %v2669_v40, %v5435_v6  ;;  %v2293_v43 = vpop.f32.mrf.mxu2 }
 0x261   : > { %v2294_v32 = vadd.f32 %v2293_v43, %v5860_v50  ;;  %v2482_v34 = vpop.f32.mrf.mxu3  ;;  %v5516_v25 = vpop.permute.xlu1 %2607 }
 0x262   : > { %v2709_v23 = vadd.f32 %v5497_v36, %v2670_v2  ;;  %v2483_v10 = vadd.f32 %v2482_v34, %v5264_v45 }
 0x263   : > { %v2334_v49 = vadd.f32 %v5513_v13, %v2294_v32  ;;  %v2858_v22 = vpop.f32.mrf.mxu0 }
 0x264   : > { %3495 = vst [vmem:[%s5091_s21 + $0x308] sm:$0xff] %v2709_v23  ;;  %v2517_v6 = vadd.f32 %v5453_v35, %v2483_v10  ;;  %v2859_v7 = vadd.f32 %v2858_v22, %v2763_v21  ;;  %v5862_v23 = vld [vmem:[#allocation45_spill] sm:$0xff] }
 0x265   : > { %3462 = vst [vmem:[%s5091_s21 + $0x200] sm:$0xff] %v2334_v49 }
 0x266   : > { %3482 = vst [vmem:[%s5091_s21 + $0x2a0] sm:$0xff] %v2517_v6  ;;  %v2892_v54 = vadd.f32 %v5459_v38, %v2859_v7 }
 0x267   : > { %v2672_v56 = vpop.f32.mrf.mxu1 }
 0x268   : > { %3515 = vst [vmem:[%s5091_s21 + $0x3a8] sm:$0xff] %v2892_v54  ;;  %v2673_v51 = vadd.f32 %v2672_v56, %v5376_v42  ;;  %v2295_v45 = vpop.f32.mrf.mxu2 }
 0x269   : > { %v2296_v55 = vadd.f32 %v2295_v45, %v5861_v33  ;;  %v2484_v8 = vpop.f32.mrf.mxu3  ;;  %v2751_v63 = vpop.permute.xlu1 %2750 }
 0x26a   : > { %v2710_v26 = vadd.f32 %v5497_v36, %v2673_v51  ;;  %v2485_v20 = vadd.f32 %v2484_v8, %v5353_v28  ;;  %v2852_v1 = vadd.f32 %v5475_v58, %v2751_v63 }
 0x26b   : > { %v2335_v40 = vadd.f32 %v5513_v13, %v2296_v55  ;;  %v2861_v2 = vpop.f32.mrf.mxu0 }
 0x26c   : > { %3496 = vst [vmem:[%s5091_s21 + $0x310] sm:$0xff] %v2710_v26  ;;  %v2518_v42 = vadd.f32 %v5453_v35, %v2485_v20  ;;  %v2889_v43 = vadd.f32 %v5459_v38, %v2852_v1  ;;  %v2862_v50 = vadd.f32 %v2861_v2, %v2767_v30  ;;  %v2775_v30 = vpop.permute.xlu2 %2774 }
 0x26d   : > { %3463 = vst [vmem:[%s5091_s21 + $0x208] sm:$0xff] %v2335_v40 }
 0x26e   : > { %3483 = vst [vmem:[%s5091_s21 + $0x2a8] sm:$0xff] %v2518_v42  ;;  %v2893_v32 = vadd.f32 %v5459_v38, %v2862_v50 }
 0x26f   : > { %3512 = vst [vmem:[%s5091_s21 + $0x390] sm:$0xff] %v2889_v43  ;;  %v2674_v28 = vpop.f32.mrf.mxu1 }
 0x270   : > { %3516 = vst [vmem:[%s5091_s21 + $0x3b0] sm:$0xff] %v2893_v32  ;;  %v2675_v58 = vadd.f32 %v2674_v28, %v5450_v37  ;;  %v2298_v34 = vpop.f32.mrf.mxu2 }
 0x271   : > { %v2299_v10 = vadd.f32 %v2298_v34, %v5862_v23  ;;  %v2487_v21 = vpop.f32.mrf.mxu3  ;;  %v2759_v49 = vpop.permute.xlu1 %2758 }
 0x272   : > { %v2711_v22 = vadd.f32 %v5497_v36, %v2675_v58  ;;  %v2488_v6 = vadd.f32 %v2487_v21, %v5288_v61  ;;  %v2857_v7 = vadd.f32 %v2856_v24, %v2759_v49  ;;  %v5863_v61 = vld [vmem:[#allocation52_spill] sm:$0xff]  ;;  %v2779_v49 = vpop.permute.xlu0 %2778 }
 0x273   : > { %v2336_v54 = vadd.f32 %v5513_v13, %v2299_v10  ;;  %v2863_v56 = vpop.f32.mrf.mxu0  ;;  %v5864_v58 = vld [vmem:[#allocation24_spill] sm:$0xff] }
 0x274   : > { %3497 = vst [vmem:[%s5091_s21 + $0x318] sm:$0xff] %v2711_v22  ;;  %v2519_v51 = vadd.f32 %v5453_v35, %v2488_v6  ;;  %v2891_v45 = vadd.f32 %v5459_v38, %v2857_v7 }
 0x275   : > { %3464 = vst [vmem:[%s5091_s21 + $0x210] sm:$0xff] %v2336_v54 }
 0x276   : > { %3484 = vst [vmem:[%s5091_s21 + $0x2b0] sm:$0xff] %v2519_v51 }
 0x277   : > { %3514 = vst [vmem:[%s5091_s21 + $0x3a0] sm:$0xff] %v2891_v45  ;;  %v2677_v37 = vpop.f32.mrf.mxu1  ;;  %v5865_v45 = vld [vmem:[#allocation38_spill] sm:$0xff] }
 0x278   : > { %v2678_v33 = vadd.f32 %v2677_v37, %v5394_v47  ;;  %v2300_v55 = vpop.f32.mrf.mxu2 }
 0x279   : > { %v2301_v24 = vadd.f32 %v2300_v55, %v5863_v61  ;;  %v2489_v8 = vpop.f32.mrf.mxu3  ;;  %v2771_v63 = vpop.permute.xlu1 %2770 }
 0x27a   : > { %v2712_v26 = vadd.f32 %v5497_v36, %v2678_v33  ;;  %v2490_v20 = vadd.f32 %v2489_v8, %v5248_v0  ;;  %v2864_v1 = vadd.f32 %v2863_v56, %v2771_v63 }
 0x27b   : > { %v2337_v40 = vadd.f32 %v5513_v13, %v2301_v24  ;;  %v2866_v2 = vpop.f32.mrf.mxu0 }
 0x27c   : > { %3498 = vst [vmem:[%s5091_s21 + $0x320] sm:$0xff] %v2712_v26  ;;  %v2520_v47 = vadd.f32 %v5453_v35, %v2490_v20  ;;  %v2894_v42 = vadd.f32 %v5459_v38, %v2864_v1  ;;  %v2867_v43 = vadd.f32 %v2866_v2, %v2775_v30 }
 0x27d   : > { %3465 = vst [vmem:[%s5091_s21 + $0x218] sm:$0xff] %v2337_v40  ;;  %v5866_v40 = vld [vmem:[#allocation14_spill] sm:$0xff] }
 0x27e   : > { %3485 = vst [vmem:[%s5091_s21 + $0x2b8] sm:$0xff] %v2520_v47  ;;  %v2895_v50 = vadd.f32 %v5459_v38, %v2867_v43 }
 0x27f   : > { %3517 = vst [vmem:[%s5091_s21 + $0x3b8] sm:$0xff] %v2894_v42  ;;  %v2679_v0 = vpop.f32.mrf.mxu1 }
 0x280   : > { %3518 = vst [vmem:[%s5091_s21 + $0x3c0] sm:$0xff] %v2895_v50  ;;  %v2680_v32 = vadd.f32 %v2679_v0, %v5356_v15  ;;  %v2303_v28 = vpop.f32.mrf.mxu2  ;;  %v2787_v50 = vpop.permute.xlu2 %2786 }
 0x281   : > { %v2304_v34 = vadd.f32 %v2303_v28, %v5864_v58  ;;  %v2492_v23 = vpop.f32.mrf.mxu3  ;;  %v2783_v24 = vpop.permute.xlu1 %2782 }
 0x282   : > { %v2713_v10 = vadd.f32 %v5497_v36, %v2680_v32  ;;  %v2493_v21 = vadd.f32 %v2492_v23, %v5372_v53 }
 0x283   : > { %v2338_v22 = vadd.f32 %v5513_v13, %v2304_v34  ;;  %v2868_v6 = vpop.f32.mrf.mxu0 }
 0x284   : > { %3499 = vst [vmem:[%s5091_s21 + $0x328] sm:$0xff] %v2713_v10  ;;  %v2521_v7 = vadd.f32 %v5453_v35, %v2493_v21  ;;  %v2869_v54 = vadd.f32 %v2868_v6, %v2779_v49  ;;  %v2791_v6 = vpop.permute.xlu0 %2790 }
 0x285   : > { %3466 = vst [vmem:[%s5091_s21 + $0x220] sm:$0xff] %v2338_v22 }
 0x286   : > { %3486 = vst [vmem:[%s5091_s21 + $0x2c0] sm:$0xff] %v2521_v7  ;;  %v2896_v15 = vadd.f32 %v5459_v38, %v2869_v54 }
 0x287   : > { %v2682_v56 = vpop.f32.mrf.mxu1 }
 0x288   : > { %3519 = vst [vmem:[%s5091_s21 + $0x3c8] sm:$0xff] %v2896_v15  ;;  %v2683_v51 = vadd.f32 %v2682_v56, %v5469_v31  ;;  %v2305_v53 = vpop.f32.mrf.mxu2 }
 0x289   : > { %v2306_v37 = vadd.f32 %v2305_v53, %v5865_v45  ;;  %v2494_v33 = vpop.f32.mrf.mxu3 }
 0x28a   : > { %v2714_v55 = vadd.f32 %v5497_v36, %v2683_v51  ;;  %v2495_v61 = vadd.f32 %v2494_v33, %v5306_v11 }
 0x28b   : > { %v2339_v8 = vadd.f32 %v5513_v13, %v2306_v37  ;;  %v2871_v63 = vpop.f32.mrf.mxu0 }
 0x28c   : > { %3500 = vst [vmem:[%s5091_s21 + $0x330] sm:$0xff] %v2714_v55  ;;  %v2522_v26 = vadd.f32 %v5453_v35, %v2495_v61  ;;  %v2872_v20 = vadd.f32 %v2871_v63, %v2783_v24  ;;  %v2795_v55 = vpop.permute.xlu1 %2794 }
 0x28d   : > { %3467 = vst [vmem:[%s5091_s21 + $0x228] sm:$0xff] %v2339_v8 }
 0x28e   : > { %3487 = vst [vmem:[%s5091_s21 + $0x2c8] sm:$0xff] %v2522_v26  ;;  %v2897_v31 = vadd.f32 %v5459_v38, %v2872_v20  ;;  %v5867_v20 = vld [vmem:[#allocation7_spill] sm:$0xff] }
 0x28f   : > { %v2684_v1 = vpop.f32.mrf.mxu1 }
 0x290   : > { %3520 = vst [vmem:[%s5091_s21 + $0x3d0] sm:$0xff] %v2897_v31  ;;  %v2685_v30 = vadd.f32 %v2684_v1, %v5416_v9  ;;  %v2308_v11 = vpop.f32.mrf.mxu2 }
 0x291   : > { %v2309_v2 = vadd.f32 %v2308_v11, %v5866_v40  ;;  %v2497_v47 = vpop.f32.mrf.mxu3  ;;  %v2799_v40 = vpop.permute.xlu2 %2798 }
 0x292   : > { %v2715_v42 = vadd.f32 %v5497_v36, %v2685_v30  ;;  %v2498_v43 = vadd.f32 %v2497_v47, %v5273_v4 }
 0x293   : > { %v2340_v0 = vadd.f32 %v5513_v13, %v2309_v2  ;;  %v2873_v32 = vpop.f32.mrf.mxu0 }
 0x294   : > { %3501 = vst [vmem:[%s5091_s21 + $0x338] sm:$0xff] %v2715_v42  ;;  %v2523_v28 = vadd.f32 %v5453_v35, %v2498_v43  ;;  %v2874_v58 = vadd.f32 %v2873_v32, %v2787_v50 }
 0x295   : > { %3468 = vst [vmem:[%s5091_s21 + $0x230] sm:$0xff] %v2340_v0 }
 0x296   : > { %3488 = vst [vmem:[%s5091_s21 + $0x2d0] sm:$0xff] %v2523_v28  ;;  %v2898_v9 = vadd.f32 %v5459_v38, %v2874_v58 }
 0x297   : > { %v2687_v34 = vpop.f32.mrf.mxu1 }
 0x298   : > { %3521 = vst [vmem:[%s5091_s21 + $0x3d8] sm:$0xff] %v2898_v9  ;;  %v2688_v23 = vadd.f32 %v2687_v34, %v5381_v14  ;;  %v2310_v4 = vpop.f32.mrf.mxu2  ;;  %v2803_v34 = vpop.permute.xlu0 %2802 }
 0x299   : > { %v2311_v10 = vadd.f32 %v2310_v4, %v5243_v52  ;;  %v2499_v21 = vpop.f32.mrf.mxu3 }
 0x29a   : > { %v2716_v49 = vadd.f32 %v5497_v36, %v2688_v23  ;;  %v2500_v22 = vadd.f32 %v2499_v21, %v5390_v12 }
 0x29b   : > { %v2341_v7 = vadd.f32 %v5513_v13, %v2311_v10  ;;  %v2876_v54 = vpop.f32.mrf.mxu0 }
 0x29c   : > { %3502 = vst [vmem:[%s5091_s21 + $0x340] sm:$0xff] %v2716_v49  ;;  %v2524_v15 = vadd.f32 %v5453_v35, %v2500_v22  ;;  %v2877_v56 = vadd.f32 %v2876_v54, %v2791_v6 }
 0x29d   : > { %3469 = vst [vmem:[%s5091_s21 + $0x238] sm:$0xff] %v2341_v7 }
 0x29e   : > { %3489 = vst [vmem:[%s5091_s21 + $0x2d8] sm:$0xff] %v2524_v15  ;;  %v2899_v14 = vadd.f32 %v5459_v38, %v2877_v56 }
 0x29f   : > { %v2689_v52 = vpop.f32.mrf.mxu1 }
 0x2a0   : > { %3522 = vst [vmem:[%s5091_s21 + $0x3e0] sm:$0xff] %v2899_v14  ;;  %v2690_v51 = vadd.f32 %v2689_v52, %v5486_v60  ;;  %v2313_v12 = vpop.f32.mrf.mxu2 }
 0x2a1   : > { %v2314_v53 = vadd.f32 %v2313_v12, %v5168_v41  ;;  %v2502_v45 = vpop.f32.mrf.mxu3 }
 0x2a2   : > { %v2717_v37 = vadd.f32 %v5497_v36, %v2690_v51  ;;  %v2503_v33 = vadd.f32 %v2502_v45, %v5330_v57 }
 0x2a3   : > { %v2342_v61 = vadd.f32 %v5513_v13, %v2314_v53  ;;  %v2878_v24 = vpop.f32.mrf.mxu0 }
 0x2a4   : > { %3503 = vst [vmem:[%s5091_s21 + $0x348] sm:$0xff] %v2717_v37  ;;  %v2525_v8 = vadd.f32 %v5453_v35, %v2503_v33  ;;  %v2879_v63 = vadd.f32 %v2878_v24, %v2795_v55 }
 0x2a5   : > { %3470 = vst [vmem:[%s5091_s21 + $0x240] sm:$0xff] %v2342_v61 }
 0x2a6   : > { %3490 = vst [vmem:[%s5091_s21 + $0x2e0] sm:$0xff] %v2525_v8  ;;  %v2900_v60 = vadd.f32 %v5459_v38, %v2879_v63 }
 0x2a7   : > { %v2692_v41 = vpop.f32.mrf.mxu1 }
 0x2a8   : > { %3523 = vst [vmem:[%s5091_s21 + $0x3e8] sm:$0xff] %v2900_v60  ;;  %v2693_v26 = vadd.f32 %v2692_v41, %v5432_v59  ;;  %v2315_v57 = vpop.f32.mrf.mxu2 }
 0x2a9   : > { %v2316_v31 = vadd.f32 %v2315_v57, %v5867_v20  ;;  %v2504_v1 = vpop.f32.mrf.mxu3 }
 0x2aa   : > { %v2718_v30 = vadd.f32 %v5497_v36, %v2693_v26  ;;  %v2505_v11 = vadd.f32 %v2504_v1, %v5300_v17 }
 0x2ab   : > { %v2343_v2 = vadd.f32 %v5513_v13, %v2316_v31  ;;  %v2881_v47 = vpop.f32.mrf.mxu0 }
 0x2ac   : > { %3504 = vst [vmem:[%s5091_s21 + $0x350] sm:$0xff] %v2718_v30  ;;  %v2526_v42 = vadd.f32 %v5453_v35, %v2505_v11  ;;  %v2882_v43 = vadd.f32 %v2881_v47, %v2799_v40 }
 0x2ad   : > { %3471 = vst [vmem:[%s5091_s21 + $0x248] sm:$0xff] %v2343_v2 }
 0x2ae   : > { %3491 = vst [vmem:[%s5091_s21 + $0x2e8] sm:$0xff] %v2526_v42  ;;  %v2901_v59 = vadd.f32 %v5459_v38, %v2882_v43 }
 0x2af   : > { %v2694_v50 = vpop.f32.mrf.mxu1 }
 0x2b0   : > { %3524 = vst [vmem:[%s5091_s21 + $0x3f0] sm:$0xff] %v2901_v59  ;;  %v2695_v0 = vadd.f32 %v2694_v50, %v5405_v16  ;;  %v2318_v17 = vpop.f32.mrf.mxu2 }
 0x2b1   : > { %v2319_v32 = vadd.f32 %v2318_v17, %v5262_v44  ;;  %v2507_v28 = vpop.f32.mrf.mxu3 }
 0x2b2   : > { %v2719_v58 = vadd.f32 %v5497_v36, %v2695_v0  ;;  %v2508_v9 = vadd.f32 %v2507_v28, %v5412_v62 }
 0x2b3   : > { %v2344_v23 = vadd.f32 %v5513_v13, %v2319_v32  ;;  %v2883_v4 = vpop.f32.mrf.mxu0 }
 0x2b4   : > { %3505 = vst [vmem:[%s5091_s21 + $0x358] sm:$0xff] %v2719_v58  ;;  %v2527_v10 = vadd.f32 %v5453_v35, %v2508_v9  ;;  %v2884_v21 = vadd.f32 %v2883_v4, %v2803_v34 }
 0x2b5   : > { %3472 = vst [vmem:[%s5091_s21 + $0x250] sm:$0xff] %v2344_v23 }
 0x2b6   : > { %3492 = vst [vmem:[%s5091_s21 + $0x2f0] sm:$0xff] %v2527_v10  ;;  %v2902_v44 = vadd.f32 %v5459_v38, %v2884_v21 }
 0x2b7   : > { %v2697_v16 = vpop.f32.mrf.mxu1 }
 0x2b8   : > { %3525 = vst [vmem:[%s5091_s21 + $0x3f8] sm:$0xff] %v2902_v44  ;;  %v2698_v49 = vadd.f32 %v2697_v16, %v5502_v18  ;;  %v2320_v62 = vpop.f32.mrf.mxu2 }
 0x2b9   : > { %v2321_v22 = vadd.f32 %v2320_v62, %v5197_v46  ;;  %v2509_v6 = vpop.f32.mrf.mxu3 }
 0x2ba   : > { %v2720_v7 = vadd.f32 %v5497_v36, %v2698_v49  ;;  %v2510_v54 = vadd.f32 %v2509_v6, %v5348_v48 }
 0x2bb   : > { %v2345_v15 = vadd.f32 %v5513_v13, %v2321_v22 }
 0x2bc   : > { %3506 = vst [vmem:[%s5091_s21 + $0x360] sm:$0xff] %v2720_v7  ;;  %v2528_v56 = vadd.f32 %v5453_v35, %v2510_v54 }
 0x2bd   : > { %3473 = vst [vmem:[%s5091_s21 + $0x258] sm:$0xff] %v2345_v15 }
 0x2be   : > { %3493 = vst [vmem:[%s5091_s21 + $0x2f8] sm:$0xff] %v2528_v56 }
 0x2bf   : > { %v2699_v38 = vpop.f32.mrf.mxu1 }
 0x2c0   : > { %v2700_v18 = vadd.f32 %v2699_v38, %v5447_v5  ;;  %v2323_v14 = vpop.f32.mrf.mxu2 }
 0x2c1   : > { %v2324_v46 = vadd.f32 %v2323_v14, %v5154_v3 }
 0x2c2   : > { %v2721_v52 = vadd.f32 %v5497_v36, %v2700_v18 }
 0x2c3   : > { %v2346_v51 = vadd.f32 %v5513_v13, %v2324_v46 }
 0x2c4   : > { %3507 = vst [vmem:[%s5091_s21 + $0x368] sm:$0xff] %v2721_v52 }
 0x2c5   : > { %3474 = vst [vmem:[%s5091_s21 + $0x260] sm:$0xff] %v2346_v51 }
 0x2c7   : > { %v2702_v48 = vpop.f32.mrf.mxu1 }
 0x2c8   : > { %v2703_v35 = vadd.f32 %v2702_v48, %v5428_v19  ;;  %v2325_v12 = vpop.f32.mrf.mxu2 }
 0x2c9   : > { %v2326_v53 = vadd.f32 %v2325_v12, %v5286_v27 }
 0x2ca   : > { %v2722_v5 = vadd.f32 %v5497_v36, %v2703_v35 }
 0x2cb   : > { %v2347_v45 = vadd.f32 %v5513_v13, %v2326_v53 }
 0x2cc   : > { %3508 = vst [vmem:[%s5091_s21 + $0x370] sm:$0xff] %v2722_v5 }
 0x2cd   : > { %3475 = vst [vmem:[%s5091_s21 + $0x268] sm:$0xff] %v2347_v45 }
 0x2cf   : > { %v2704_v3 = vpop.f32.mrf.mxu1 }
 0x2d0   : > { %v2705_v37 = vadd.f32 %v2704_v3, %v5516_v25  ;;  %v2328_v33 = vpop.f32.mrf.mxu2 }
 0x2d1   : > { %v2329_v55 = vadd.f32 %v2328_v33, %v5221_v29 }
 0x2d2   : > { %v2723_v61 = vadd.f32 %v5497_v36, %v2705_v37 }
 0x2d3   : > { %v2348_v19 = vadd.f32 %v5513_v13, %v2329_v55 }
 0x2d4   : > { %3509 = vst [vmem:[%s5091_s21 + $0x378] sm:$0xff] %v2723_v61 }
 0x2d5   : > { %3476 = vst [vmem:[%s5091_s21 + $0x270] sm:$0xff] %v2348_v19 }
 0x2d8   : > { %v2330_v27 = vpop.f32.mrf.mxu2 }
 0x2d9   : > { %v2331_v24 = vadd.f32 %v2330_v27, %v5183_v39 }
 0x2db   : > { %v2349_v8 = vadd.f32 %v5513_v13, %v2331_v24 }
 0x2dd   : > { %3477 = vst [vmem:[%s5091_s21 + $0x278] sm:$0xff] %v2349_v8 }
 0x2de PF: > { %s16_s23 = sadd.s32 1, %s3753_s23   ;;  %s5868_s21 = smov %s3749_s22 }
 0x2df   : > { %p13_p5 = scmp.ge.s32.totalorder %s16_s23, 4   ;;  %s5869_s22 = smov %s5871_s24 }
 0x2e1   :  { %15 = sbr.rel (!%p13_p5) target bundleno = 2 (0x2), region = 96 }

</bundles_post_ra>
